<compile_context>
chip_gen: v7x
topology: tpu7x:2x2x1
jax: 0.10.0
libtpu: 0.0.40
codegen_flags: <defaults>
</compile_context>

<pallas_src>
import functools

import jax
import jax.numpy as jnp
from jax.experimental import pallas as pl
from jax.experimental.pallas import tpu as pltpu

LANES = 128          # last-dim (lane) alignment
SUBLANES_BF16 = 16   # second-to-last-dim granule for bf16 tiles


def _round_up(n, m):
    return ((n + m - 1) // m) * m


def _pick_row_tile(batch):
    """Row-tile (tm) selection.

    * batch >= 512 : tm=256 -> streams the v6e/v7x 256-wide MXU, few grid steps.
    * 256..511     : tm=128 -> still >=2 parallel steps.
    * 32..255      : split the batch into 2 parallel steps (keeps both v7x
                     TensorCores busy) rounded to the bf16 sublane granule.
    * < 32         : single tile rounded up to 16 rows.
    """
    if batch >= 512:
        return 256
    if batch >= 256:
        return 128
    if batch >= 2 * SUBLANES_BF16:
        return _round_up((batch + 1) // 2, SUBLANES_BF16)
    return _round_up(batch, SUBLANES_BF16)


def _resident_spec(shape):
    """Full-array block + constant index_map: DMA once, VMEM-resident.

    Single-buffered (pl.Buffered(1)): a constant block never changes, so a
    second buffer only wastes VMEM. Falls back to the default pipeline mode if
    this jax version rejects buffer_count=1.
    """
    try:
        return pl.BlockSpec(shape, lambda i: (0, 0), pipeline_mode=pl.Buffered(1))
    except (TypeError, ValueError, AttributeError):
        return pl.BlockSpec(shape, lambda i: (0, 0))


def _mlp_kernel(x_ref, *refs):
    """Fused MLP:  out = Wn(...ReLU(W2 ReLU(W1 x + b1) + b2)...) + bn.

    x_ref : (tm, in_p) bf16 activation row tile.
    refs  : (w1, b1, ..., wn, bn, o_ref). Weights are bf16 (in_p, out_p) and
            VMEM-resident across the whole grid; biases are f32 (1, out_p).
    Intermediates stay on-chip (bf16 between layers, f32 accumulation).
    """
    *wb_refs, o_ref = refs
    n_layers = len(wb_refs) // 2
    h = x_ref[...]                              # bf16
    for i in range(n_layers):
        w = wb_refs[2 * i][...]
        b = wb_refs[2 * i + 1][...]
        acc = jnp.dot(h, w, preferred_element_type=jnp.float32) + b
        if i < n_layers - 1:
            h = jnp.maximum(acc, 0.0).astype(jnp.bfloat16)   # keep spills bf16
        else:
            h = acc                                          # final layer stays f32
    o_ref[...] = h.astype(o_ref.dtype)


def init_kimchi_mlp_params(key, input_size, hidden_sizes=(1024, 800, 400), num_classes=11):
    """nn.Linear-style U(-1/sqrt(in), 1/sqrt(in)) init, stored kernel-ready:

      * weights transposed to (in_features, out_features), zero-padded so both
        dims are multiples of 128 lanes, then cast to bf16,
      * biases stored pre-shaped as (1, out_padded) in f32.

    Zero padding is exact: padded output columns are 0 (zero weight col + zero
    bias), ReLU keeps them 0, and the next layer's padded input rows are zero.
    """
    dims = [input_size, *hidden_sizes, num_classes]
    params = []
    for in_f, out_f in zip(dims[:-1], dims[1:]):
        key, kw, kb = jax.random.split(key, 3)
        bound = 1.0 / (in_f ** 0.5)
        w = jax.random.uniform(kw, (in_f, out_f), jnp.float32, -bound, bound)
        b = jax.random.uniform(kb, (out_f,), jnp.float32, -bound, bound)
        in_p, out_p = _round_up(in_f, LANES), _round_up(out_f, LANES)
        w_p = jnp.zeros((in_p, out_p), jnp.float32).at[:in_f, :out_f].set(w)
        b_p = jnp.zeros((1, out_p), jnp.float32).at[0, :out_f].set(b)
        params.append((w_p.astype(jnp.bfloat16), b_p))
    return params


def kimchi_mlp_forward(x_nchw, params, num_classes):
    """Forward matching KimchiMLP.forward: flatten, (Linear+ReLU) x3, Linear."""
    batch = x_nchw.shape[0]
    x = x_nchw.reshape(batch, -1).astype(jnp.bfloat16)   # x.view(B, -1), bf16 stream
    in_f = x.shape[1]

    in_p = params[0][0].shape[0]     # padded input width expected by layer 0
    out_p = params[-1][0].shape[1]   # padded width of the final layer

    tm = _pick_row_tile(batch)
    batch_p = _round_up(batch, tm)

    # Only materialize a padded copy when padding is actually required
    # (otherwise it is an extra full HBM write + read of the activations).
    if batch_p != batch or in_p != in_f:
        x_in = jnp.zeros((batch_p, in_p), jnp.bfloat16).at[:batch, :in_f].set(x)
    else:
        x_in = x

    flat_params = []
    in_specs = [pl.BlockSpec((tm, in_p), lambda i: (i, 0))]
    flops = 0
    bytes_accessed = x_in.size * 2 + batch_p * out_p * 4
    for w, b in params:
        flat_params += [w, b]
        in_specs.append(_resident_spec(w.shape))
        in_specs.append(_resident_spec(b.shape))
        flops += 2 * batch_p * w.shape[0] * w.shape[1]
        bytes_accessed += w.size * 2 + b.size * 4

    out = pl.pallas_call(
        _mlp_kernel,
        out_shape=jax.ShapeDtypeStruct((batch_p, out_p), jnp.float32),
        grid=(batch_p // tm,),
        in_specs=in_specs,
        out_specs=pl.BlockSpec((tm, out_p), lambda i: (i, 0)),
        compiler_params=pltpu.CompilerParams(
            dimension_semantics=("parallel",),
        ),
        cost_estimate=pl.CostEstimate(
            flops=flops, transcendentals=0, bytes_accessed=bytes_accessed),
    )(x_in, *flat_params)

    return out[:batch, :num_classes]


def reference_forward(x_nchw, params, num_classes):
    """Pure-JAX reference with identical numerics (bf16 matmul inputs, f32 acc)."""
    batch = x_nchw.shape[0]
    x = x_nchw.reshape(batch, -1)
    in_p = params[0][0].shape[0]
    h = (jnp.zeros((batch, in_p), jnp.float32)
         .at[:, : x.shape[1]].set(x)
         .astype(jnp.bfloat16))
    n = len(params)
    for i, (w, b) in enumerate(params):
        acc = jnp.dot(h, w, preferred_element_type=jnp.float32) + b
        if i < n - 1:
            h = jnp.maximum(acc, 0.0).astype(jnp.bfloat16)
        else:
            h = acc
    return h[:, :num_classes]


if __name__ == "__main__":
    key = jax.random.PRNGKey(0)
    k_in, k_param = jax.random.split(key)

    # Small example consistent with the module: batch=2, channels=4, 16x16
    # spatial -> input_size = 1024; module-default hidden sizes and classes.
    batch, C, H, W = 2, 4, 16, 16
    input_size = C * H * W
    hidden_sizes = (1024, 800, 400)
    num_classes = 11

    x = jax.random.normal(k_in, (batch, C, H, W), dtype=jnp.float32)
    params = init_kimchi_mlp_params(k_param, input_size, hidden_sizes, num_classes)

    forward = jax.jit(functools.partial(kimchi_mlp_forward, num_classes=num_classes))
    out = jax.block_until_ready(forward(x, params))

    ref = reference_forward(x, params, num_classes)
    assert out.shape == (batch, num_classes), out.shape
    assert jnp.allclose(out, ref, atol=1e-2, rtol=1e-2), float(jnp.max(jnp.abs(out - ref)))

    print("KERNEL_OK")
</pallas_src>

<mosaic_0001>
module attributes {stable_mosaic.version = 11 : i64} {
  func.func @_mlp_kernel(%arg0: i32, %arg1: memref<16x1024xbf16, #tpu.memory_space<vmem>>, %arg2: memref<1024x1024xbf16, #tpu.memory_space<vmem>>, %arg3: memref<1x1024xf32, #tpu.memory_space<vmem>>, %arg4: memref<1024x896xbf16, #tpu.memory_space<vmem>>, %arg5: memref<1x896xf32, #tpu.memory_space<vmem>>, %arg6: memref<896x512xbf16, #tpu.memory_space<vmem>>, %arg7: memref<1x512xf32, #tpu.memory_space<vmem>>, %arg8: memref<512x128xbf16, #tpu.memory_space<vmem>>, %arg9: memref<1x128xf32, #tpu.memory_space<vmem>>, %arg10: memref<16x128xf32, #tpu.memory_space<vmem>>) attributes {dimension_semantics = [#tpu.dimension_semantics<parallel>], iteration_bounds = array<i64: 1>, scalar_prefetch = 0 : i64, scratch_operands = 0 : i64, tpu.core_type = #tpu.core_type<tc>, window_params = [{transform_indices = @transform_0, window_bounds = array<i64: 16, 1024>}, {pipeline_mode = #tpu.pipeline_mode<synchronous>, transform_indices = @transform_1, window_bounds = array<i64: 1024, 1024>}, {pipeline_mode = #tpu.pipeline_mode<synchronous>, transform_indices = @transform_2, window_bounds = array<i64: 1, 1024>}, {pipeline_mode = #tpu.pipeline_mode<synchronous>, transform_indices = @transform_3, window_bounds = array<i64: 1024, 896>}, {pipeline_mode = #tpu.pipeline_mode<synchronous>, transform_indices = @transform_4, window_bounds = array<i64: 1, 896>}, {pipeline_mode = #tpu.pipeline_mode<synchronous>, transform_indices = @transform_5, window_bounds = array<i64: 896, 512>}, {pipeline_mode = #tpu.pipeline_mode<synchronous>, transform_indices = @transform_6, window_bounds = array<i64: 1, 512>}, {pipeline_mode = #tpu.pipeline_mode<synchronous>, transform_indices = @transform_7, window_bounds = array<i64: 512, 128>}, {pipeline_mode = #tpu.pipeline_mode<synchronous>, transform_indices = @transform_8, window_bounds = array<i64: 1, 128>}, {transform_indices = @transform_9, window_bounds = array<i64: 16, 128>}]} {
    %c0 = arith.constant 0 : index
    %c0_0 = arith.constant 0 : index
    %0 = vector.load %arg1[%c0, %c0_0] : memref<16x1024xbf16, #tpu.memory_space<vmem>>, vector<16x1024xbf16>
    %c0_1 = arith.constant 0 : index
    %c0_2 = arith.constant 0 : index
    %1 = vector.load %arg2[%c0_1, %c0_2] : memref<1024x1024xbf16, #tpu.memory_space<vmem>>, vector<1024x1024xbf16>
    %c0_3 = arith.constant 0 : index
    %c0_4 = arith.constant 0 : index
    %2 = vector.load %arg3[%c0_3, %c0_4] : memref<1x1024xf32, #tpu.memory_space<vmem>>, vector<1x1024xf32>
    %cst = arith.constant dense<0.000000e+00> : vector<16x1024xf32>
    %3 = tpu.matmul %0, %1, %cst {dimension_numbers = #tpu.dot_dimension_numbers<[1], [0], [0], [1], [0, 0, 1, 1], [], []>} : vector<16x1024xbf16>, vector<1024x1024xbf16>, vector<16x1024xf32> -> vector<16x1024xf32>
    %4 = vector.broadcast %2 : vector<1x1024xf32> to vector<16x1024xf32>
    %5 = arith.addf %3, %4 : vector<16x1024xf32>
    %cst_5 = arith.constant 0.000000e+00 : f32
    %6 = vector.broadcast %cst_5 : f32 to vector<16x1024xf32>
    %7 = arith.maximumf %5, %6 : vector<16x1024xf32>
    %8 = arith.truncf %7 : vector<16x1024xf32> to vector<16x1024xbf16>
    %c0_6 = arith.constant 0 : index
    %c0_7 = arith.constant 0 : index
    %9 = vector.load %arg4[%c0_6, %c0_7] : memref<1024x896xbf16, #tpu.memory_space<vmem>>, vector<1024x896xbf16>
    %c0_8 = arith.constant 0 : index
    %c0_9 = arith.constant 0 : index
    %10 = vector.load %arg5[%c0_8, %c0_9] : memref<1x896xf32, #tpu.memory_space<vmem>>, vector<1x896xf32>
    %cst_10 = arith.constant dense<0.000000e+00> : vector<16x896xf32>
    %11 = tpu.matmul %8, %9, %cst_10 {dimension_numbers = #tpu.dot_dimension_numbers<[1], [0], [0], [1], [0, 0, 1, 1], [], []>} : vector<16x1024xbf16>, vector<1024x896xbf16>, vector<16x896xf32> -> vector<16x896xf32>
    %12 = vector.broadcast %10 : vector<1x896xf32> to vector<16x896xf32>
    %13 = arith.addf %11, %12 : vector<16x896xf32>
    %cst_11 = arith.constant 0.000000e+00 : f32
    %14 = vector.broadcast %cst_11 : f32 to vector<16x896xf32>
    %15 = arith.maximumf %13, %14 : vector<16x896xf32>
    %16 = arith.truncf %15 : vector<16x896xf32> to vector<16x896xbf16>
    %c0_12 = arith.constant 0 : index
    %c0_13 = arith.constant 0 : index
    %17 = vector.load %arg6[%c0_12, %c0_13] : memref<896x512xbf16, #tpu.memory_space<vmem>>, vector<896x512xbf16>
    %c0_14 = arith.constant 0 : index
    %c0_15 = arith.constant 0 : index
    %18 = vector.load %arg7[%c0_14, %c0_15] : memref<1x512xf32, #tpu.memory_space<vmem>>, vector<1x512xf32>
    %cst_16 = arith.constant dense<0.000000e+00> : vector<16x512xf32>
    %19 = tpu.matmul %16, %17, %cst_16 {dimension_numbers = #tpu.dot_dimension_numbers<[1], [0], [0], [1], [0, 0, 1, 1], [], []>} : vector<16x896xbf16>, vector<896x512xbf16>, vector<16x512xf32> -> vector<16x512xf32>
    %20 = vector.broadcast %18 : vector<1x512xf32> to vector<16x512xf32>
    %21 = arith.addf %19, %20 : vector<16x512xf32>
    %cst_17 = arith.constant 0.000000e+00 : f32
    %22 = vector.broadcast %cst_17 : f32 to vector<16x512xf32>
    %23 = arith.maximumf %21, %22 : vector<16x512xf32>
    %24 = arith.truncf %23 : vector<16x512xf32> to vector<16x512xbf16>
    %c0_18 = arith.constant 0 : index
    %c0_19 = arith.constant 0 : index
    %25 = vector.load %arg8[%c0_18, %c0_19] : memref<512x128xbf16, #tpu.memory_space<vmem>>, vector<512x128xbf16>
    %c0_20 = arith.constant 0 : index
    %c0_21 = arith.constant 0 : index
    %26 = vector.load %arg9[%c0_20, %c0_21] : memref<1x128xf32, #tpu.memory_space<vmem>>, vector<1x128xf32>
    %cst_22 = arith.constant dense<0.000000e+00> : vector<16x128xf32>
    %27 = tpu.matmul %24, %25, %cst_22 {dimension_numbers = #tpu.dot_dimension_numbers<[1], [0], [0], [1], [0, 0, 1, 1], [], []>} : vector<16x512xbf16>, vector<512x128xbf16>, vector<16x128xf32> -> vector<16x128xf32>
    %28 = vector.broadcast %26 : vector<1x128xf32> to vector<16x128xf32>
    %29 = arith.addf %27, %28 : vector<16x128xf32>
    %c0_23 = arith.constant 0 : index
    %c0_24 = arith.constant 0 : index
    %30 = vector.load %arg10[%c0_23, %c0_24] : memref<16x128xf32, #tpu.memory_space<vmem>>, vector<16x128xf32>
    tpu.vector_store %arg10[%c0_23, %c0_24], %29 {strides = array<i32>} : memref<16x128xf32, #tpu.memory_space<vmem>>, vector<16x128xf32>,
    return
  }
  func.func @transform_0(%arg0: i32) -> (i32, i32) {
    %c0_i32 = arith.constant 0 : i32
    %c0_i32_0 = arith.constant 0 : i32
    return %arg0, %c0_i32 : i32, i32
  }
  func.func @transform_1(%arg0: i32) -> (i32, i32) {
    %c0_i32 = arith.constant 0 : i32
    %c0_i32_0 = arith.constant 0 : i32
    %c0_i32_1 = arith.constant 0 : i32
    return %c0_i32, %c0_i32_0 : i32, i32
  }
  func.func @transform_2(%arg0: i32) -> (i32, i32) {
    %c0_i32 = arith.constant 0 : i32
    %c0_i32_0 = arith.constant 0 : i32
    %c0_i32_1 = arith.constant 0 : i32
    return %c0_i32, %c0_i32_0 : i32, i32
  }
  func.func @transform_3(%arg0: i32) -> (i32, i32) {
    %c0_i32 = arith.constant 0 : i32
    %c0_i32_0 = arith.constant 0 : i32
    %c0_i32_1 = arith.constant 0 : i32
    return %c0_i32, %c0_i32_0 : i32, i32
  }
  func.func @transform_4(%arg0: i32) -> (i32, i32) {
    %c0_i32 = arith.constant 0 : i32
    %c0_i32_0 = arith.constant 0 : i32
    %c0_i32_1 = arith.constant 0 : i32
    return %c0_i32, %c0_i32_0 : i32, i32
  }
  func.func @transform_5(%arg0: i32) -> (i32, i32) {
    %c0_i32 = arith.constant 0 : i32
    %c0_i32_0 = arith.constant 0 : i32
    %c0_i32_1 = arith.constant 0 : i32
    return %c0_i32, %c0_i32_0 : i32, i32
  }
  func.func @transform_6(%arg0: i32) -> (i32, i32) {
    %c0_i32 = arith.constant 0 : i32
    %c0_i32_0 = arith.constant 0 : i32
    %c0_i32_1 = arith.constant 0 : i32
    return %c0_i32, %c0_i32_0 : i32, i32
  }
  func.func @transform_7(%arg0: i32) -> (i32, i32) {
    %c0_i32 = arith.constant 0 : i32
    %c0_i32_0 = arith.constant 0 : i32
    %c0_i32_1 = arith.constant 0 : i32
    return %c0_i32, %c0_i32_0 : i32, i32
  }
  func.func @transform_8(%arg0: i32) -> (i32, i32) {
    %c0_i32 = arith.constant 0 : i32
    %c0_i32_0 = arith.constant 0 : i32
    %c0_i32_1 = arith.constant 0 : i32
    return %c0_i32, %c0_i32_0 : i32, i32
  }
  func.func @transform_9(%arg0: i32) -> (i32, i32) {
    %c0_i32 = arith.constant 0 : i32
    %c0_i32_0 = arith.constant 0 : i32
    return %arg0, %c0_i32 : i32, i32
  }
}

</mosaic_0001>

<bundles_post_ra>
// kernel: kimchi_mlp_forward.1
= control target key start
LH: loop header
LB: loop body
LE: loop exit
PB: predicated region body
PF: predicated region fallthrough
CT: control target
= control target key end

     0   :  { %14 = vsyncpa [#allocation3], 0  ;;  %s12770_s0 = inlined_call_operand.vmem [shape: bf16[16,1024], index: 0, kind: input, shape index: {}]   ;;  %s12771_s1 = inlined_call_operand.hbm [shape: bf16[1024,1024], index: 1, kind: input, shape index: {}]   ;;  %s12772_s2 = inlined_call_operand.hbm [shape: f32[1,1024], index: 2, kind: input, shape index: {}]   ;;  %s12773_s3 = inlined_call_operand.hbm [shape: bf16[1024,896], index: 3, kind: input, shape index: {}]   ;;  %s12774_s4 = inlined_call_operand.hbm [shape: f32[1,896], index: 4, kind: input, shape index: {}]   ;;  %s12775_s5 = inlined_call_operand.hbm [shape: bf16[896,512], index: 5, kind: input, shape index: {}]   ;;  %s12776_s6 = inlined_call_operand.hbm [shape: f32[1,512], index: 6, kind: input, shape index: {}]   ;;  %s12777_s7 = inlined_call_operand.hbm [shape: bf16[512,128], index: 7, kind: input, shape index: {}]   ;;  %s12778_s8 = inlined_call_operand.hbm [shape: f32[1,128], index: 8, kind: input, shape index: {}]   ;;  %s12779_s9 = inlined_call_operand.vmem [shape: f32[16,128], index: 9, kind: output, shape index: {}]  }
   0x1   :  { %15 = vsyncpa [#allocation5], 0 }
   0x2   :  { %16 = vsyncpa [#allocation8], 0 }
   0x3   :  { %17 = vsyncpa [#allocation11], 0 }
   0x4   :  { %18 = vsyncpa [#allocation14], 0  ;;  %s12353_s30 = smov [#allocation4]   ;;  %s12354_s11 = smov [#allocation7]  }
   0x5   :  { %s39_s10 = sshll.u32 %s12353_s30, 4  ;;  %s61_s12 = sshll.u32 %s12354_s11, 4  ;;  %s40_s10 = int_to_ptr.vmem [resolvable:$true] %s39_s10  ;;  %s62_s12 = int_to_ptr.vmem [resolvable:$true] %s61_s12 }
   0x6   :  { %s12167_s15 = scalar_lea.hbm %s12772_s2, 128 }
   0x7   :  { %p12168_p0 = scmp.ne.s32.totalorder %s12772_s2, %s12167_s15  ;;  %p12171_p1 = scmp.lt.u32.totalorder %s12167_s15, %s12772_s2 }
   0x9   :  { %p12173_p2 = pnand %p12171_p1, %p12168_p0 }
   0xb   :  { %12176 = shalt.err (!%p12173_p2)
}
   0xc   :  { %s12177_s20 = scalar_lea.vmem %s40_s10, 128  ;;  %p12182_p4 = scmp.lt.s32.totalorder %s40_s10, %s40_s10 }
   0xd   :  { %p12178_p3 = scmp.ne.s32.totalorder %s40_s10, %s12177_s20  ;;  %p12183_p5 = scmp.lt.s32.totalorder %s12177_s20, %s12177_s20 }
   0xf   :  { %p12184_p6 = por %p12183_p5, %p12182_p4 }
  0x11   :  { %p12185_p7 = pnand %p12184_p6, %p12178_p3 }
  0x13   :  { %12188 = shalt.err (!%p12185_p7)
}
  0x14   :  { %42 = dma.hbm_to_vmem [thread:$0]  %s12772_s2, 128, %s40_s10, [#allocation5]  }
  0x15   :  { %s12189_s25 = scalar_lea.hbm %s12774_s4, 112 }
  0x16   :  { %p12190_p8 = scmp.ne.s32.totalorder %s12774_s4, %s12189_s25  ;;  %p12193_p9 = scmp.lt.u32.totalorder %s12189_s25, %s12774_s4 }
  0x18   :  { %p12195_p10 = pnand %p12193_p9, %p12190_p8 }
  0x1a   :  { %12198 = shalt.err (!%p12195_p10)
}
  0x1b   :  { %s12199_s30 = scalar_lea.vmem %s62_s12, 112  ;;  %s12203_s11 = scalar_lea.vmem %s62_s12, 128 }
  0x1c   :  { %p12200_p11 = scmp.ne.s32.totalorder %s62_s12, %s12199_s30  ;;  %p12204_p12 = scmp.lt.s32.totalorder %s62_s12, %s62_s12 }
  0x1d   :  { %p12205_p13 = scmp.lt.s32.totalorder %s12203_s11, %s12199_s30 }
  0x1f   :  { %p12206_p0 = por %p12205_p13, %p12204_p12 }
  0x21   :  { %p12207_p1 = pnand %p12206_p0, %p12200_p11 }
  0x23   :  { %12210 = shalt.err (!%p12207_p1)
}
  0x24   :  { %64 = dma.hbm_to_vmem [thread:$0]  %s12774_s4, 112, %s62_s12, [#allocation8]  }
  0x25   :  { %s12355_s13 = smov [#allocation10]   ;;  %s12356_s15 = smov [#allocation2]  }
  0x26   :  { %s83_s14 = sshll.u32 %s12355_s13, 4  ;;  %s26_s16 = sshll.u32 %s12356_s15, 4  ;;  %s84_s14 = int_to_ptr.vmem [resolvable:$true] %s83_s14  ;;  %s12444_s16 = int_to_ptr.vmem [resolvable:$true] %s26_s16 }
  0x27   :  { %s12211_s19 = scalar_lea.hbm %s12776_s6, 64 }
  0x28   :  { %p12212_p2 = scmp.ne.s32.totalorder %s12776_s6, %s12211_s19  ;;  %p12215_p3 = scmp.lt.u32.totalorder %s12211_s19, %s12776_s6 }
  0x2a   :  { %p12217_p4 = pnand %p12215_p3, %p12212_p2 }
  0x2c   :  { %12220 = shalt.err (!%p12217_p4)
}
  0x2d   :  { %s12221_s4 = scalar_lea.vmem %s84_s14, 64  ;;  %p12226_p6 = scmp.lt.s32.totalorder %s84_s14, %s84_s14 }
  0x2e   :  { %p12222_p5 = scmp.ne.s32.totalorder %s84_s14, %s12221_s4  ;;  %p12227_p7 = scmp.lt.s32.totalorder %s12221_s4, %s12221_s4 }
  0x30   :  { %p12228_p8 = por %p12227_p7, %p12226_p6 }
  0x32   :  { %p12229_p9 = pnand %p12228_p8, %p12222_p5 }
  0x34   :  { %12232 = shalt.err (!%p12229_p9)
}
  0x35   :  { %86 = dma.hbm_to_vmem [thread:$0]  %s12776_s6, 64, %s84_s14, [#allocation11]  }
  0x36   :  { %s12233_s27 = scalar_lea.hbm %s12771_s1, 65536 }
  0x37   :  { %p12234_p10 = scmp.ne.s32.totalorder %s12771_s1, %s12233_s27  ;;  %p12237_p11 = scmp.lt.u32.totalorder %s12233_s27, %s12771_s1 }
  0x39   :  { %p12239_p12 = pnand %p12237_p11, %p12234_p10 }
  0x3b   :  { %12242 = shalt.err (!%p12239_p12)
}
  0x3c   :  { %s12243_s2 = scalar_lea.vmem %s12444_s16, 65536  ;;  %p12248_p0 = scmp.lt.s32.totalorder %s12444_s16, %s12444_s16 }
  0x3d   :  { %p12244_p13 = scmp.ne.s32.totalorder %s12444_s16, %s12243_s2  ;;  %p12249_p1 = scmp.lt.s32.totalorder %s12243_s2, %s12243_s2 }
  0x3f   :  { %p12250_p2 = por %p12249_p1, %p12248_p0 }
  0x41   :  { %p12251_p3 = pnand %p12250_p2, %p12244_p13 }
  0x43   :  { %12254 = shalt.err (!%p12251_p3)
}
  0x44   :  { %s12357_s6 = smov 512   ;;  %s12358_s10 = smov 32  }
  0x45   :  { %32 = dma.hbm_to_vmem [thread:$0]  %s12771_s1, 65536, %s12444_s16, [#allocation3], %s12357_s6, %s12357_s6, %s12358_s10  }
  0x46   :  { %s12359_s15 = smov [#allocation6]   ;;  %s12255_s20 = scalar_lea.hbm %s12773_s3, 57344 }
  0x47   :  { %s48_s17 = sshll.u32 %s12359_s15, 4  ;;  %p12256_p4 = scmp.ne.s32.totalorder %s12773_s3, %s12255_s20  ;;  %s49_s17 = int_to_ptr.vmem [resolvable:$true] %s48_s17 }
  0x48   :  { %p12259_p5 = scmp.lt.u32.totalorder %s12255_s20, %s12773_s3 }
  0x4a   :  { %p12261_p6 = pnand %p12259_p5, %p12256_p4 }
  0x4c   :  { %12264 = shalt.err (!%p12261_p6)
}
  0x4d   :  { %s12265_s12 = scalar_lea.vmem %s49_s17, 57344  ;;  %p12270_p8 = scmp.lt.s32.totalorder %s49_s17, %s49_s17 }
  0x4e   :  { %p12266_p7 = scmp.ne.s32.totalorder %s49_s17, %s12265_s12  ;;  %p12271_p9 = scmp.lt.s32.totalorder %s12265_s12, %s12265_s12 }
  0x50   :  { %p12272_p10 = por %p12271_p9, %p12270_p8 }
  0x52   :  { %p12273_p11 = pnand %p12272_p10, %p12266_p7 }
  0x54   :  { %12276 = shalt.err (!%p12273_p11)
}
  0x55   :  { %s12360_s1 = smov 448   ;;  %s12361_s16 = smov 28  }
  0x56   :  { %54 = dma.hbm_to_vmem [thread:$0]  %s12773_s3, 57344, %s49_s17, [#allocation5], %s12360_s1, %s12360_s1, %s12361_s16  }
  0x57   :  { %s12362_s26 = smov [#allocation9]   ;;  %s12277_s30 = scalar_lea.hbm %s12775_s5, 28672 }
  0x58   :  { %s70_s27 = sshll.u32 %s12362_s26, 4  ;;  %p12278_p12 = scmp.ne.s32.totalorder %s12775_s5, %s12277_s30  ;;  %s71_s27 = int_to_ptr.vmem [resolvable:$true] %s70_s27 }
  0x59   :  { %p12281_p13 = scmp.lt.u32.totalorder %s12277_s30, %s12775_s5 }
  0x5b   :  { %p12283_p0 = pnand %p12281_p13, %p12278_p12 }
  0x5d   :  { %12286 = shalt.err (!%p12283_p0)
}
  0x5e   :  { %s12287_s13 = scalar_lea.vmem %s71_s27, 28672  ;;  %p12292_p2 = scmp.lt.s32.totalorder %s71_s27, %s71_s27 }
  0x5f   :  { %p12288_p1 = scmp.ne.s32.totalorder %s71_s27, %s12287_s13  ;;  %p12293_p3 = scmp.lt.s32.totalorder %s12287_s13, %s12287_s13 }
  0x61   :  { %p12294_p4 = por %p12293_p3, %p12292_p2 }
  0x63   :  { %p12295_p5 = pnand %p12294_p4, %p12288_p1 }
  0x65   :  { %12298 = shalt.err (!%p12295_p5)
}
  0x66   :  { %s12363_s3 = smov 256   ;;  %s12364_s14 = smov 16  }
  0x67   :  { %76 = dma.hbm_to_vmem [thread:$0]  %s12775_s5, 28672, %s71_s27, [#allocation8], %s12363_s3, %s12363_s3, %s12364_s14  }
  0x68   :  { %s12365_s18 = smov [#allocation12]   ;;  %s12299_s22 = scalar_lea.hbm %s12777_s7, 4096 }
  0x69   :  { %s92_s19 = sshll.u32 %s12365_s18, 4  ;;  %p12300_p6 = scmp.ne.s32.totalorder %s12777_s7, %s12299_s22  ;;  %s93_s19 = int_to_ptr.vmem [resolvable:$true] %s92_s19 }
  0x6a   :  { %p12303_p7 = scmp.lt.u32.totalorder %s12299_s22, %s12777_s7 }
  0x6c   :  { %p12305_p8 = pnand %p12303_p7, %p12300_p6 }
  0x6e   :  { %12308 = shalt.err (!%p12305_p8)
}
  0x6f   :  { %s12309_s16 = scalar_lea.vmem %s93_s19, 4096  ;;  %p12314_p10 = scmp.lt.s32.totalorder %s93_s19, %s93_s19 }
  0x70   :  { %p12310_p9 = scmp.ne.s32.totalorder %s93_s19, %s12309_s16  ;;  %p12315_p11 = scmp.lt.s32.totalorder %s12309_s16, %s12309_s16 }
  0x72   :  { %p12316_p12 = por %p12315_p11, %p12314_p10 }
  0x74   :  { %p12317_p13 = pnand %p12316_p12, %p12310_p9 }
  0x76   :  { %12320 = shalt.err (!%p12317_p13)
}
  0x77   :  { %s12366_s5 = smov 64   ;;  %s12367_s24 = smov 4  }
  0x78   :  { %98 = dma.hbm_to_vmem [thread:$0]  %s12777_s7, 4096, %s93_s19, [#allocation11], %s12366_s5, %s12366_s5, %s12367_s24  }
  0x79   :  { %s12368_s27 = smov [#allocation13]   ;;  %s12321_s11 = scalar_lea.hbm %s12778_s8, 16 }
  0x7a   :  { %s105_s28 = sshll.u32 %s12368_s27, 4  ;;  %p12322_p0 = scmp.ne.s32.totalorder %s12778_s8, %s12321_s11  ;;  %s106_s28 = int_to_ptr.vmem [resolvable:$true] %s105_s28 }
  0x7b   :  { %p12325_p1 = scmp.lt.u32.totalorder %s12321_s11, %s12778_s8 }
  0x7d   :  { %p12327_p2 = pnand %p12325_p1, %p12322_p0 }
  0x7f   :  { %12330 = shalt.err (!%p12327_p2)
}
  0x80   :  { %s12331_s3 = scalar_lea.vmem %s106_s28, 16  ;;  %s12335_s7 = scalar_lea.vmem %s106_s28, 32 }
  0x81   :  { %p12332_p3 = scmp.ne.s32.totalorder %s106_s28, %s12331_s3  ;;  %p12336_p4 = scmp.lt.s32.totalorder %s106_s28, %s106_s28 }
  0x82   :  { %p12337_p5 = scmp.lt.s32.totalorder %s12335_s7, %s12331_s3 }
  0x84   :  { %p12338_p6 = por %p12337_p5, %p12336_p4 }
  0x86   :  { %p12339_p7 = pnand %p12338_p6, %p12332_p3 }
  0x88   :  { %12342 = shalt.err (!%p12339_p7)
}
  0x89   :  { %108 = dma.hbm_to_vmem [thread:$0]  %s12778_s8, 16, %s106_s28, [#allocation14]  }
  0x8a   :  { %12343 = dma.done.wait [#allocation3], 65536  }
  0x8b   :  { %12344 = vsyncadd [#allocation3], 4294901760 }
  0x8c   :  { %12345 = dma.done.wait [#allocation5], 57472  }
  0x8d   :  { %12346 = vsyncadd [#allocation5], 4294909824 }
  0x8e   :  { %12347 = dma.done.wait [#allocation8], 28784  }
  0x8f   :  { %12348 = vsyncadd [#allocation8], 4294938512 }
  0x90   :  { %12349 = dma.done.wait [#allocation11], 4160  }
  0x91   :  { %12350 = vsyncadd [#allocation11], 4294963136 }
  0x92   :  { %12351 = dma.done.wait [#allocation14], 16  }
  0x93   :  { %12352 = vsyncadd [#allocation14], 4294967280  ;;  %v142_v0 = vld [vmem:[#allocation2] sm:$0xff]  ;;  %v143_v2 = vld [vmem:[#allocation2 + $0x8] sm:$0xff] }
  0x94   :  { %v146_v1 = vld [vmem:[#allocation2 + $0x20] sm:$0xff]  ;;  %v147_v4 = vld [vmem:[#allocation2 + $0x28] sm:$0xff] }
  0x95   :  { %v9649_v3 = vcombine.high %v142_v0, %v146_v1  ;;  %v9648_v5 = vcombine.low %v142_v0, %v146_v1  ;;  %v150_v6 = vld [vmem:[#allocation2 + $0x40] sm:$0xff]  ;;  %v9651_v8 = vcombine.high %v143_v2, %v147_v4  ;;  %v9650_v9 = vcombine.low %v143_v2, %v147_v4  ;;  %v151_v11 = vld [vmem:[#allocation2 + $0x48] sm:$0xff] }
  0x96   :  { %v154_v7 = vld [vmem:[#allocation2 + $0x60] sm:$0xff]  ;;  %v155_v12 = vld [vmem:[#allocation2 + $0x68] sm:$0xff] }
  0x97   :  { %v9657_v10 = vcombine.high %v150_v6, %v154_v7  ;;  %v158_v13 = vld [vmem:[#allocation2 + $0x80] sm:$0xff]  ;;  %3296 = vmatprep.subr.bf16.mxu0 %v9649_v3  ;;  %v9659_v14 = vcombine.high %v151_v11, %v155_v12  ;;  %v159_v16 = vld [vmem:[#allocation2 + $0x88] sm:$0xff]  ;;  %3468 = vmatprep.subr.bf16.mxu1 %v9651_v8  ;;  %v9656_v18 = vcombine.low %v150_v6, %v154_v7 }
  0x98   :  { %v162_v15 = vld [vmem:[#allocation2 + $0xa0] sm:$0xff]  ;;  %v163_v17 = vld [vmem:[#allocation2 + $0xa8] sm:$0xff]  ;;  %3297 = vmatpush1.bf16.msra.mxu0 %v9648_v5  ;;  %3469 = vmatpush1.bf16.msra.mxu1 %v9650_v9  ;;  %v9658_v19 = vcombine.low %v151_v11, %v155_v12 }
  0x99   :  { %3298 = vmatprep.subr.bf16.mxu0 %v9657_v10  ;;  %v9665_v20 = vcombine.high %v158_v13, %v162_v15  ;;  %3470 = vmatprep.subr.bf16.mxu1 %v9659_v14  ;;  %v9667_v21 = vcombine.high %v159_v16, %v163_v17  ;;  %v166_v22 = vld [vmem:[#allocation2 + $0xc0] sm:$0xff]  ;;  %v167_v24 = vld [vmem:[#allocation2 + $0xc8] sm:$0xff]  ;;  %v9664_v26 = vcombine.low %v158_v13, %v162_v15 }
  0x9a   :  { %v170_v23 = vld [vmem:[#allocation2 + $0xe0] sm:$0xff]  ;;  %v171_v25 = vld [vmem:[#allocation2 + $0xe8] sm:$0xff]  ;;  %v9666_v27 = vcombine.low %v159_v16, %v163_v17 }
  0x9b   :  { %v9673_v28 = vcombine.high %v166_v22, %v170_v23  ;;  %v9675_v29 = vcombine.high %v167_v24, %v171_v25  ;;  %v174_v30 = vld [vmem:[#allocation2 + $0x100] sm:$0xff]  ;;  %v175_v32 = vld [vmem:[#allocation2 + $0x108] sm:$0xff]  ;;  %v9672_v34 = vcombine.low %v166_v22, %v170_v23  ;;  %v9674_v35 = vcombine.low %v167_v24, %v171_v25 }
  0x9c   :  { %3299 = vmatpush1.bf16.msra.mxu0 %v9656_v18  ;;  %3471 = vmatpush1.bf16.msra.mxu1 %v9658_v19  ;;  %v178_v31 = vld [vmem:[#allocation2 + $0x120] sm:$0xff]  ;;  %v179_v33 = vld [vmem:[#allocation2 + $0x128] sm:$0xff] }
  0x9d   :  { %3300 = vmatprep.subr.bf16.mxu0 %v9665_v20  ;;  %3472 = vmatprep.subr.bf16.mxu1 %v9667_v21  ;;  %v9681_v36 = vcombine.high %v174_v30, %v178_v31  ;;  %v9683_v37 = vcombine.high %v175_v32, %v179_v33  ;;  %v182_v38 = vld [vmem:[#allocation2 + $0x140] sm:$0xff]  ;;  %v183_v40 = vld [vmem:[#allocation2 + $0x148] sm:$0xff]  ;;  %v9680_v42 = vcombine.low %v174_v30, %v178_v31 }
  0x9e   :  { %v186_v39 = vld [vmem:[#allocation2 + $0x160] sm:$0xff]  ;;  %v187_v41 = vld [vmem:[#allocation2 + $0x168] sm:$0xff]  ;;  %v9682_v43 = vcombine.low %v175_v32, %v179_v33 }
  0x9f   :  { %v9689_v44 = vcombine.high %v182_v38, %v186_v39  ;;  %v9691_v45 = vcombine.high %v183_v40, %v187_v41  ;;  %v190_v46 = vld [vmem:[#allocation2 + $0x180] sm:$0xff]  ;;  %v191_v48 = vld [vmem:[#allocation2 + $0x188] sm:$0xff]  ;;  %v9688_v50 = vcombine.low %v182_v38, %v186_v39  ;;  %v9690_v51 = vcombine.low %v183_v40, %v187_v41 }
  0xa0   :  { %3301 = vmatpush1.bf16.msra.mxu0 %v9664_v26  ;;  %3473 = vmatpush1.bf16.msra.mxu1 %v9666_v27  ;;  %v194_v47 = vld [vmem:[#allocation2 + $0x1a0] sm:$0xff]  ;;  %v195_v49 = vld [vmem:[#allocation2 + $0x1a8] sm:$0xff] }
  0xa1   :  { %3302 = vmatprep.subr.bf16.mxu0 %v9673_v28  ;;  %3474 = vmatprep.subr.bf16.mxu1 %v9675_v29  ;;  %v9697_v52 = vcombine.high %v190_v46, %v194_v47  ;;  %v12526_v53 = vld [vmem:[%s12770_s0] sm:$0xff]  ;;  %v9699_v55 = vcombine.high %v191_v48, %v195_v49  ;;  %v199_v59 = vld [vmem:[#allocation2 + $0x1c8] sm:$0xff]  ;;  %v9696_v61 = vcombine.low %v190_v46, %v194_v47 }
  0xa2   :  { %v12531_v54 = vld [vmem:[%s12770_s0 + $0x20] sm:$0xff]  ;;  %v203_v60 = vld [vmem:[#allocation2 + $0x1e8] sm:$0xff]  ;;  %v9698_v62 = vcombine.low %v191_v48, %v195_v49 }
  0xa3   :  { %v198_v56 = vld [vmem:[#allocation2 + $0x1c0] sm:$0xff]  ;;  %v12535_v58 = vcombine.high %v12526_v53, %v12531_v54  ;;  %v9707_v0 = vcombine.high %v199_v59, %v203_v60  ;;  %v207_v3 = vld [vmem:[#allocation2 + $0x208] sm:$0xff]  ;;  %v9706_v6 = vcombine.low %v199_v59, %v203_v60 }
  0xa4   :  { %3303 = vmatpush1.bf16.msra.mxu0 %v9672_v34  ;;  %3475 = vmatpush1.bf16.msra.mxu1 %v9674_v35  ;;  %v202_v57 = vld [vmem:[#allocation2 + $0x1e0] sm:$0xff]  ;;  %v211_v4 = vld [vmem:[#allocation2 + $0x228] sm:$0xff] }
  0xa5   :  { %3304 = vmatprep.subr.bf16.mxu0 %v9681_v36  ;;  %3476 = vmatprep.subr.bf16.mxu1 %v9683_v37  ;;  %v9705_v63 = vcombine.high %v198_v56, %v202_v57  ;;  %v206_v1 = vld [vmem:[#allocation2 + $0x200] sm:$0xff]  ;;  %v9704_v5 = vcombine.low %v198_v56, %v202_v57  ;;  %v9715_v8 = vcombine.high %v207_v3, %v211_v4  ;;  %v215_v11 = vld [vmem:[#allocation2 + $0x248] sm:$0xff] }
  0xa6   :  { %3328 = vmatprep.mubr.bf16.mxu0 %v12535_v58  ;;  %v210_v2 = vld [vmem:[#allocation2 + $0x220] sm:$0xff]  ;;  %3500 = vmatprep.mubr.bf16.mxu1 %v12535_v58  ;;  %v219_v12 = vld [vmem:[#allocation2 + $0x268] sm:$0xff]  ;;  %v9714_v14 = vcombine.low %v207_v3, %v211_v4 }
  0xa7   :  { %v9713_v7 = vcombine.high %v206_v1, %v210_v2  ;;  %v214_v9 = vld [vmem:[#allocation2 + $0x240] sm:$0xff]  ;;  %v9712_v13 = vcombine.low %v206_v1, %v210_v2  ;;  %v9723_v16 = vcombine.high %v215_v11, %v219_v12  ;;  %v223_v19 = vld [vmem:[#allocation2 + $0x288] sm:$0xff]  ;;  %v9722_v22 = vcombine.low %v215_v11, %v219_v12 }
  0xa8   :  { %3305 = vmatpush1.bf16.msra.mxu0 %v9680_v42  ;;  %3477 = vmatpush1.bf16.msra.mxu1 %v9682_v43  ;;  %v218_v10 = vld [vmem:[#allocation2 + $0x260] sm:$0xff]  ;;  %v227_v20 = vld [vmem:[#allocation2 + $0x2a8] sm:$0xff] }
  0xa9   :  { %3306 = vmatprep.subr.bf16.mxu0 %v9689_v44  ;;  %3478 = vmatprep.subr.bf16.mxu1 %v9691_v45  ;;  %v9721_v15 = vcombine.high %v214_v9, %v218_v10  ;;  %v222_v17 = vld [vmem:[#allocation2 + $0x280] sm:$0xff]  ;;  %v9720_v21 = vcombine.low %v214_v9, %v218_v10  ;;  %v9731_v24 = vcombine.high %v223_v19, %v227_v20  ;;  %v231_v27 = vld [vmem:[#allocation2 + $0x2c8] sm:$0xff] }
  0xaa   :  { %v226_v18 = vld [vmem:[#allocation2 + $0x2a0] sm:$0xff]  ;;  %v235_v28 = vld [vmem:[#allocation2 + $0x2e8] sm:$0xff]  ;;  %v9730_v30 = vcombine.low %v223_v19, %v227_v20 }
  0xab   :  { %v9729_v23 = vcombine.high %v222_v17, %v226_v18  ;;  %v230_v25 = vld [vmem:[#allocation2 + $0x2c0] sm:$0xff]  ;;  %v9728_v29 = vcombine.low %v222_v17, %v226_v18  ;;  %v9739_v32 = vcombine.high %v231_v27, %v235_v28  ;;  %v239_v35 = vld [vmem:[#allocation2 + $0x308] sm:$0xff]  ;;  %v9738_v38 = vcombine.low %v231_v27, %v235_v28 }
  0xac   :  { %3307 = vmatpush1.bf16.msra.mxu0 %v9688_v50  ;;  %3479 = vmatpush1.bf16.msra.mxu1 %v9690_v51  ;;  %v234_v26 = vld [vmem:[#allocation2 + $0x2e0] sm:$0xff]  ;;  %v243_v36 = vld [vmem:[#allocation2 + $0x328] sm:$0xff] }
  0xad   :  { %3308 = vmatprep.subr.bf16.mxu0 %v9697_v52  ;;  %3480 = vmatprep.subr.bf16.mxu1 %v9699_v55  ;;  %v9737_v31 = vcombine.high %v230_v25, %v234_v26  ;;  %v238_v33 = vld [vmem:[#allocation2 + $0x300] sm:$0xff]  ;;  %v9736_v37 = vcombine.low %v230_v25, %v234_v26  ;;  %v9747_v40 = vcombine.high %v239_v35, %v243_v36  ;;  %v247_v43 = vld [vmem:[#allocation2 + $0x348] sm:$0xff] }
  0xae   :  { %v242_v34 = vld [vmem:[#allocation2 + $0x320] sm:$0xff]  ;;  %v251_v44 = vld [vmem:[#allocation2 + $0x368] sm:$0xff]  ;;  %v9746_v46 = vcombine.low %v239_v35, %v243_v36 }
  0xaf   :  { %v9745_v39 = vcombine.high %v238_v33, %v242_v34  ;;  %v246_v41 = vld [vmem:[#allocation2 + $0x340] sm:$0xff]  ;;  %v9744_v45 = vcombine.low %v238_v33, %v242_v34  ;;  %v9755_v48 = vcombine.high %v247_v43, %v251_v44  ;;  %v255_v51 = vld [vmem:[#allocation2 + $0x388] sm:$0xff]  ;;  %v9754_v56 = vcombine.low %v247_v43, %v251_v44 }
  0xb0   :  { %3309 = vmatpush1.bf16.msra.mxu0 %v9696_v61  ;;  %3481 = vmatpush1.bf16.msra.mxu1 %v9698_v62  ;;  %v250_v42 = vld [vmem:[#allocation2 + $0x360] sm:$0xff]  ;;  %v259_v52 = vld [vmem:[#allocation2 + $0x3a8] sm:$0xff] }
  0xb1   :  { %3310 = vmatprep.subr.bf16.mxu0 %v9705_v63  ;;  %3482 = vmatprep.subr.bf16.mxu1 %v9707_v0  ;;  %v9753_v47 = vcombine.high %v246_v41, %v250_v42  ;;  %v254_v49 = vld [vmem:[#allocation2 + $0x380] sm:$0xff]  ;;  %v9752_v55 = vcombine.low %v246_v41, %v250_v42  ;;  %v9763_v59 = vcombine.high %v255_v51, %v259_v52  ;;  %v263_v62 = vld [vmem:[#allocation2 + $0x3c8] sm:$0xff] }
  0xb2   :  { %v258_v50 = vld [vmem:[#allocation2 + $0x3a0] sm:$0xff]  ;;  %v267_v63 = vld [vmem:[#allocation2 + $0x3e8] sm:$0xff]  ;;  %v9762_v1 = vcombine.low %v255_v51, %v259_v52 }
  0xb3   :  { %v9761_v57 = vcombine.high %v254_v49, %v258_v50  ;;  %v262_v60 = vld [vmem:[#allocation2 + $0x3c0] sm:$0xff]  ;;  %v9760_v0 = vcombine.low %v254_v49, %v258_v50  ;;  %v9771_v3 = vcombine.high %v263_v62, %v267_v63  ;;  %v9770_v9 = vcombine.low %v263_v62, %v267_v63  ;;  %v12546_v17 = vld [vmem:[%s12770_s0 + $0x8] sm:$0xff] }
  0xb4   :  { %3311 = vmatpush1.bf16.msra.mxu0 %v9704_v5  ;;  %3483 = vmatpush1.bf16.msra.mxu1 %v9706_v6  ;;  %v266_v61 = vld [vmem:[#allocation2 + $0x3e0] sm:$0xff]  ;;  %v271_v6 = vld [vmem:[#allocation2 + $0x408] sm:$0xff] }
  0xb5   :  { %3312 = vmatprep.subr.bf16.mxu0 %v9713_v7  ;;  %3484 = vmatprep.subr.bf16.mxu1 %v9715_v8  ;;  %v9769_v2 = vcombine.high %v262_v60, %v266_v61  ;;  %v270_v4 = vld [vmem:[#allocation2 + $0x400] sm:$0xff]  ;;  %v275_v7 = vld [vmem:[#allocation2 + $0x428] sm:$0xff]  ;;  %v9768_v8 = vcombine.low %v262_v60, %v266_v61 }
  0xb6   :  { %v274_v5 = vld [vmem:[#allocation2 + $0x420] sm:$0xff]  ;;  %v9779_v11 = vcombine.high %v271_v6, %v275_v7  ;;  %v12551_v18 = vld [vmem:[%s12770_s0 + $0x28] sm:$0xff]  ;;  %v9778_v20 = vcombine.low %v271_v6, %v275_v7 }
  0xb7   :  { %v9777_v10 = vcombine.high %v270_v4, %v274_v5  ;;  %v278_v12 = vld [vmem:[#allocation2 + $0x440] sm:$0xff]  ;;  %v9776_v19 = vcombine.low %v270_v4, %v274_v5  ;;  %v291_v25 = vld [vmem:[#allocation2 + $0x4a8] sm:$0xff] }
  0xb8   :  { %3313 = vmatpush1.bf16.msra.mxu0 %v9712_v13  ;;  %3485 = vmatpush1.bf16.msra.mxu1 %v9714_v14  ;;  %v282_v13 = vld [vmem:[#allocation2 + $0x460] sm:$0xff]  ;;  %v279_v14 = vld [vmem:[#allocation2 + $0x448] sm:$0xff] }
  0xb9   :  { %3314 = vmatprep.subr.bf16.mxu0 %v9721_v15  ;;  %3486 = vmatprep.subr.bf16.mxu1 %v9723_v16  ;;  %v12541_v15 = vcombine.low %v12526_v53, %v12531_v54  ;;  %v283_v16 = vld [vmem:[#allocation2 + $0x468] sm:$0xff]  ;;  %v286_v54 = vld [vmem:[#allocation2 + $0x480] sm:$0xff]  ;;  %v9784_v26 = vcombine.low %v278_v12, %v282_v13 }
  0xba   :  { %v9787_v53 = vcombine.high %v279_v14, %v283_v16  ;;  %v9786_v27 = vcombine.low %v279_v14, %v283_v16  ;;  %v299_v33 = vld [vmem:[#allocation2 + $0x4e8] sm:$0xff] }
  0xbb   :  { %v307_v41 = vld [vmem:[#allocation2 + $0x528] sm:$0xff] }
  0xbc   :  { %3315 = vmatpush1.bf16.msra.mxu0 %v9720_v21  ;;  %3487 = vmatpush1.bf16.msra.mxu1 %v9722_v22  ;;  %v9785_v21 = vcombine.high %v278_v12, %v282_v13  ;;  %v290_v22 = vld [vmem:[#allocation2 + $0x4a0] sm:$0xff]  ;;  %v315_v49 = vld [vmem:[#allocation2 + $0x568] sm:$0xff] }
  0xbd   :  { %3316 = vmatprep.subr.bf16.mxu0 %v9729_v23  ;;  %3488 = vmatprep.subr.bf16.mxu1 %v9731_v24  ;;  %v287_v23 = vld [vmem:[#allocation2 + $0x488] sm:$0xff]  ;;  %v12555_v24 = vcombine.high %v12546_v17, %v12551_v18  ;;  %v9793_v28 = vcombine.high %v286_v54, %v290_v22  ;;  %v9792_v34 = vcombine.low %v286_v54, %v290_v22 }
  0xbe   :  { %v9794_v35 = vcombine.low %v287_v23, %v291_v25  ;;  %v323_v60 = vld [vmem:[#allocation2 + $0x5a8] sm:$0xff] }
  0xbf   :  { %v331_v4 = vld [vmem:[#allocation2 + $0x5e8] sm:$0xff] }
  0xc0   :  { %3317 = vmatpush1.bf16.msra.mxu0 %v9728_v29  ;;  %3489 = vmatpush1.bf16.msra.mxu1 %v9730_v30  ;;  %v294_v29 = vld [vmem:[#allocation2 + $0x4c0] sm:$0xff]  ;;  %v339_v12 = vld [vmem:[#allocation2 + $0x628] sm:$0xff] }
  0xc1   :  { %3318 = vmatprep.subr.bf16.mxu0 %v9737_v31  ;;  %3490 = vmatprep.subr.bf16.mxu1 %v9739_v32  ;;  %v298_v30 = vld [vmem:[#allocation2 + $0x4e0] sm:$0xff]  ;;  %v295_v31 = vld [vmem:[#allocation2 + $0x4c8] sm:$0xff]  ;;  %v9795_v32 = vcombine.high %v287_v23, %v291_v25 }
  0xc2   :  { %v9801_v36 = vcombine.high %v294_v29, %v298_v30  ;;  %v9800_v42 = vcombine.low %v294_v29, %v298_v30  ;;  %v9802_v43 = vcombine.low %v295_v31, %v299_v33  ;;  %v347_v54 = vld [vmem:[#allocation2 + $0x668] sm:$0xff] }
  0xc3   :  { %v355_v30 = vld [vmem:[#allocation2 + $0x6a8] sm:$0xff] }
  0xc4   :  { %3319 = vmatpush1.bf16.msra.mxu0 %v9736_v37  ;;  %3491 = vmatpush1.bf16.msra.mxu1 %v9738_v38  ;;  %v302_v37 = vld [vmem:[#allocation2 + $0x500] sm:$0xff] }
  0xc5   :  { %3320 = vmatprep.subr.bf16.mxu0 %v9745_v39  ;;  %3492 = vmatprep.subr.bf16.mxu1 %v9747_v40  ;;  %v306_v38 = vld [vmem:[#allocation2 + $0x520] sm:$0xff]  ;;  %v303_v39 = vld [vmem:[#allocation2 + $0x508] sm:$0xff]  ;;  %v9803_v40 = vcombine.high %v295_v31, %v299_v33 }
  0xc6   :  { %v9809_v44 = vcombine.high %v302_v37, %v306_v38  ;;  %v9808_v50 = vcombine.low %v302_v37, %v306_v38  ;;  %v9810_v51 = vcombine.low %v303_v39, %v307_v41  ;;  %v363_v38 = vld [vmem:[#allocation2 + $0x6e8] sm:$0xff] }
  0xc8   :  { %3321 = vmatpush1.bf16.msra.mxu0 %v9744_v45  ;;  %3493 = vmatpush1.bf16.msra.mxu1 %v9746_v46  ;;  %v310_v45 = vld [vmem:[#allocation2 + $0x540] sm:$0xff] }
  0xc9   :  { %3322 = vmatprep.subr.bf16.mxu0 %v9753_v47  ;;  %3494 = vmatprep.subr.bf16.mxu1 %v9755_v48  ;;  %v314_v46 = vld [vmem:[#allocation2 + $0x560] sm:$0xff]  ;;  %v311_v47 = vld [vmem:[#allocation2 + $0x548] sm:$0xff]  ;;  %v9811_v48 = vcombine.high %v303_v39, %v307_v41 }
  0xca   :  { %v9817_v52 = vcombine.high %v310_v45, %v314_v46  ;;  %v9816_v61 = vcombine.low %v310_v45, %v314_v46  ;;  %v9818_v62 = vcombine.low %v311_v47, %v315_v49  ;;  %v371_v46 = vld [vmem:[#allocation2 + $0x728] sm:$0xff] }
  0xcc   :  { %3323 = vmatpush1.bf16.msra.mxu0 %v9752_v55  ;;  %3495 = vmatpush1.bf16.msra.mxu1 %v9754_v56  ;;  %v318_v55 = vld [vmem:[#allocation2 + $0x580] sm:$0xff] }
  0xcd   :  { %3324 = vmatprep.subr.bf16.mxu0 %v9761_v57  ;;  %3496 = vmatprep.subr.bf16.mxu1 %v9763_v59  ;;  %v322_v56 = vld [vmem:[#allocation2 + $0x5a0] sm:$0xff]  ;;  %v319_v57 = vld [vmem:[#allocation2 + $0x588] sm:$0xff]  ;;  %v9819_v59 = vcombine.high %v311_v47, %v315_v49 }
  0xce   :  { %v9825_v63 = vcombine.high %v318_v55, %v322_v56  ;;  %v9824_v5 = vcombine.low %v318_v55, %v322_v56  ;;  %v9826_v6 = vcombine.low %v319_v57, %v323_v60  ;;  %v379_v56 = vld [vmem:[#allocation2 + $0x768] sm:$0xff] }
  0xd0   :  { %3325 = vmatpush1.bf16.msra.mxu0 %v9760_v0  ;;  %3497 = vmatpush1.bf16.msra.mxu1 %v9762_v1  ;;  %v326_v0 = vld [vmem:[#allocation2 + $0x5c0] sm:$0xff] }
  0xd1   :  { %3326 = vmatprep.subr.bf16.mxu0 %v9769_v2  ;;  %3498 = vmatprep.subr.bf16.mxu1 %v9771_v3  ;;  %v330_v1 = vld [vmem:[#allocation2 + $0x5e0] sm:$0xff]  ;;  %v327_v2 = vld [vmem:[#allocation2 + $0x5c8] sm:$0xff]  ;;  %v9827_v3 = vcombine.high %v319_v57, %v323_v60 }
  0xd2   :  { %v9833_v7 = vcombine.high %v326_v0, %v330_v1  ;;  %v9832_v13 = vcombine.low %v326_v0, %v330_v1  ;;  %v9834_v14 = vcombine.low %v327_v2, %v331_v4  ;;  %v387_v1 = vld [vmem:[#allocation2 + $0x7a8] sm:$0xff] }
  0xd4   :  { %3327 = vmatpush1.bf16.msra.mxu0 %v9768_v8  ;;  %3499 = vmatpush1.bf16.msra.mxu1 %v9770_v9  ;;  %v334_v8 = vld [vmem:[#allocation2 + $0x600] sm:$0xff] }
  0xd5   :  { %3339 = vmatprep.subr.bf16.mxu0 %v9777_v10  ;;  %3511 = vmatprep.subr.bf16.mxu1 %v9779_v11  ;;  %v338_v9 = vld [vmem:[#allocation2 + $0x620] sm:$0xff]  ;;  %v335_v10 = vld [vmem:[#allocation2 + $0x608] sm:$0xff]  ;;  %v9835_v11 = vcombine.high %v327_v2, %v331_v4 }
  0xd6   :  { %v9841_v16 = vcombine.high %v334_v8, %v338_v9  ;;  %v9840_v22 = vcombine.low %v334_v8, %v338_v9  ;;  %v9842_v23 = vcombine.low %v335_v10, %v339_v12  ;;  %v395_v9 = vld [vmem:[#allocation2 + $0x7e8] sm:$0xff] }
  0xd7   :  { %3329 = vmatmul.mubr.bf16.vlgmr.msra.gmra.mrb[0].mxu0 %v12541_v15  ;;  %3501 = vmatmul.mubr.bf16.vlgmr.msra.gmra.mrb[0].mxu1 %v12541_v15 }
  0xd8   :  { %3340 = vmatpush1.bf16.msra.mxu0 %v9776_v19  ;;  %3512 = vmatpush1.bf16.msra.mxu1 %v9778_v20  ;;  %v342_v19 = vld [vmem:[#allocation2 + $0x640] sm:$0xff] }
  0xd9   :  { %3341 = vmatprep.subr.bf16.mxu0 %v9785_v21  ;;  %3513 = vmatprep.subr.bf16.mxu1 %v9787_v53  ;;  %v346_v20 = vld [vmem:[#allocation2 + $0x660] sm:$0xff]  ;;  %v343_v21 = vld [vmem:[#allocation2 + $0x648] sm:$0xff]  ;;  %v9843_v53 = vcombine.high %v335_v10, %v339_v12 }
  0xda   :  { %3371 = vmatprep.mubr.bf16.mxu0 %v12555_v24  ;;  %3543 = vmatprep.mubr.bf16.mxu1 %v12555_v24  ;;  %v9849_v25 = vcombine.high %v342_v19, %v346_v20  ;;  %v9851_v29 = vcombine.high %v343_v21, %v347_v54  ;;  %v9848_v31 = vcombine.low %v342_v19, %v346_v20  ;;  %v403_v20 = vld [vmem:[#allocation2 + $0x828] sm:$0xff] }
  0xdc   :  { %3342 = vmatpush1.bf16.msra.mxu0 %v9784_v26  ;;  %3514 = vmatpush1.bf16.msra.mxu1 %v9786_v27  ;;  %v350_v26 = vld [vmem:[#allocation2 + $0x680] sm:$0xff] }
  0xdd   :  { %3343 = vmatprep.subr.bf16.mxu0 %v9793_v28  ;;  %3515 = vmatprep.subr.bf16.mxu1 %v9795_v32  ;;  %v354_v27 = vld [vmem:[#allocation2 + $0x6a0] sm:$0xff]  ;;  %v351_v28 = vld [vmem:[#allocation2 + $0x688] sm:$0xff]  ;;  %v9850_v32 = vcombine.low %v343_v21, %v347_v54 }
  0xde   :  { %v9857_v33 = vcombine.high %v350_v26, %v354_v27  ;;  %v9859_v37 = vcombine.high %v351_v28, %v355_v30  ;;  %v9856_v39 = vcombine.low %v350_v26, %v354_v27  ;;  %v410_v54 = vld [vmem:[#allocation2 + $0x860] sm:$0xff]  ;;  %v411_v26 = vld [vmem:[#allocation2 + $0x868] sm:$0xff]  ;;  %v12564_v27 = vld [vmem:[%s12770_s0 + $0x10] sm:$0xff] }
  0xe0   :  { %3344 = vmatpush1.bf16.msra.mxu0 %v9792_v34  ;;  %3516 = vmatpush1.bf16.msra.mxu1 %v9794_v35  ;;  %v358_v34 = vld [vmem:[#allocation2 + $0x6c0] sm:$0xff] }
  0xe1   :  { %3345 = vmatprep.subr.bf16.mxu0 %v9801_v36  ;;  %3517 = vmatprep.subr.bf16.mxu1 %v9803_v40  ;;  %v362_v35 = vld [vmem:[#allocation2 + $0x6e0] sm:$0xff]  ;;  %v359_v36 = vld [vmem:[#allocation2 + $0x6c8] sm:$0xff]  ;;  %v9858_v40 = vcombine.low %v351_v28, %v355_v30  ;;  %v12573_v30 = vcombine.low %v12546_v17, %v12551_v18 }
  0xe2   :  { %v9865_v41 = vcombine.high %v358_v34, %v362_v35  ;;  %v9867_v45 = vcombine.high %v359_v36, %v363_v38  ;;  %v9864_v47 = vcombine.low %v358_v34, %v362_v35  ;;  %v414_v34 = vld [vmem:[#allocation2 + $0x880] sm:$0xff] }
  0xe3   :  { %v418_v35 = vld [vmem:[#allocation2 + $0x8a0] sm:$0xff] }
  0xe4   :  { %3346 = vmatpush1.bf16.msra.mxu0 %v9800_v42  ;;  %3518 = vmatpush1.bf16.msra.mxu1 %v9802_v43  ;;  %v366_v42 = vld [vmem:[#allocation2 + $0x700] sm:$0xff] }
  0xe5   :  { %3347 = vmatprep.subr.bf16.mxu0 %v9809_v44  ;;  %3519 = vmatprep.subr.bf16.mxu1 %v9811_v48  ;;  %v370_v43 = vld [vmem:[#allocation2 + $0x720] sm:$0xff]  ;;  %v367_v44 = vld [vmem:[#allocation2 + $0x708] sm:$0xff]  ;;  %v9866_v48 = vcombine.low %v359_v36, %v363_v38 }
  0xe6   :  { %v9873_v49 = vcombine.high %v366_v42, %v370_v43  ;;  %v9875_v55 = vcombine.high %v367_v44, %v371_v46  ;;  %v9872_v57 = vcombine.low %v366_v42, %v370_v43  ;;  %v415_v36 = vld [vmem:[#allocation2 + $0x888] sm:$0xff]  ;;  %v426_v42 = vld [vmem:[#allocation2 + $0x8e0] sm:$0xff] }
  0xe7   :  { %v419_v38 = vld [vmem:[#allocation2 + $0x8a8] sm:$0xff] }
  0xe8   :  { %3348 = vmatpush1.bf16.msra.mxu0 %v9808_v50  ;;  %3520 = vmatpush1.bf16.msra.mxu1 %v9810_v51  ;;  %v374_v50 = vld [vmem:[#allocation2 + $0x740] sm:$0xff]  ;;  %v423_v43 = vld [vmem:[#allocation2 + $0x8c8] sm:$0xff] }
  0xe9   :  { %3349 = vmatprep.subr.bf16.mxu0 %v9817_v52  ;;  %3521 = vmatprep.subr.bf16.mxu1 %v9819_v59  ;;  %v378_v51 = vld [vmem:[#allocation2 + $0x760] sm:$0xff]  ;;  %v375_v52 = vld [vmem:[#allocation2 + $0x748] sm:$0xff]  ;;  %v9874_v59 = vcombine.low %v367_v44, %v371_v46  ;;  %v9923_v44 = vcombine.high %v415_v36, %v419_v38  ;;  %v9920_v46 = vcombine.low %v414_v34, %v418_v35 }
  0xea   :  { %v9881_v60 = vcombine.high %v374_v50, %v378_v51  ;;  %v9883_v0 = vcombine.high %v375_v52, %v379_v56  ;;  %v9880_v2 = vcombine.low %v374_v50, %v378_v51  ;;  %v434_v50 = vld [vmem:[#allocation2 + $0x920] sm:$0xff]  ;;  %v431_v51 = vld [vmem:[#allocation2 + $0x908] sm:$0xff] }
  0xec   :  { %3350 = vmatpush1.bf16.msra.mxu0 %v9816_v61  ;;  %3522 = vmatpush1.bf16.msra.mxu1 %v9818_v62  ;;  %v382_v61 = vld [vmem:[#allocation2 + $0x780] sm:$0xff] }
  0xed   :  { %3351 = vmatprep.subr.bf16.mxu0 %v9825_v63  ;;  %3523 = vmatprep.subr.bf16.mxu1 %v9827_v3  ;;  %v386_v62 = vld [vmem:[#allocation2 + $0x7a0] sm:$0xff]  ;;  %v383_v63 = vld [vmem:[#allocation2 + $0x788] sm:$0xff]  ;;  %v9882_v3 = vcombine.low %v375_v52, %v379_v56 }
  0xee   :  { %v9889_v4 = vcombine.high %v382_v61, %v386_v62  ;;  %v9891_v8 = vcombine.high %v383_v63, %v387_v1  ;;  %v9888_v10 = vcombine.low %v382_v61, %v386_v62  ;;  %v442_v61 = vld [vmem:[#allocation2 + $0x960] sm:$0xff]  ;;  %v439_v62 = vld [vmem:[#allocation2 + $0x948] sm:$0xff] }
  0xf0   :  { %3352 = vmatpush1.bf16.msra.mxu0 %v9824_v5  ;;  %3524 = vmatpush1.bf16.msra.mxu1 %v9826_v6  ;;  %v390_v5 = vld [vmem:[#allocation2 + $0x7c0] sm:$0xff] }
  0xf1   :  { %3353 = vmatprep.subr.bf16.mxu0 %v9833_v7  ;;  %3525 = vmatprep.subr.bf16.mxu1 %v9835_v11  ;;  %v394_v6 = vld [vmem:[#allocation2 + $0x7e0] sm:$0xff]  ;;  %v391_v7 = vld [vmem:[#allocation2 + $0x7c8] sm:$0xff]  ;;  %v9890_v11 = vcombine.low %v383_v63, %v387_v1 }
  0xf2   :  { %v9897_v12 = vcombine.high %v390_v5, %v394_v6  ;;  %v9899_v19 = vcombine.high %v391_v7, %v395_v9  ;;  %v9896_v21 = vcombine.low %v390_v5, %v394_v6  ;;  %v450_v5 = vld [vmem:[#allocation2 + $0x9a0] sm:$0xff]  ;;  %v447_v6 = vld [vmem:[#allocation2 + $0x988] sm:$0xff] }
  0xf4   :  { %3354 = vmatpush1.bf16.msra.mxu0 %v9832_v13  ;;  %3526 = vmatpush1.bf16.msra.mxu1 %v9834_v14  ;;  %v398_v13 = vld [vmem:[#allocation2 + $0x800] sm:$0xff] }
  0xf5   :  { %3355 = vmatprep.subr.bf16.mxu0 %v9841_v16  ;;  %3527 = vmatprep.subr.bf16.mxu1 %v9843_v53  ;;  %v402_v14 = vld [vmem:[#allocation2 + $0x820] sm:$0xff]  ;;  %v399_v16 = vld [vmem:[#allocation2 + $0x808] sm:$0xff] }
  0xf6   :  { %v406_v53 = vld [vmem:[#allocation2 + $0x840] sm:$0xff]  ;;  %v9907_v28 = vcombine.high %v399_v16, %v403_v20 }
  0xf7   :  { %v9912_v17 = vcombine.low %v406_v53, %v410_v54 }
  0xf8   :  { %3356 = vmatpush1.bf16.msra.mxu0 %v9840_v22  ;;  %3528 = vmatpush1.bf16.msra.mxu1 %v9842_v23  ;;  %v9898_v22 = vcombine.low %v391_v7, %v395_v9  ;;  %v9905_v23 = vcombine.high %v398_v13, %v402_v14 }
  0xf9   :  { %3357 = vmatprep.subr.bf16.mxu0 %v9849_v25  ;;  %3529 = vmatprep.subr.bf16.mxu1 %v9851_v29  ;;  %v407_v25 = vld [vmem:[#allocation2 + $0x848] sm:$0xff]  ;;  %v12569_v29 = vld [vmem:[%s12770_s0 + $0x30] sm:$0xff] }
  0xfa   :  { %v9914_v18 = vcombine.low %v407_v25, %v411_v26 }
  0xfc   :  { %3358 = vmatpush1.bf16.msra.mxu0 %v9848_v31  ;;  %3530 = vmatpush1.bf16.msra.mxu1 %v9850_v32  ;;  %v9904_v31 = vcombine.low %v398_v13, %v402_v14  ;;  %v9906_v32 = vcombine.low %v399_v16, %v403_v20  ;;  %v458_v13 = vld [vmem:[#allocation2 + $0x9e0] sm:$0xff]  ;;  %v455_v14 = vld [vmem:[#allocation2 + $0x9c8] sm:$0xff] }
  0xfd   :  { %3359 = vmatprep.subr.bf16.mxu0 %v9857_v33  ;;  %3531 = vmatprep.subr.bf16.mxu1 %v9859_v37  ;;  %v9913_v33 = vcombine.high %v406_v53, %v410_v54  ;;  %v9915_v37 = vcombine.high %v407_v25, %v411_v26  ;;  %v462_v54 = vld [vmem:[#allocation2 + $0xa00] sm:$0xff]  ;;  %v467_v26 = vld [vmem:[#allocation2 + $0xa28] sm:$0xff] }
 0x100   :  { %3360 = vmatpush1.bf16.msra.mxu0 %v9856_v39  ;;  %3532 = vmatpush1.bf16.msra.mxu1 %v9858_v40  ;;  %v12577_v39 = vcombine.high %v12564_v27, %v12569_v29  ;;  %v9921_v40 = vcombine.high %v414_v34, %v418_v35  ;;  %v474_v34 = vld [vmem:[#allocation2 + $0xa60] sm:$0xff]  ;;  %v471_v35 = vld [vmem:[#allocation2 + $0xa48] sm:$0xff] }
 0x101   :  { %3361 = vmatprep.subr.bf16.mxu0 %v9865_v41  ;;  %3533 = vmatprep.subr.bf16.mxu1 %v9867_v45  ;;  %v422_v41 = vld [vmem:[#allocation2 + $0x8c0] sm:$0xff]  ;;  %v427_v45 = vld [vmem:[#allocation2 + $0x8e8] sm:$0xff] }
 0x102   :  { %v9931_v52 = vcombine.high %v423_v43, %v427_v45  ;;  %v9928_v56 = vcombine.low %v422_v41, %v426_v42 }
 0x104   :  { %3362 = vmatpush1.bf16.msra.mxu0 %v9864_v47  ;;  %3534 = vmatpush1.bf16.msra.mxu1 %v9866_v48  ;;  %v9922_v47 = vcombine.low %v415_v36, %v419_v38  ;;  %v9929_v48 = vcombine.high %v422_v41, %v426_v42  ;;  %v482_v41 = vld [vmem:[#allocation2 + $0xaa0] sm:$0xff]  ;;  %v479_v42 = vld [vmem:[#allocation2 + $0xa88] sm:$0xff] }
 0x105   :  { %3363 = vmatprep.subr.bf16.mxu0 %v9873_v49  ;;  %3535 = vmatprep.subr.bf16.mxu1 %v9875_v55  ;;  %v430_v49 = vld [vmem:[#allocation2 + $0x900] sm:$0xff]  ;;  %v435_v55 = vld [vmem:[#allocation2 + $0x928] sm:$0xff] }
 0x106   :  { %v9939_v63 = vcombine.high %v431_v51, %v435_v55  ;;  %v9936_v1 = vcombine.low %v430_v49, %v434_v50 }
 0x108   :  { %3364 = vmatpush1.bf16.msra.mxu0 %v9872_v57  ;;  %3536 = vmatpush1.bf16.msra.mxu1 %v9874_v59  ;;  %v9930_v57 = vcombine.low %v423_v43, %v427_v45  ;;  %v9937_v59 = vcombine.high %v430_v49, %v434_v50  ;;  %v490_v49 = vld [vmem:[#allocation2 + $0xae0] sm:$0xff]  ;;  %v487_v50 = vld [vmem:[#allocation2 + $0xac8] sm:$0xff] }
 0x109   :  { %3365 = vmatprep.subr.bf16.mxu0 %v9881_v60  ;;  %3537 = vmatprep.subr.bf16.mxu1 %v9883_v0  ;;  %v438_v60 = vld [vmem:[#allocation2 + $0x940] sm:$0xff]  ;;  %v443_v0 = vld [vmem:[#allocation2 + $0x968] sm:$0xff] }
 0x10a   :  { %v9947_v7 = vcombine.high %v439_v62, %v443_v0  ;;  %v9944_v9 = vcombine.low %v438_v60, %v442_v61 }
 0x10c   :  { %3366 = vmatpush1.bf16.msra.mxu0 %v9880_v2  ;;  %3538 = vmatpush1.bf16.msra.mxu1 %v9882_v3  ;;  %v9938_v2 = vcombine.low %v431_v51, %v435_v55  ;;  %v9945_v3 = vcombine.high %v438_v60, %v442_v61  ;;  %v498_v60 = vld [vmem:[#allocation2 + $0xb20] sm:$0xff]  ;;  %v495_v61 = vld [vmem:[#allocation2 + $0xb08] sm:$0xff] }
 0x10d   :  { %3367 = vmatprep.subr.bf16.mxu0 %v9889_v4  ;;  %3539 = vmatprep.subr.bf16.mxu1 %v9891_v8  ;;  %v446_v4 = vld [vmem:[#allocation2 + $0x980] sm:$0xff]  ;;  %v451_v8 = vld [vmem:[#allocation2 + $0x9a8] sm:$0xff] }
 0x10e   :  { %v9955_v16 = vcombine.high %v447_v6, %v451_v8  ;;  %v9952_v20 = vcombine.low %v446_v4, %v450_v5 }
 0x110   :  { %3368 = vmatpush1.bf16.msra.mxu0 %v9888_v10  ;;  %3540 = vmatpush1.bf16.msra.mxu1 %v9890_v11  ;;  %v9946_v10 = vcombine.low %v439_v62, %v443_v0  ;;  %v9953_v11 = vcombine.high %v446_v4, %v450_v5  ;;  %v506_v4 = vld [vmem:[#allocation2 + $0xb60] sm:$0xff]  ;;  %v503_v5 = vld [vmem:[#allocation2 + $0xb48] sm:$0xff] }
 0x111   :  { %3369 = vmatprep.subr.bf16.mxu0 %v9897_v12  ;;  %3541 = vmatprep.subr.bf16.mxu1 %v9899_v19  ;;  %v454_v12 = vld [vmem:[#allocation2 + $0x9c0] sm:$0xff]  ;;  %v459_v19 = vld [vmem:[#allocation2 + $0x9e8] sm:$0xff] }
 0x112   :  { %v9961_v53 = vcombine.high %v454_v12, %v458_v13  ;;  %v9963_v25 = vcombine.high %v455_v14, %v459_v19 }
 0x114   :  { %3370 = vmatpush1.bf16.msra.mxu0 %v9896_v21  ;;  %3542 = vmatpush1.bf16.msra.mxu1 %v9898_v22  ;;  %v9954_v21 = vcombine.low %v447_v6, %v451_v8  ;;  %v466_v22 = vld [vmem:[#allocation2 + $0xa20] sm:$0xff] }
 0x115   :  { %3382 = vmatprep.subr.bf16.mxu0 %v9905_v23  ;;  %3554 = vmatprep.subr.bf16.mxu1 %v9907_v28  ;;  %v463_v23 = vld [vmem:[#allocation2 + $0xa08] sm:$0xff]  ;;  %v9960_v28 = vcombine.low %v454_v12, %v458_v13  ;;  %v9968_v38 = vcombine.low %v462_v54, %v466_v22  ;;  %v514_v12 = vld [vmem:[#allocation2 + $0xba0] sm:$0xff] }
 0x116   :  { %v9971_v36 = vcombine.high %v463_v23, %v467_v26  ;;  %v511_v13 = vld [vmem:[#allocation2 + $0xb88] sm:$0xff] }
 0x117   :  { %3372 = vmatmul.mubr.bf16.vlgmr.msra.gmra.mrb[0].mxu0 %v12573_v30  ;;  %3544 = vmatmul.mubr.bf16.vlgmr.msra.gmra.mrb[0].mxu1 %v12573_v30 }
 0x118   :  { %3383 = vmatpush1.bf16.msra.mxu0 %v9904_v31  ;;  %3555 = vmatpush1.bf16.msra.mxu1 %v9906_v32  ;;  %v9962_v31 = vcombine.low %v455_v14, %v459_v19  ;;  %v9969_v32 = vcombine.high %v462_v54, %v466_v22  ;;  %v522_v54 = vld [vmem:[#allocation2 + $0xbe0] sm:$0xff]  ;;  %v519_v22 = vld [vmem:[#allocation2 + $0xbc8] sm:$0xff] }
 0x119   :  { %3384 = vmatprep.subr.bf16.mxu0 %v9913_v33  ;;  %3556 = vmatprep.subr.bf16.mxu1 %v9915_v37  ;;  %v470_v33 = vld [vmem:[#allocation2 + $0xa40] sm:$0xff]  ;;  %v475_v37 = vld [vmem:[#allocation2 + $0xa68] sm:$0xff] }
 0x11a   :  { %3414 = vmatprep.mubr.bf16.mxu0 %v12577_v39  ;;  %3586 = vmatprep.mubr.bf16.mxu1 %v12577_v39  ;;  %v9979_v43 = vcombine.high %v471_v35, %v475_v37  ;;  %v9976_v45 = vcombine.low %v470_v33, %v474_v34 }
 0x11c   :  { %3385 = vmatpush1.bf16.msra.mxu0 %v9912_v17  ;;  %3557 = vmatpush1.bf16.msra.mxu1 %v9914_v18  ;;  %v9970_v17 = vcombine.low %v463_v23, %v467_v26  ;;  %v9977_v18 = vcombine.high %v470_v33, %v474_v34  ;;  %v530_v33 = vld [vmem:[#allocation2 + $0xc20] sm:$0xff]  ;;  %v527_v34 = vld [vmem:[#allocation2 + $0xc08] sm:$0xff] }
 0x11d   :  { %3386 = vmatprep.subr.bf16.mxu0 %v9921_v40  ;;  %3558 = vmatprep.subr.bf16.mxu1 %v9923_v44  ;;  %v478_v40 = vld [vmem:[#allocation2 + $0xa80] sm:$0xff]  ;;  %v483_v44 = vld [vmem:[#allocation2 + $0xaa8] sm:$0xff] }
 0x11e   :  { %v9987_v51 = vcombine.high %v479_v42, %v483_v44  ;;  %v9984_v55 = vcombine.low %v478_v40, %v482_v41 }
 0x120   :  { %3387 = vmatpush1.bf16.msra.mxu0 %v9920_v46  ;;  %3559 = vmatpush1.bf16.msra.mxu1 %v9922_v47  ;;  %v9978_v46 = vcombine.low %v471_v35, %v475_v37  ;;  %v9985_v47 = vcombine.high %v478_v40, %v482_v41  ;;  %v535_v41 = vld [vmem:[#allocation2 + $0xc48] sm:$0xff] }
 0x121   :  { %3388 = vmatprep.subr.bf16.mxu0 %v9929_v48  ;;  %3560 = vmatprep.subr.bf16.mxu1 %v9931_v52  ;;  %v486_v48 = vld [vmem:[#allocation2 + $0xac0] sm:$0xff]  ;;  %v491_v52 = vld [vmem:[#allocation2 + $0xae8] sm:$0xff] }
 0x122   :  { %v9995_v62 = vcombine.high %v487_v50, %v491_v52  ;;  %v9992_v0 = vcombine.low %v486_v48, %v490_v49 }
 0x124   :  { %3389 = vmatpush1.bf16.msra.mxu0 %v9928_v56  ;;  %3561 = vmatpush1.bf16.msra.mxu1 %v9930_v57  ;;  %v9986_v56 = vcombine.low %v479_v42, %v483_v44  ;;  %v9993_v57 = vcombine.high %v486_v48, %v490_v49  ;;  %v539_v42 = vld [vmem:[#allocation2 + $0xc68] sm:$0xff] }
 0x125   :  { %3390 = vmatprep.subr.bf16.mxu0 %v9937_v59  ;;  %3562 = vmatprep.subr.bf16.mxu1 %v9939_v63  ;;  %v494_v59 = vld [vmem:[#allocation2 + $0xb00] sm:$0xff]  ;;  %v499_v63 = vld [vmem:[#allocation2 + $0xb28] sm:$0xff] }
 0x126   :  { %v10003_v6 = vcombine.high %v495_v61, %v499_v63  ;;  %v10000_v8 = vcombine.low %v494_v59, %v498_v60 }
 0x128   :  { %3391 = vmatpush1.bf16.msra.mxu0 %v9936_v1  ;;  %3563 = vmatpush1.bf16.msra.mxu1 %v9938_v2  ;;  %v9994_v1 = vcombine.low %v487_v50, %v491_v52  ;;  %v10001_v2 = vcombine.high %v494_v59, %v498_v60  ;;  %v542_v50 = vld [vmem:[#allocation2 + $0xc80] sm:$0xff]  ;;  %v543_v52 = vld [vmem:[#allocation2 + $0xc88] sm:$0xff] }
 0x129   :  { %3392 = vmatprep.subr.bf16.mxu0 %v9945_v3  ;;  %3564 = vmatprep.subr.bf16.mxu1 %v9947_v7  ;;  %v502_v3 = vld [vmem:[#allocation2 + $0xb40] sm:$0xff]  ;;  %v507_v7 = vld [vmem:[#allocation2 + $0xb68] sm:$0xff] }
 0x12a   :  { %v10011_v14 = vcombine.high %v503_v5, %v507_v7  ;;  %v10008_v19 = vcombine.low %v502_v3, %v506_v4  ;;  %v550_v60 = vld [vmem:[#allocation2 + $0xcc0] sm:$0xff] }
 0x12c   :  { %3393 = vmatpush1.bf16.msra.mxu0 %v9944_v9  ;;  %3565 = vmatpush1.bf16.msra.mxu1 %v9946_v10  ;;  %v10002_v9 = vcombine.low %v495_v61, %v499_v63  ;;  %v10009_v10 = vcombine.high %v502_v3, %v506_v4  ;;  %v554_v61 = vld [vmem:[#allocation2 + $0xce0] sm:$0xff] }
 0x12d   :  { %3394 = vmatprep.subr.bf16.mxu0 %v9953_v11  ;;  %3566 = vmatprep.subr.bf16.mxu1 %v9955_v16  ;;  %v510_v11 = vld [vmem:[#allocation2 + $0xb80] sm:$0xff]  ;;  %v515_v16 = vld [vmem:[#allocation2 + $0xba8] sm:$0xff]  ;;  %v10057_v3 = vcombine.high %v550_v60, %v554_v61 }
 0x12e   :  { %v10019_v23 = vcombine.high %v511_v13, %v515_v16  ;;  %v10016_v26 = vcombine.low %v510_v11, %v514_v12  ;;  %v558_v4 = vld [vmem:[#allocation2 + $0xd00] sm:$0xff] }
 0x130   :  { %3395 = vmatpush1.bf16.msra.mxu0 %v9952_v20  ;;  %3567 = vmatpush1.bf16.msra.mxu1 %v9954_v21  ;;  %v10010_v20 = vcombine.low %v503_v5, %v507_v7  ;;  %v10017_v21 = vcombine.high %v510_v11, %v514_v12  ;;  %v562_v5 = vld [vmem:[#allocation2 + $0xd20] sm:$0xff] }
 0x131   :  { %3396 = vmatprep.subr.bf16.mxu0 %v9961_v53  ;;  %3568 = vmatprep.subr.bf16.mxu1 %v9963_v25  ;;  %v518_v53 = vld [vmem:[#allocation2 + $0xbc0] sm:$0xff]  ;;  %v523_v25 = vld [vmem:[#allocation2 + $0xbe8] sm:$0xff]  ;;  %v10065_v11 = vcombine.high %v558_v4, %v562_v5 }
 0x132   :  { %v10027_v35 = vcombine.high %v519_v22, %v523_v25  ;;  %v10024_v37 = vcombine.low %v518_v53, %v522_v54  ;;  %v566_v12 = vld [vmem:[#allocation2 + $0xd40] sm:$0xff] }
 0x134   :  { %3397 = vmatpush1.bf16.msra.mxu0 %v9960_v28  ;;  %3569 = vmatpush1.bf16.msra.mxu1 %v9962_v31  ;;  %v10018_v28 = vcombine.low %v511_v13, %v515_v16  ;;  %v10025_v31 = vcombine.high %v518_v53, %v522_v54  ;;  %v570_v13 = vld [vmem:[#allocation2 + $0xd60] sm:$0xff] }
 0x135   :  { %3398 = vmatprep.subr.bf16.mxu0 %v9969_v32  ;;  %3570 = vmatprep.subr.bf16.mxu1 %v9971_v36  ;;  %v526_v32 = vld [vmem:[#allocation2 + $0xc00] sm:$0xff]  ;;  %v531_v36 = vld [vmem:[#allocation2 + $0xc28] sm:$0xff]  ;;  %v10073_v53 = vcombine.high %v566_v12, %v570_v13 }
 0x136   :  { %v10033_v40 = vcombine.high %v526_v32, %v530_v33  ;;  %v10035_v44 = vcombine.high %v527_v34, %v531_v36  ;;  %v10034_v48 = vcombine.low %v527_v34, %v531_v36  ;;  %v574_v54 = vld [vmem:[#allocation2 + $0xd80] sm:$0xff] }
 0x137   :  { %v586_v34 = vld [vmem:[#allocation2 + $0xde0] sm:$0xff] }
 0x138   :  { %3399 = vmatpush1.bf16.msra.mxu0 %v9968_v38  ;;  %3571 = vmatpush1.bf16.msra.mxu1 %v9970_v17  ;;  %v534_v38 = vld [vmem:[#allocation2 + $0xc40] sm:$0xff] }
 0x139   :  { %3400 = vmatprep.subr.bf16.mxu0 %v9977_v18  ;;  %3572 = vmatprep.subr.bf16.mxu1 %v9979_v43  ;;  %v538_v17 = vld [vmem:[#allocation2 + $0xc60] sm:$0xff]  ;;  %v10026_v18 = vcombine.low %v519_v22, %v523_v25  ;;  %v12586_v43 = vld [vmem:[%s12770_s0 + $0x18] sm:$0xff] }
 0x13a   :  { %v10041_v49 = vcombine.high %v534_v38, %v538_v17  ;;  %v578_v22 = vld [vmem:[#allocation2 + $0xda0] sm:$0xff] }
 0x13c   :  { %3401 = vmatpush1.bf16.msra.mxu0 %v9976_v45  ;;  %3573 = vmatpush1.bf16.msra.mxu1 %v9978_v46  ;;  %v12591_v45 = vld [vmem:[%s12770_s0 + $0x38] sm:$0xff]  ;;  %v12595_v46 = vcombine.low %v12564_v27, %v12569_v29  ;;  %v10040_v27 = vcombine.low %v534_v38, %v538_v17  ;;  %v10042_v29 = vcombine.low %v535_v41, %v539_v42 }
 0x13d   :  { %3402 = vmatprep.subr.bf16.mxu0 %v9985_v47  ;;  %3574 = vmatprep.subr.bf16.mxu1 %v9987_v51  ;;  %v10032_v47 = vcombine.low %v526_v32, %v530_v33  ;;  %v546_v51 = vld [vmem:[#allocation2 + $0xca0] sm:$0xff]  ;;  %v10081_v32 = vcombine.high %v574_v54, %v578_v22  ;;  %v10080_v38 = vcombine.low %v574_v54, %v578_v22 }
 0x13e   :  { %v10049_v59 = vcombine.high %v542_v50, %v546_v51  ;;  %v582_v33 = vld [vmem:[#allocation2 + $0xdc0] sm:$0xff] }
 0x13f   :  { %v630_v22 = vld [vmem:[#allocation2 + $0xf40] sm:$0xff] }
 0x140   :  { %3403 = vmatpush1.bf16.msra.mxu0 %v9984_v55  ;;  %3575 = vmatpush1.bf16.msra.mxu1 %v9986_v56  ;;  %v10043_v55 = vcombine.high %v535_v41, %v539_v42  ;;  %v547_v56 = vld [vmem:[#allocation2 + $0xca8] sm:$0xff]  ;;  %v594_v41 = vld [vmem:[#allocation2 + $0xe20] sm:$0xff] }
 0x141   :  { %3404 = vmatprep.subr.bf16.mxu0 %v9993_v57  ;;  %3576 = vmatprep.subr.bf16.mxu1 %v9995_v62  ;;  %v12599_v57 = vcombine.high %v12586_v43, %v12591_v45  ;;  %v551_v62 = vld [vmem:[#allocation2 + $0xcc8] sm:$0xff]  ;;  %v10051_v63 = vcombine.high %v543_v52, %v547_v56 }
 0x142   :  { %v591_v42 = vld [vmem:[#allocation2 + $0xe08] sm:$0xff] }
 0x144   :  { %3405 = vmatpush1.bf16.msra.mxu0 %v9992_v0  ;;  %3577 = vmatpush1.bf16.msra.mxu1 %v9994_v1  ;;  %v555_v0 = vld [vmem:[#allocation2 + $0xce8] sm:$0xff]  ;;  %v10048_v1 = vcombine.low %v542_v50, %v546_v51  ;;  %v598_v51 = vld [vmem:[#allocation2 + $0xe40] sm:$0xff] }
 0x145   :  { %3406 = vmatprep.subr.bf16.mxu0 %v10001_v2  ;;  %3578 = vmatprep.subr.bf16.mxu1 %v10003_v6  ;;  %v10050_v2 = vcombine.low %v543_v52, %v547_v56  ;;  %v559_v6 = vld [vmem:[#allocation2 + $0xd08] sm:$0xff]  ;;  %v10059_v7 = vcombine.high %v551_v62, %v555_v0  ;;  %v602_v52 = vld [vmem:[#allocation2 + $0xe60] sm:$0xff] }
 0x148   :  { %3407 = vmatpush1.bf16.msra.mxu0 %v10000_v8  ;;  %3579 = vmatpush1.bf16.msra.mxu1 %v10002_v9  ;;  %v563_v8 = vld [vmem:[#allocation2 + $0xd28] sm:$0xff]  ;;  %v10056_v9 = vcombine.low %v550_v60, %v554_v61  ;;  %v10105_v60 = vcombine.high %v598_v51, %v602_v52  ;;  %v606_v61 = vld [vmem:[#allocation2 + $0xe80] sm:$0xff] }
 0x149   :  { %3408 = vmatprep.subr.bf16.mxu0 %v10009_v10  ;;  %3580 = vmatprep.subr.bf16.mxu1 %v10011_v14  ;;  %v10058_v10 = vcombine.low %v551_v62, %v555_v0  ;;  %v567_v14 = vld [vmem:[#allocation2 + $0xd48] sm:$0xff]  ;;  %v10067_v16 = vcombine.high %v559_v6, %v563_v8  ;;  %v610_v62 = vld [vmem:[#allocation2 + $0xea0] sm:$0xff] }
 0x14c   :  { %3409 = vmatpush1.bf16.msra.mxu0 %v10008_v19  ;;  %3581 = vmatpush1.bf16.msra.mxu1 %v10010_v20  ;;  %v571_v19 = vld [vmem:[#allocation2 + $0xd68] sm:$0xff]  ;;  %v10064_v20 = vcombine.low %v558_v4, %v562_v5  ;;  %v10113_v4 = vcombine.high %v606_v61, %v610_v62  ;;  %v614_v5 = vld [vmem:[#allocation2 + $0xec0] sm:$0xff] }
 0x14d   :  { %3410 = vmatprep.subr.bf16.mxu0 %v10017_v21  ;;  %3582 = vmatprep.subr.bf16.mxu1 %v10019_v23  ;;  %v10066_v21 = vcombine.low %v559_v6, %v563_v8  ;;  %v575_v23 = vld [vmem:[#allocation2 + $0xd88] sm:$0xff]  ;;  %v10075_v25 = vcombine.high %v567_v14, %v571_v19  ;;  %v618_v6 = vld [vmem:[#allocation2 + $0xee0] sm:$0xff] }
 0x150   :  { %3411 = vmatpush1.bf16.msra.mxu0 %v10016_v26  ;;  %3583 = vmatpush1.bf16.msra.mxu1 %v10018_v28  ;;  %v579_v26 = vld [vmem:[#allocation2 + $0xda8] sm:$0xff]  ;;  %v10072_v28 = vcombine.low %v566_v12, %v570_v13  ;;  %v10121_v12 = vcombine.high %v614_v5, %v618_v6  ;;  %v622_v13 = vld [vmem:[#allocation2 + $0xf00] sm:$0xff] }
 0x151   :  { %3412 = vmatprep.subr.bf16.mxu0 %v10025_v31  ;;  %3584 = vmatprep.subr.bf16.mxu1 %v10027_v35  ;;  %v10074_v31 = vcombine.low %v567_v14, %v571_v19  ;;  %v583_v35 = vld [vmem:[#allocation2 + $0xdc8] sm:$0xff]  ;;  %v10083_v36 = vcombine.high %v575_v23, %v579_v26  ;;  %v10082_v17 = vcombine.low %v575_v23, %v579_v26  ;;  %v626_v14 = vld [vmem:[#allocation2 + $0xf20] sm:$0xff] }
 0x152   :  { %v10129_v54 = vcombine.high %v622_v13, %v626_v14  ;;  %v634_v23 = vld [vmem:[#allocation2 + $0xf60] sm:$0xff] }
 0x154   :  { %3413 = vmatpush1.bf16.msra.mxu0 %v10024_v37  ;;  %3585 = vmatpush1.bf16.msra.mxu1 %v10026_v18  ;;  %v587_v37 = vld [vmem:[#allocation2 + $0xde8] sm:$0xff]  ;;  %v10089_v18 = vcombine.high %v582_v33, %v586_v34 }
 0x155   :  { %3425 = vmatprep.subr.bf16.mxu0 %v10033_v40  ;;  %3597 = vmatprep.subr.bf16.mxu1 %v10035_v44  ;;  %v590_v40 = vld [vmem:[#allocation2 + $0xe00] sm:$0xff]  ;;  %v10091_v44 = vcombine.high %v583_v35, %v587_v37 }
 0x156   :  { %v10097_v50 = vcombine.high %v590_v40, %v594_v41 }
 0x157   :  { %3415 = vmatmul.mubr.bf16.vlgmr.msra.gmra.mrb[0].mxu0 %v12595_v46  ;;  %3587 = vmatmul.mubr.bf16.vlgmr.msra.gmra.mrb[0].mxu1 %v12595_v46 }
 0x158   :  { %3426 = vmatpush1.bf16.msra.mxu0 %v10032_v47  ;;  %3598 = vmatpush1.bf16.msra.mxu1 %v10034_v48  ;;  %v595_v47 = vld [vmem:[#allocation2 + $0xe28] sm:$0xff]  ;;  %v10088_v48 = vcombine.low %v582_v33, %v586_v34  ;;  %v10137_v33 = vcombine.high %v630_v22, %v634_v23  ;;  %v638_v34 = vld [vmem:[#allocation2 + $0xf80] sm:$0xff] }
 0x159   :  { %3427 = vmatprep.subr.bf16.mxu0 %v10041_v49  ;;  %3599 = vmatprep.subr.bf16.mxu1 %v10043_v55  ;;  %v10090_v49 = vcombine.low %v583_v35, %v587_v37  ;;  %v599_v55 = vld [vmem:[#allocation2 + $0xe48] sm:$0xff]  ;;  %v10099_v56 = vcombine.high %v591_v42, %v595_v47  ;;  %v642_v35 = vld [vmem:[#allocation2 + $0xfa0] sm:$0xff] }
 0x15a   :  { %3457 = vmatprep.mubr.bf16.mxu0 %v12599_v57  ;;  %3629 = vmatprep.mubr.bf16.mxu1 %v12599_v57 }
 0x15c   :  { %3428 = vmatpush1.bf16.msra.mxu0 %v10040_v27  ;;  %3600 = vmatpush1.bf16.msra.mxu1 %v10042_v29  ;;  %v603_v27 = vld [vmem:[#allocation2 + $0xe68] sm:$0xff]  ;;  %v10096_v29 = vcombine.low %v590_v40, %v594_v41  ;;  %v10145_v40 = vcombine.high %v638_v34, %v642_v35  ;;  %v646_v41 = vld [vmem:[#allocation2 + $0xfc0] sm:$0xff] }
 0x15d   :  { %3429 = vmatprep.subr.bf16.mxu0 %v10049_v59  ;;  %3601 = vmatprep.subr.bf16.mxu1 %v10051_v63  ;;  %v10098_v59 = vcombine.low %v591_v42, %v595_v47  ;;  %v607_v63 = vld [vmem:[#allocation2 + $0xe88] sm:$0xff]  ;;  %v10107_v0 = vcombine.high %v599_v55, %v603_v27  ;;  %v650_v42 = vld [vmem:[#allocation2 + $0xfe0] sm:$0xff] }
 0x160   :  { %3430 = vmatpush1.bf16.msra.mxu0 %v10048_v1  ;;  %3602 = vmatpush1.bf16.msra.mxu1 %v10050_v2  ;;  %v611_v1 = vld [vmem:[#allocation2 + $0xea8] sm:$0xff]  ;;  %v10104_v2 = vcombine.low %v598_v51, %v602_v52  ;;  %v10153_v51 = vcombine.high %v646_v41, %v650_v42  ;;  %v144_v52 = vld [vmem:[#allocation2 + $0x10] sm:$0xff] }
 0x161   :  { %3431 = vmatprep.subr.bf16.mxu0 %v10057_v3  ;;  %3603 = vmatprep.subr.bf16.mxu1 %v10059_v7  ;;  %v10106_v3 = vcombine.low %v599_v55, %v603_v27  ;;  %v615_v7 = vld [vmem:[#allocation2 + $0xec8] sm:$0xff]  ;;  %v10115_v8 = vcombine.high %v607_v63, %v611_v1  ;;  %v148_v55 = vld [vmem:[#allocation2 + $0x30] sm:$0xff] }
 0x164   :  { %3432 = vmatpush1.bf16.msra.mxu0 %v10056_v9  ;;  %3604 = vmatpush1.bf16.msra.mxu1 %v10058_v10  ;;  %v619_v9 = vld [vmem:[#allocation2 + $0xee8] sm:$0xff]  ;;  %v10112_v10 = vcombine.low %v606_v61, %v610_v62  ;;  %v9653_v61 = vcombine.high %v144_v52, %v148_v55  ;;  %v152_v62 = vld [vmem:[#allocation2 + $0x50] sm:$0xff] }
 0x165   :  { %3433 = vmatprep.subr.bf16.mxu0 %v10065_v11  ;;  %3605 = vmatprep.subr.bf16.mxu1 %v10067_v16  ;;  %v10114_v11 = vcombine.low %v607_v63, %v611_v1  ;;  %v623_v16 = vld [vmem:[#allocation2 + $0xf08] sm:$0xff]  ;;  %v10123_v19 = vcombine.high %v615_v7, %v619_v9  ;;  %v156_v63 = vld [vmem:[#allocation2 + $0x70] sm:$0xff] }
 0x168   :  { %3434 = vmatpush1.bf16.msra.mxu0 %v10064_v20  ;;  %3606 = vmatpush1.bf16.msra.mxu1 %v10066_v21  ;;  %v627_v20 = vld [vmem:[#allocation2 + $0xf28] sm:$0xff]  ;;  %v10120_v21 = vcombine.low %v614_v5, %v618_v6  ;;  %v9661_v6 = vcombine.high %v152_v62, %v156_v63 }
 0x169   :  { %3435 = vmatprep.subr.bf16.mxu0 %v10073_v53  ;;  %3607 = vmatprep.subr.bf16.mxu1 %v10075_v25  ;;  %v10122_v53 = vcombine.low %v615_v7, %v619_v9  ;;  %v631_v25 = vld [vmem:[#allocation2 + $0xf48] sm:$0xff]  ;;  %v10131_v26 = vcombine.high %v623_v16, %v627_v20  ;;  %v160_v7 = vld [vmem:[#allocation2 + $0x90] sm:$0xff]  ;;  %v161_v9 = vld [vmem:[#allocation2 + $0x98] sm:$0xff] }
 0x16c   :  { %3436 = vmatpush1.bf16.msra.mxu0 %v10072_v28  ;;  %3608 = vmatpush1.bf16.msra.mxu1 %v10074_v31  ;;  %v635_v28 = vld [vmem:[#allocation2 + $0xf68] sm:$0xff]  ;;  %v10128_v31 = vcombine.low %v622_v13, %v626_v14  ;;  %v168_v13 = vld [vmem:[#allocation2 + $0xd0] sm:$0xff] }
 0x16d   :  { %3437 = vmatprep.subr.bf16.mxu0 %v10081_v32  ;;  %3609 = vmatprep.subr.bf16.mxu1 %v10083_v36  ;;  %v10130_v32 = vcombine.low %v623_v16, %v627_v20  ;;  %v639_v36 = vld [vmem:[#allocation2 + $0xf88] sm:$0xff]  ;;  %v10139_v37 = vcombine.high %v631_v25, %v635_v28  ;;  %v172_v14 = vld [vmem:[#allocation2 + $0xf0] sm:$0xff]  ;;  %v169_v16 = vld [vmem:[#allocation2 + $0xd8] sm:$0xff] }
 0x16e   :  { %v173_v20 = vld [vmem:[#allocation2 + $0xf8] sm:$0xff] }
 0x170   :  { %3438 = vmatpush1.bf16.msra.mxu0 %v10080_v38  ;;  %3610 = vmatpush1.bf16.msra.mxu1 %v10082_v17  ;;  %v643_v38 = vld [vmem:[#allocation2 + $0xfa8] sm:$0xff]  ;;  %v10136_v17 = vcombine.low %v630_v22, %v634_v23  ;;  %v176_v22 = vld [vmem:[#allocation2 + $0x110] sm:$0xff] }
 0x171   :  { %3439 = vmatprep.subr.bf16.mxu0 %v10089_v18  ;;  %3611 = vmatprep.subr.bf16.mxu1 %v10091_v44  ;;  %v10138_v18 = vcombine.low %v631_v25, %v635_v28  ;;  %v647_v44 = vld [vmem:[#allocation2 + $0xfc8] sm:$0xff]  ;;  %v10147_v47 = vcombine.high %v639_v36, %v643_v38  ;;  %v180_v23 = vld [vmem:[#allocation2 + $0x130] sm:$0xff]  ;;  %v177_v25 = vld [vmem:[#allocation2 + $0x118] sm:$0xff] }
 0x172   :  { %v181_v28 = vld [vmem:[#allocation2 + $0x138] sm:$0xff] }
 0x174   :  { %3440 = vmatpush1.bf16.msra.mxu0 %v10088_v48  ;;  %3612 = vmatpush1.bf16.msra.mxu1 %v10090_v49  ;;  %v651_v48 = vld [vmem:[#allocation2 + $0xfe8] sm:$0xff]  ;;  %v10144_v49 = vcombine.low %v638_v34, %v642_v35  ;;  %v184_v34 = vld [vmem:[#allocation2 + $0x150] sm:$0xff]  ;;  %v185_v35 = vld [vmem:[#allocation2 + $0x158] sm:$0xff] }
 0x175   :  { %3441 = vmatprep.subr.bf16.mxu0 %v10097_v50  ;;  %3613 = vmatprep.subr.bf16.mxu1 %v10099_v56  ;;  %v10146_v50 = vcombine.low %v639_v36, %v643_v38  ;;  %v145_v56 = vld [vmem:[#allocation2 + $0x18] sm:$0xff]  ;;  %v10155_v27 = vcombine.high %v647_v44, %v651_v48  ;;  %v9687_v36 = vcombine.high %v177_v25, %v181_v28 }
 0x176   :  { %v9684_v38 = vcombine.low %v176_v22, %v180_v23 }
 0x178   :  { %3442 = vmatpush1.bf16.msra.mxu0 %v10096_v29  ;;  %3614 = vmatpush1.bf16.msra.mxu1 %v10098_v59  ;;  %v149_v29 = vld [vmem:[#allocation2 + $0x38] sm:$0xff]  ;;  %v10152_v59 = vcombine.low %v646_v41, %v650_v42  ;;  %v196_v41 = vld [vmem:[#allocation2 + $0x1b0] sm:$0xff] }
 0x179   :  { %3443 = vmatprep.subr.bf16.mxu0 %v10105_v60  ;;  %3615 = vmatprep.subr.bf16.mxu1 %v10107_v0  ;;  %v10154_v60 = vcombine.low %v647_v44, %v651_v48  ;;  %v153_v0 = vld [vmem:[#allocation2 + $0x58] sm:$0xff]  ;;  %v9655_v1 = vcombine.high %v145_v56, %v149_v29  ;;  %v9654_v5 = vcombine.low %v145_v56, %v149_v29 }
 0x17a   :  { %v193_v42 = vld [vmem:[#allocation2 + $0x198] sm:$0xff] }
 0x17c   :  { %3444 = vmatpush1.bf16.msra.mxu0 %v10104_v2  ;;  %3616 = vmatpush1.bf16.msra.mxu1 %v10106_v3  ;;  %v157_v2 = vld [vmem:[#allocation2 + $0x78] sm:$0xff]  ;;  %v12607_v3 = vcombine.low %v12586_v43, %v12591_v45 }
 0x17d   :  { %3445 = vmatprep.subr.bf16.mxu0 %v10113_v4  ;;  %3617 = vmatprep.subr.bf16.mxu1 %v10115_v8  ;;  %v9652_v4 = vcombine.low %v144_v52, %v148_v55  ;;  %v164_v8 = vld [vmem:[#allocation2 + $0xb0] sm:$0xff]  ;;  %v9662_v43 = vcombine.low %v153_v0, %v157_v2  ;;  %v201_v55 = vld [vmem:[#allocation2 + $0x1d8] sm:$0xff] }
 0x17e   :  { %v9669_v45 = vcombine.high %v160_v7, %v164_v8  ;;  %v204_v52 = vld [vmem:[#allocation2 + $0x1f0] sm:$0xff] }
 0x180   :  { %3446 = vmatpush1.bf16.msra.mxu0 %v10112_v10  ;;  %3618 = vmatpush1.bf16.msra.mxu1 %v10114_v11  ;;  %v9663_v10 = vcombine.high %v153_v0, %v157_v2  ;;  %v165_v11 = vld [vmem:[#allocation2 + $0xb8] sm:$0xff] }
 0x181   :  { %3447 = vmatprep.subr.bf16.mxu0 %v10121_v12  ;;  %3619 = vmatprep.subr.bf16.mxu1 %v10123_v19  ;;  %v9660_v12 = vcombine.low %v152_v62, %v156_v63  ;;  %v9671_v19 = vcombine.high %v161_v9, %v165_v11  ;;  %v212_v62 = vld [vmem:[#allocation2 + $0x230] sm:$0xff]  ;;  %v209_v63 = vld [vmem:[#allocation2 + $0x218] sm:$0xff] }
 0x184   :  { %3448 = vmatpush1.bf16.msra.mxu0 %v10120_v21  ;;  %3620 = vmatpush1.bf16.msra.mxu1 %v10122_v53  ;;  %v9668_v21 = vcombine.low %v160_v7, %v164_v8  ;;  %v9670_v53 = vcombine.low %v161_v9, %v165_v11  ;;  %v220_v7 = vld [vmem:[#allocation2 + $0x270] sm:$0xff]  ;;  %v217_v8 = vld [vmem:[#allocation2 + $0x258] sm:$0xff] }
 0x185   :  { %3449 = vmatprep.subr.bf16.mxu0 %v10129_v54  ;;  %3621 = vmatprep.subr.bf16.mxu1 %v10131_v26  ;;  %v9677_v54 = vcombine.high %v168_v13, %v172_v14  ;;  %v9679_v26 = vcombine.high %v169_v16, %v173_v20 }
 0x188   :  { %3450 = vmatpush1.bf16.msra.mxu0 %v10128_v31  ;;  %3622 = vmatpush1.bf16.msra.mxu1 %v10130_v32  ;;  %v9676_v31 = vcombine.low %v168_v13, %v172_v14  ;;  %v9678_v32 = vcombine.low %v169_v16, %v173_v20  ;;  %v228_v13 = vld [vmem:[#allocation2 + $0x2b0] sm:$0xff]  ;;  %v225_v14 = vld [vmem:[#allocation2 + $0x298] sm:$0xff] }
 0x189   :  { %3451 = vmatprep.subr.bf16.mxu0 %v10137_v33  ;;  %3623 = vmatprep.subr.bf16.mxu1 %v10139_v37  ;;  %v9685_v33 = vcombine.high %v176_v22, %v180_v23  ;;  %v189_v37 = vld [vmem:[#allocation2 + $0x178] sm:$0xff]  ;;  %v236_v22 = vld [vmem:[#allocation2 + $0x2f0] sm:$0xff] }
 0x18a   :  { %v9695_v44 = vcombine.high %v185_v35, %v189_v37  ;;  %v233_v23 = vld [vmem:[#allocation2 + $0x2d8] sm:$0xff] }
 0x18c   :  { %3452 = vmatpush1.bf16.msra.mxu0 %v10136_v17  ;;  %3624 = vmatpush1.bf16.msra.mxu1 %v10138_v18  ;;  %v9686_v17 = vcombine.low %v177_v25, %v181_v28 }
 0x18d   :  { %3453 = vmatprep.subr.bf16.mxu0 %v10145_v40  ;;  %3625 = vmatprep.subr.bf16.mxu1 %v10147_v47  ;;  %v192_v40 = vld [vmem:[#allocation2 + $0x190] sm:$0xff]  ;;  %v197_v47 = vld [vmem:[#allocation2 + $0x1b8] sm:$0xff] }
 0x18e   :  { %v9703_v56 = vcombine.high %v193_v42, %v197_v47  ;;  %v9700_v29 = vcombine.low %v192_v40, %v196_v41 }
 0x190   :  { %3454 = vmatpush1.bf16.msra.mxu0 %v10144_v49  ;;  %3626 = vmatpush1.bf16.msra.mxu1 %v10146_v50  ;;  %v9694_v49 = vcombine.low %v185_v35, %v189_v37  ;;  %v9701_v50 = vcombine.high %v192_v40, %v196_v41  ;;  %v252_v40 = vld [vmem:[#allocation2 + $0x370] sm:$0xff]  ;;  %v249_v41 = vld [vmem:[#allocation2 + $0x358] sm:$0xff] }
 0x191   :  { %3455 = vmatprep.subr.bf16.mxu0 %v10153_v51  ;;  %3627 = vmatprep.subr.bf16.mxu1 %v10155_v27  ;;  %v200_v51 = vld [vmem:[#allocation2 + $0x1d0] sm:$0xff]  ;;  %v205_v27 = vld [vmem:[#allocation2 + $0x1f8] sm:$0xff] }
 0x192   :  { %v9711_v0 = vcombine.high %v201_v55, %v205_v27  ;;  %v9708_v2 = vcombine.low %v200_v51, %v204_v52 }
 0x194   :  { %3456 = vmatpush1.bf16.msra.mxu0 %v10152_v59  ;;  %3628 = vmatpush1.bf16.msra.mxu1 %v10154_v60  ;;  %v9702_v59 = vcombine.low %v193_v42, %v197_v47  ;;  %v9709_v60 = vcombine.high %v200_v51, %v204_v52  ;;  %v260_v51 = vld [vmem:[#allocation2 + $0x3b0] sm:$0xff]  ;;  %v257_v52 = vld [vmem:[#allocation2 + $0x398] sm:$0xff] }
 0x195   :  { %3640 = vmatprep.subr.bf16.mxu0 %v9653_v61  ;;  %3812 = vmatprep.subr.bf16.mxu1 %v9655_v1  ;;  %v208_v61 = vld [vmem:[#allocation2 + $0x210] sm:$0xff]  ;;  %v213_v1 = vld [vmem:[#allocation2 + $0x238] sm:$0xff] }
 0x196   :  { %v9719_v9 = vcombine.high %v209_v63, %v213_v1  ;;  %v9716_v11 = vcombine.low %v208_v61, %v212_v62 }
 0x197   :  { %3458 = vmatmul.mubr.bf16.vlgmr.msra.gmra.mrb[0].mxu0 %v12607_v3  ;;  %3630 = vmatmul.mubr.bf16.vlgmr.msra.gmra.mrb[0].mxu1 %v12607_v3 }
 0x198   :  { %3641 = vmatpush1.bf16.msra.mxu0 %v9652_v4  ;;  %3813 = vmatpush1.bf16.msra.mxu1 %v9654_v5  ;;  %v9710_v4 = vcombine.low %v201_v55, %v205_v27  ;;  %v9717_v5 = vcombine.high %v208_v61, %v212_v62  ;;  %v268_v61 = vld [vmem:[#allocation2 + $0x3f0] sm:$0xff]  ;;  %v265_v62 = vld [vmem:[#allocation2 + $0x3d8] sm:$0xff] }
 0x199   :  { %3642 = vmatprep.subr.bf16.mxu0 %v9661_v6  ;;  %3814 = vmatprep.subr.bf16.mxu1 %v9663_v10  ;;  %v216_v6 = vld [vmem:[#allocation2 + $0x250] sm:$0xff]  ;;  %v221_v10 = vld [vmem:[#allocation2 + $0x278] sm:$0xff] }
 0x19a   :  { %3672 = vmatprep.mubr.bf16.mxu0 %v12535_v58  ;;  %3844 = vmatprep.mubr.bf16.mxu1 %v12535_v58  ;;  %v188_v58 = vld [vmem:[#allocation2 + $0x170] sm:$0xff]  ;;  %v9727_v16 = vcombine.high %v217_v8, %v221_v10  ;;  %v9724_v20 = vcombine.low %v216_v6, %v220_v7 }
 0x19b   :  { %v9693_v18 = vcombine.high %v184_v34, %v188_v58  ;;  %v9692_v48 = vcombine.low %v184_v34, %v188_v58  ;;  %v244_v34 = vld [vmem:[#allocation2 + $0x330] sm:$0xff]  ;;  %v241_v58 = vld [vmem:[#allocation2 + $0x318] sm:$0xff] }
 0x19c   :  { %3643 = vmatpush1.bf16.msra.mxu0 %v9660_v12  ;;  %3815 = vmatpush1.bf16.msra.mxu1 %v9662_v43  ;;  %v9718_v12 = vcombine.low %v209_v63, %v213_v1  ;;  %v9725_v43 = vcombine.high %v216_v6, %v220_v7  ;;  %v276_v6 = vld [vmem:[#allocation2 + $0x430] sm:$0xff]  ;;  %v273_v7 = vld [vmem:[#allocation2 + $0x418] sm:$0xff] }
 0x19d   :  { %3644 = vmatprep.subr.bf16.mxu0 %v9669_v45  ;;  %3816 = vmatprep.subr.bf16.mxu1 %v9671_v19  ;;  %v224_v45 = vld [vmem:[#allocation2 + $0x290] sm:$0xff]  ;;  %v229_v19 = vld [vmem:[#allocation2 + $0x2b8] sm:$0xff] }
 0x19e   :  { %v9735_v25 = vcombine.high %v225_v14, %v229_v19  ;;  %v9732_v28 = vcombine.low %v224_v45, %v228_v13 }
 0x1a0   :  { %3645 = vmatpush1.bf16.msra.mxu0 %v9668_v21  ;;  %3817 = vmatpush1.bf16.msra.mxu1 %v9670_v53  ;;  %v9726_v21 = vcombine.low %v217_v8, %v221_v10  ;;  %v9733_v53 = vcombine.high %v224_v45, %v228_v13  ;;  %v284_v45 = vld [vmem:[#allocation2 + $0x470] sm:$0xff]  ;;  %v281_v13 = vld [vmem:[#allocation2 + $0x458] sm:$0xff] }
 0x1a1   :  { %3646 = vmatprep.subr.bf16.mxu0 %v9677_v54  ;;  %3818 = vmatprep.subr.bf16.mxu1 %v9679_v26  ;;  %v232_v54 = vld [vmem:[#allocation2 + $0x2d0] sm:$0xff]  ;;  %v237_v26 = vld [vmem:[#allocation2 + $0x2f8] sm:$0xff] }
 0x1a2   :  { %v9743_v35 = vcombine.high %v233_v23, %v237_v26  ;;  %v9740_v37 = vcombine.low %v232_v54, %v236_v22 }
 0x1a4   :  { %3647 = vmatpush1.bf16.msra.mxu0 %v9676_v31  ;;  %3819 = vmatpush1.bf16.msra.mxu1 %v9678_v32  ;;  %v9734_v31 = vcombine.low %v225_v14, %v229_v19  ;;  %v9741_v32 = vcombine.high %v232_v54, %v236_v22  ;;  %v292_v54 = vld [vmem:[#allocation2 + $0x4b0] sm:$0xff]  ;;  %v289_v22 = vld [vmem:[#allocation2 + $0x498] sm:$0xff] }
 0x1a5   :  { %3648 = vmatprep.subr.bf16.mxu0 %v9685_v33  ;;  %3820 = vmatprep.subr.bf16.mxu1 %v9687_v36  ;;  %v240_v33 = vld [vmem:[#allocation2 + $0x310] sm:$0xff]  ;;  %v245_v36 = vld [vmem:[#allocation2 + $0x338] sm:$0xff] }
 0x1a6   :  { %v9751_v42 = vcombine.high %v241_v58, %v245_v36  ;;  %v9748_v47 = vcombine.low %v240_v33, %v244_v34 }
 0x1a8   :  { %3649 = vmatpush1.bf16.msra.mxu0 %v9684_v38  ;;  %3821 = vmatpush1.bf16.msra.mxu1 %v9686_v17  ;;  %v9742_v38 = vcombine.low %v233_v23, %v237_v26  ;;  %v9749_v17 = vcombine.high %v240_v33, %v244_v34  ;;  %v300_v33 = vld [vmem:[#allocation2 + $0x4f0] sm:$0xff]  ;;  %v297_v34 = vld [vmem:[#allocation2 + $0x4d8] sm:$0xff] }
 0x1a9   :  { %3650 = vmatprep.subr.bf16.mxu0 %v9693_v18  ;;  %3822 = vmatprep.subr.bf16.mxu1 %v9695_v44  ;;  %v248_v18 = vld [vmem:[#allocation2 + $0x350] sm:$0xff]  ;;  %v253_v44 = vld [vmem:[#allocation2 + $0x378] sm:$0xff] }
 0x1aa   :  { %v9759_v55 = vcombine.high %v249_v41, %v253_v44  ;;  %v9756_v27 = vcombine.low %v248_v18, %v252_v40 }
 0x1ac   :  { %3651 = vmatpush1.bf16.msra.mxu0 %v9692_v48  ;;  %3823 = vmatpush1.bf16.msra.mxu1 %v9694_v49  ;;  %v9750_v48 = vcombine.low %v241_v58, %v245_v36  ;;  %v9757_v49 = vcombine.high %v248_v18, %v252_v40  ;;  %v305_v18 = vld [vmem:[#allocation2 + $0x518] sm:$0xff] }
 0x1ad   :  { %3652 = vmatprep.subr.bf16.mxu0 %v9701_v50  ;;  %3824 = vmatprep.subr.bf16.mxu1 %v9703_v56  ;;  %v256_v50 = vld [vmem:[#allocation2 + $0x390] sm:$0xff]  ;;  %v261_v56 = vld [vmem:[#allocation2 + $0x3b8] sm:$0xff] }
 0x1ae   :  { %v9767_v63 = vcombine.high %v257_v52, %v261_v56  ;;  %v9764_v1 = vcombine.low %v256_v50, %v260_v51 }
 0x1b0   :  { %3653 = vmatpush1.bf16.msra.mxu0 %v9700_v29  ;;  %3825 = vmatpush1.bf16.msra.mxu1 %v9702_v59  ;;  %v9758_v29 = vcombine.low %v249_v41, %v253_v44  ;;  %v9765_v59 = vcombine.high %v256_v50, %v260_v51  ;;  %v309_v41 = vld [vmem:[#allocation2 + $0x538] sm:$0xff] }
 0x1b1   :  { %3654 = vmatprep.subr.bf16.mxu0 %v9709_v60  ;;  %3826 = vmatprep.subr.bf16.mxu1 %v9711_v0  ;;  %v264_v60 = vld [vmem:[#allocation2 + $0x3d0] sm:$0xff]  ;;  %v269_v0 = vld [vmem:[#allocation2 + $0x3f8] sm:$0xff]  ;;  %v9815_v50 = vcombine.high %v305_v18, %v309_v41 }
 0x1b2   :  { %v9775_v8 = vcombine.high %v265_v62, %v269_v0  ;;  %v9772_v10 = vcombine.low %v264_v60, %v268_v61  ;;  %v317_v51 = vld [vmem:[#allocation2 + $0x578] sm:$0xff] }
 0x1b4   :  { %3655 = vmatpush1.bf16.msra.mxu0 %v9708_v2  ;;  %3827 = vmatpush1.bf16.msra.mxu1 %v9710_v4  ;;  %v9766_v2 = vcombine.low %v257_v52, %v261_v56  ;;  %v9773_v4 = vcombine.high %v264_v60, %v268_v61  ;;  %v325_v61 = vld [vmem:[#allocation2 + $0x5b8] sm:$0xff] }
 0x1b5   :  { %3656 = vmatprep.subr.bf16.mxu0 %v9717_v5  ;;  %3828 = vmatprep.subr.bf16.mxu1 %v9719_v9  ;;  %v272_v5 = vld [vmem:[#allocation2 + $0x410] sm:$0xff]  ;;  %v277_v9 = vld [vmem:[#allocation2 + $0x438] sm:$0xff] }
 0x1b6   :  { %v9783_v14 = vcombine.high %v273_v7, %v277_v9  ;;  %v9780_v19 = vcombine.low %v272_v5, %v276_v6 }
 0x1b8   :  { %3657 = vmatpush1.bf16.msra.mxu0 %v9716_v11  ;;  %3829 = vmatpush1.bf16.msra.mxu1 %v9718_v12  ;;  %v9774_v11 = vcombine.low %v265_v62, %v269_v0  ;;  %v9781_v12 = vcombine.high %v272_v5, %v276_v6  ;;  %v329_v5 = vld [vmem:[#allocation2 + $0x5d8] sm:$0xff] }
 0x1b9   :  { %3658 = vmatprep.subr.bf16.mxu0 %v9725_v43  ;;  %3830 = vmatprep.subr.bf16.mxu1 %v9727_v16  ;;  %v280_v43 = vld [vmem:[#allocation2 + $0x450] sm:$0xff]  ;;  %v285_v16 = vld [vmem:[#allocation2 + $0x478] sm:$0xff] }
 0x1ba   :  { %v9791_v23 = vcombine.high %v281_v13, %v285_v16  ;;  %v9788_v26 = vcombine.low %v280_v43, %v284_v45  ;;  %v333_v6 = vld [vmem:[#allocation2 + $0x5f8] sm:$0xff] }
 0x1bc   :  { %3659 = vmatpush1.bf16.msra.mxu0 %v9724_v20  ;;  %3831 = vmatpush1.bf16.msra.mxu1 %v9726_v21  ;;  %v9782_v20 = vcombine.low %v273_v7, %v277_v9  ;;  %v9789_v21 = vcombine.high %v280_v43, %v284_v45  ;;  %v9839_v43 = vcombine.high %v329_v5, %v333_v6  ;;  %v341_v45 = vld [vmem:[#allocation2 + $0x638] sm:$0xff] }
 0x1bd   :  { %3660 = vmatprep.subr.bf16.mxu0 %v9733_v53  ;;  %3832 = vmatprep.subr.bf16.mxu1 %v9735_v25  ;;  %v288_v53 = vld [vmem:[#allocation2 + $0x490] sm:$0xff]  ;;  %v293_v25 = vld [vmem:[#allocation2 + $0x4b8] sm:$0xff] }
 0x1be   :  { %v9799_v58 = vcombine.high %v289_v22, %v293_v25  ;;  %v9796_v36 = vcombine.low %v288_v53, %v292_v54 }
 0x1c0   :  { %3661 = vmatpush1.bf16.msra.mxu0 %v9732_v28  ;;  %3833 = vmatpush1.bf16.msra.mxu1 %v9734_v31  ;;  %v9790_v28 = vcombine.low %v281_v13, %v285_v16  ;;  %v9797_v31 = vcombine.high %v288_v53, %v292_v54  ;;  %v349_v54 = vld [vmem:[#allocation2 + $0x678] sm:$0xff] }
 0x1c1   :  { %3662 = vmatprep.subr.bf16.mxu0 %v9741_v32  ;;  %3834 = vmatprep.subr.bf16.mxu1 %v9743_v35  ;;  %v296_v32 = vld [vmem:[#allocation2 + $0x4d0] sm:$0xff]  ;;  %v301_v35 = vld [vmem:[#allocation2 + $0x4f8] sm:$0xff] }
 0x1c2   :  { %v9807_v40 = vcombine.high %v297_v34, %v301_v35  ;;  %v9806_v44 = vcombine.low %v297_v34, %v301_v35 }
 0x1c4   :  { %3663 = vmatpush1.bf16.msra.mxu0 %v9740_v37  ;;  %3835 = vmatpush1.bf16.msra.mxu1 %v9742_v38  ;;  %v9805_v37 = vcombine.high %v296_v32, %v300_v33  ;;  %v304_v38 = vld [vmem:[#allocation2 + $0x510] sm:$0xff] }
 0x1c5   :  { %3664 = vmatprep.subr.bf16.mxu0 %v9749_v17  ;;  %3836 = vmatprep.subr.bf16.mxu1 %v9751_v42  ;;  %v308_v17 = vld [vmem:[#allocation2 + $0x530] sm:$0xff]  ;;  %v9804_v42 = vcombine.low %v296_v32, %v300_v33  ;;  %v357_v33 = vld [vmem:[#allocation2 + $0x6b8] sm:$0xff] }
 0x1c6   :  { %v9812_v52 = vcombine.low %v304_v38, %v308_v17 }
 0x1c8   :  { %3665 = vmatpush1.bf16.msra.mxu0 %v9748_v47  ;;  %3837 = vmatpush1.bf16.msra.mxu1 %v9750_v48  ;;  %v9813_v47 = vcombine.high %v304_v38, %v308_v17  ;;  %v312_v48 = vld [vmem:[#allocation2 + $0x550] sm:$0xff]  ;;  %v365_v17 = vld [vmem:[#allocation2 + $0x6f8] sm:$0xff] }
 0x1c9   :  { %3666 = vmatprep.subr.bf16.mxu0 %v9757_v49  ;;  %3838 = vmatprep.subr.bf16.mxu1 %v9759_v55  ;;  %v313_v49 = vld [vmem:[#allocation2 + $0x558] sm:$0xff]  ;;  %v9814_v55 = vcombine.low %v305_v18, %v309_v41 }
 0x1ca   :  { %v9823_v60 = vcombine.high %v313_v49, %v317_v51 }
 0x1cc   :  { %3667 = vmatpush1.bf16.msra.mxu0 %v9756_v27  ;;  %3839 = vmatpush1.bf16.msra.mxu1 %v9758_v29  ;;  %v320_v27 = vld [vmem:[#allocation2 + $0x590] sm:$0xff] }
 0x1cd   :  { %3668 = vmatprep.subr.bf16.mxu0 %v9765_v59  ;;  %3840 = vmatprep.subr.bf16.mxu1 %v9767_v63  ;;  %v324_v29 = vld [vmem:[#allocation2 + $0x5b0] sm:$0xff]  ;;  %v321_v59 = vld [vmem:[#allocation2 + $0x598] sm:$0xff]  ;;  %v9822_v63 = vcombine.low %v313_v49, %v317_v51 }
 0x1ce   :  { %v9829_v0 = vcombine.high %v320_v27, %v324_v29  ;;  %v9828_v7 = vcombine.low %v320_v27, %v324_v29  ;;  %v381_v29 = vld [vmem:[#allocation2 + $0x778] sm:$0xff] }
 0x1d0   :  { %3669 = vmatpush1.bf16.msra.mxu0 %v9764_v1  ;;  %3841 = vmatpush1.bf16.msra.mxu1 %v9766_v2  ;;  %v328_v1 = vld [vmem:[#allocation2 + $0x5d0] sm:$0xff] }
 0x1d1   :  { %3670 = vmatprep.subr.bf16.mxu0 %v9773_v4  ;;  %3842 = vmatprep.subr.bf16.mxu1 %v9775_v8  ;;  %v332_v2 = vld [vmem:[#allocation2 + $0x5f0] sm:$0xff]  ;;  %v9831_v4 = vcombine.high %v321_v59, %v325_v61  ;;  %v9830_v8 = vcombine.low %v321_v59, %v325_v61 }
 0x1d2   :  { %v9837_v9 = vcombine.high %v328_v1, %v332_v2  ;;  %v9836_v13 = vcombine.low %v328_v1, %v332_v2  ;;  %v389_v2 = vld [vmem:[#allocation2 + $0x7b8] sm:$0xff] }
 0x1d4   :  { %3671 = vmatpush1.bf16.msra.mxu0 %v9772_v10  ;;  %3843 = vmatpush1.bf16.msra.mxu1 %v9774_v11  ;;  %v336_v10 = vld [vmem:[#allocation2 + $0x610] sm:$0xff] }
 0x1d5   :  { %3683 = vmatprep.subr.bf16.mxu0 %v9781_v12  ;;  %3855 = vmatprep.subr.bf16.mxu1 %v9783_v14  ;;  %v340_v11 = vld [vmem:[#allocation2 + $0x630] sm:$0xff]  ;;  %v337_v12 = vld [vmem:[#allocation2 + $0x618] sm:$0xff]  ;;  %v9838_v14 = vcombine.low %v329_v5, %v333_v6 }
 0x1d6   :  { %v9845_v16 = vcombine.high %v336_v10, %v340_v11  ;;  %v9847_v53 = vcombine.high %v337_v12, %v341_v45 }
 0x1d7   :  { %3673 = vmatmul.mubr.bf16.vlgmr.msra.gmra.mrb[4].mxu0 %v12541_v15  ;;  %3845 = vmatmul.mubr.bf16.vlgmr.msra.gmra.mrb[4].mxu1 %v12541_v15  ;;  %v9798_v15 = vcombine.low %v289_v22, %v293_v25  ;;  %v9844_v22 = vcombine.low %v336_v10, %v340_v11  ;;  %v397_v11 = vld [vmem:[#allocation2 + $0x7f8] sm:$0xff] }
 0x1d8   :  { %3684 = vmatpush1.bf16.msra.mxu0 %v9780_v19  ;;  %3856 = vmatpush1.bf16.msra.mxu1 %v9782_v20  ;;  %v344_v19 = vld [vmem:[#allocation2 + $0x650] sm:$0xff] }
 0x1d9   :  { %3685 = vmatprep.subr.bf16.mxu0 %v9789_v21  ;;  %3857 = vmatprep.subr.bf16.mxu1 %v9791_v23  ;;  %v348_v20 = vld [vmem:[#allocation2 + $0x670] sm:$0xff]  ;;  %v345_v21 = vld [vmem:[#allocation2 + $0x658] sm:$0xff]  ;;  %v9846_v23 = vcombine.low %v337_v12, %v341_v45 }
 0x1da   :  { %3715 = vmatprep.mubr.bf16.mxu0 %v12555_v24  ;;  %3887 = vmatprep.mubr.bf16.mxu1 %v12555_v24  ;;  %v316_v24 = vld [vmem:[#allocation2 + $0x570] sm:$0xff]  ;;  %v9853_v25 = vcombine.high %v344_v19, %v348_v20  ;;  %v9855_v32 = vcombine.high %v345_v21, %v349_v54  ;;  %v9852_v34 = vcombine.low %v344_v19, %v348_v20  ;;  %v405_v20 = vld [vmem:[#allocation2 + $0x838] sm:$0xff] }
 0x1db   :  { %v9821_v56 = vcombine.high %v312_v48, %v316_v24  ;;  %v9820_v62 = vcombine.low %v312_v48, %v316_v24  ;;  %v373_v24 = vld [vmem:[#allocation2 + $0x738] sm:$0xff] }
 0x1dc   :  { %3686 = vmatpush1.bf16.msra.mxu0 %v9788_v26  ;;  %3858 = vmatpush1.bf16.msra.mxu1 %v9790_v28  ;;  %v352_v26 = vld [vmem:[#allocation2 + $0x690] sm:$0xff] }
 0x1dd   :  { %3687 = vmatprep.subr.bf16.mxu0 %v9797_v31  ;;  %3859 = vmatprep.subr.bf16.mxu1 %v9799_v58  ;;  %v356_v28 = vld [vmem:[#allocation2 + $0x6b0] sm:$0xff]  ;;  %v353_v31 = vld [vmem:[#allocation2 + $0x698] sm:$0xff]  ;;  %v9854_v58 = vcombine.low %v345_v21, %v349_v54 }
 0x1de   :  { %v9861_v35 = vcombine.high %v352_v26, %v356_v28  ;;  %v9863_v38 = vcombine.high %v353_v31, %v357_v33  ;;  %v9860_v18 = vcombine.low %v352_v26, %v356_v28  ;;  %v413_v28 = vld [vmem:[#allocation2 + $0x878] sm:$0xff] }
 0x1e0   :  { %3688 = vmatpush1.bf16.msra.mxu0 %v9796_v36  ;;  %3860 = vmatpush1.bf16.msra.mxu1 %v9798_v15  ;;  %v360_v36 = vld [vmem:[#allocation2 + $0x6d0] sm:$0xff] }
 0x1e1   :  { %3689 = vmatprep.subr.bf16.mxu0 %v9805_v37  ;;  %3861 = vmatprep.subr.bf16.mxu1 %v9807_v40  ;;  %v364_v15 = vld [vmem:[#allocation2 + $0x6f0] sm:$0xff]  ;;  %v361_v37 = vld [vmem:[#allocation2 + $0x6d8] sm:$0xff]  ;;  %v9862_v40 = vcombine.low %v353_v31, %v357_v33 }
 0x1e2   :  { %v9869_v41 = vcombine.high %v360_v36, %v364_v15  ;;  %v9871_v48 = vcombine.high %v361_v37, %v365_v17  ;;  %v9868_v49 = vcombine.low %v360_v36, %v364_v15  ;;  %v417_v36 = vld [vmem:[#allocation2 + $0x898] sm:$0xff] }
 0x1e3   :  { %v421_v15 = vld [vmem:[#allocation2 + $0x8b8] sm:$0xff] }
 0x1e4   :  { %3690 = vmatpush1.bf16.msra.mxu0 %v9804_v42  ;;  %3862 = vmatpush1.bf16.msra.mxu1 %v9806_v44  ;;  %v368_v42 = vld [vmem:[#allocation2 + $0x710] sm:$0xff] }
 0x1e5   :  { %3691 = vmatprep.subr.bf16.mxu0 %v9813_v47  ;;  %3863 = vmatprep.subr.bf16.mxu1 %v9815_v50  ;;  %v372_v44 = vld [vmem:[#allocation2 + $0x730] sm:$0xff]  ;;  %v369_v47 = vld [vmem:[#allocation2 + $0x718] sm:$0xff]  ;;  %v9870_v50 = vcombine.low %v361_v37, %v365_v17 }
 0x1e6   :  { %v9877_v51 = vcombine.high %v368_v42, %v372_v44  ;;  %v9879_v27 = vcombine.high %v369_v47, %v373_v24  ;;  %v9876_v59 = vcombine.low %v368_v42, %v372_v44  ;;  %v425_v42 = vld [vmem:[#allocation2 + $0x8d8] sm:$0xff] }
 0x1e7   :  { %v429_v44 = vld [vmem:[#allocation2 + $0x8f8] sm:$0xff] }
 0x1e8   :  { %3692 = vmatpush1.bf16.msra.mxu0 %v9812_v52  ;;  %3864 = vmatpush1.bf16.msra.mxu1 %v9814_v55  ;;  %v376_v52 = vld [vmem:[#allocation2 + $0x750] sm:$0xff] }
 0x1e9   :  { %3693 = vmatprep.subr.bf16.mxu0 %v9821_v56  ;;  %3865 = vmatprep.subr.bf16.mxu1 %v9823_v60  ;;  %v380_v55 = vld [vmem:[#allocation2 + $0x770] sm:$0xff]  ;;  %v377_v56 = vld [vmem:[#allocation2 + $0x758] sm:$0xff]  ;;  %v9878_v60 = vcombine.low %v369_v47, %v373_v24 }
 0x1ea   :  { %v9885_v61 = vcombine.high %v376_v52, %v380_v55  ;;  %v9887_v1 = vcombine.high %v377_v56, %v381_v29  ;;  %v9886_v5 = vcombine.low %v377_v56, %v381_v29  ;;  %v432_v24 = vld [vmem:[#allocation2 + $0x910] sm:$0xff]  ;;  %v9934_v56 = vcombine.low %v425_v42, %v429_v44 }
 0x1eb   :  { %v440_v29 = vld [vmem:[#allocation2 + $0x950] sm:$0xff] }
 0x1ec   :  { %3694 = vmatpush1.bf16.msra.mxu0 %v9820_v62  ;;  %3866 = vmatpush1.bf16.msra.mxu1 %v9822_v63  ;;  %v384_v62 = vld [vmem:[#allocation2 + $0x790] sm:$0xff] }
 0x1ed   :  { %3695 = vmatprep.subr.bf16.mxu0 %v9829_v0  ;;  %3867 = vmatprep.subr.bf16.mxu1 %v9831_v4  ;;  %v388_v63 = vld [vmem:[#allocation2 + $0x7b0] sm:$0xff]  ;;  %v385_v0 = vld [vmem:[#allocation2 + $0x798] sm:$0xff]  ;;  %v9884_v4 = vcombine.low %v376_v52, %v380_v55 }
 0x1ee   :  { %v9893_v6 = vcombine.high %v384_v62, %v388_v63  ;;  %v9895_v10 = vcombine.high %v385_v0, %v389_v2  ;;  %v9892_v12 = vcombine.low %v384_v62, %v388_v63  ;;  %v437_v52 = vld [vmem:[#allocation2 + $0x938] sm:$0xff] }
 0x1f0   :  { %3696 = vmatpush1.bf16.msra.mxu0 %v9828_v7  ;;  %3868 = vmatpush1.bf16.msra.mxu1 %v9830_v8  ;;  %v392_v7 = vld [vmem:[#allocation2 + $0x7d0] sm:$0xff] }
 0x1f1   :  { %3697 = vmatprep.subr.bf16.mxu0 %v9837_v9  ;;  %3869 = vmatprep.subr.bf16.mxu1 %v9839_v43  ;;  %v396_v8 = vld [vmem:[#allocation2 + $0x7f0] sm:$0xff]  ;;  %v393_v9 = vld [vmem:[#allocation2 + $0x7d8] sm:$0xff]  ;;  %v9894_v43 = vcombine.low %v385_v0, %v389_v2 }
 0x1f2   :  { %v9901_v45 = vcombine.high %v392_v7, %v396_v8  ;;  %v9903_v19 = vcombine.high %v393_v9, %v397_v11  ;;  %v9900_v21 = vcombine.low %v392_v7, %v396_v8  ;;  %v452_v2 = vld [vmem:[#allocation2 + $0x9b0] sm:$0xff] }
 0x1f4   :  { %3698 = vmatpush1.bf16.msra.mxu0 %v9836_v13  ;;  %3870 = vmatpush1.bf16.msra.mxu1 %v9838_v14  ;;  %v400_v13 = vld [vmem:[#allocation2 + $0x810] sm:$0xff] }
 0x1f5   :  { %3699 = vmatprep.subr.bf16.mxu0 %v9845_v16  ;;  %3871 = vmatprep.subr.bf16.mxu1 %v9847_v53  ;;  %v404_v14 = vld [vmem:[#allocation2 + $0x830] sm:$0xff]  ;;  %v401_v16 = vld [vmem:[#allocation2 + $0x818] sm:$0xff]  ;;  %v9902_v53 = vcombine.low %v393_v9, %v397_v11 }
 0x1f6   :  { %v9909_v54 = vcombine.high %v400_v13, %v404_v14  ;;  %v9911_v26 = vcombine.high %v401_v16, %v405_v20  ;;  %v9908_v31 = vcombine.low %v400_v13, %v404_v14  ;;  %v460_v11 = vld [vmem:[#allocation2 + $0x9f0] sm:$0xff] }
 0x1f8   :  { %3700 = vmatpush1.bf16.msra.mxu0 %v9844_v22  ;;  %3872 = vmatpush1.bf16.msra.mxu1 %v9846_v23  ;;  %v408_v22 = vld [vmem:[#allocation2 + $0x850] sm:$0xff] }
 0x1f9   :  { %3701 = vmatprep.subr.bf16.mxu0 %v9853_v25  ;;  %3873 = vmatprep.subr.bf16.mxu1 %v9855_v32  ;;  %v412_v23 = vld [vmem:[#allocation2 + $0x870] sm:$0xff]  ;;  %v409_v25 = vld [vmem:[#allocation2 + $0x858] sm:$0xff]  ;;  %v9910_v32 = vcombine.low %v401_v16, %v405_v20 }
 0x1fa   :  { %v9917_v33 = vcombine.high %v408_v22, %v412_v23  ;;  %v9916_v37 = vcombine.low %v408_v22, %v412_v23  ;;  %v468_v20 = vld [vmem:[#allocation2 + $0xa30] sm:$0xff] }
 0x1fc   :  { %3702 = vmatpush1.bf16.msra.mxu0 %v9852_v34  ;;  %3874 = vmatpush1.bf16.msra.mxu1 %v9854_v58  ;;  %v9919_v34 = vcombine.high %v409_v25, %v413_v28  ;;  %v416_v58 = vld [vmem:[#allocation2 + $0x890] sm:$0xff] }
 0x1fd   :  { %3703 = vmatprep.subr.bf16.mxu0 %v9861_v35  ;;  %3875 = vmatprep.subr.bf16.mxu1 %v9863_v38  ;;  %v420_v35 = vld [vmem:[#allocation2 + $0x8b0] sm:$0xff]  ;;  %v9918_v38 = vcombine.low %v409_v25, %v413_v28 }
 0x1fe   :  { %v9925_v17 = vcombine.high %v416_v58, %v420_v35  ;;  %v9924_v47 = vcombine.low %v416_v58, %v420_v35  ;;  %v476_v28 = vld [vmem:[#allocation2 + $0xa70] sm:$0xff] }
 0x200   :  { %3704 = vmatpush1.bf16.msra.mxu0 %v9860_v18  ;;  %3876 = vmatpush1.bf16.msra.mxu1 %v9862_v40  ;;  %v9927_v18 = vcombine.high %v417_v36, %v421_v15  ;;  %v424_v40 = vld [vmem:[#allocation2 + $0x8d0] sm:$0xff] }
 0x201   :  { %3705 = vmatprep.subr.bf16.mxu0 %v9869_v41  ;;  %3877 = vmatprep.subr.bf16.mxu1 %v9871_v48  ;;  %v428_v41 = vld [vmem:[#allocation2 + $0x8f0] sm:$0xff] }
 0x202   :  { %v9933_v48 = vcombine.high %v424_v40, %v428_v41  ;;  %v9932_v55 = vcombine.low %v424_v40, %v428_v41 }
 0x204   :  { %3706 = vmatpush1.bf16.msra.mxu0 %v9868_v49  ;;  %3878 = vmatpush1.bf16.msra.mxu1 %v9870_v50  ;;  %v436_v49 = vld [vmem:[#allocation2 + $0x930] sm:$0xff]  ;;  %v433_v50 = vld [vmem:[#allocation2 + $0x918] sm:$0xff] }
 0x205   :  { %3707 = vmatprep.subr.bf16.mxu0 %v9877_v51  ;;  %3879 = vmatprep.subr.bf16.mxu1 %v9879_v27  ;;  %v9935_v51 = vcombine.high %v425_v42, %v429_v44  ;;  %v9941_v27 = vcombine.high %v432_v24, %v436_v49  ;;  %v9940_v62 = vcombine.low %v432_v24, %v436_v49  ;;  %v488_v42 = vld [vmem:[#allocation2 + $0xad0] sm:$0xff] }
 0x206   :  { %v9942_v63 = vcombine.low %v433_v50, %v437_v52  ;;  %v492_v44 = vld [vmem:[#allocation2 + $0xaf0] sm:$0xff] }
 0x208   :  { %3708 = vmatpush1.bf16.msra.mxu0 %v9876_v59  ;;  %3880 = vmatpush1.bf16.msra.mxu1 %v9878_v60  ;;  %v441_v59 = vld [vmem:[#allocation2 + $0x958] sm:$0xff]  ;;  %v9943_v60 = vcombine.high %v433_v50, %v437_v52  ;;  %v9997_v50 = vcombine.high %v488_v42, %v492_v44  ;;  %v500_v52 = vld [vmem:[#allocation2 + $0xb30] sm:$0xff] }
 0x209   :  { %3709 = vmatprep.subr.bf16.mxu0 %v9885_v61  ;;  %3881 = vmatprep.subr.bf16.mxu1 %v9887_v1  ;;  %v445_v61 = vld [vmem:[#allocation2 + $0x978] sm:$0xff]  ;;  %v448_v1 = vld [vmem:[#allocation2 + $0x990] sm:$0xff] }
 0x20a   :  { %v9950_v8 = vcombine.low %v441_v59, %v445_v61  ;;  %v9957_v9 = vcombine.high %v448_v1, %v452_v2  ;;  %v9956_v13 = vcombine.low %v448_v1, %v452_v2 }
 0x20c   :  { %3710 = vmatpush1.bf16.msra.mxu0 %v9884_v4  ;;  %3882 = vmatpush1.bf16.msra.mxu1 %v9886_v5  ;;  %v449_v4 = vld [vmem:[#allocation2 + $0x998] sm:$0xff]  ;;  %v9951_v5 = vcombine.high %v441_v59, %v445_v61  ;;  %v508_v61 = vld [vmem:[#allocation2 + $0xb70] sm:$0xff] }
 0x20d   :  { %3711 = vmatprep.subr.bf16.mxu0 %v9893_v6  ;;  %3883 = vmatprep.subr.bf16.mxu1 %v9895_v10  ;;  %v453_v6 = vld [vmem:[#allocation2 + $0x9b8] sm:$0xff]  ;;  %v456_v10 = vld [vmem:[#allocation2 + $0x9d0] sm:$0xff] }
 0x20e   :  { %v9958_v14 = vcombine.low %v449_v4, %v453_v6  ;;  %v9965_v16 = vcombine.high %v456_v10, %v460_v11  ;;  %v9964_v22 = vcombine.low %v456_v10, %v460_v11 }
 0x210   :  { %3712 = vmatpush1.bf16.msra.mxu0 %v9892_v12  ;;  %3884 = vmatpush1.bf16.msra.mxu1 %v9894_v43  ;;  %v457_v12 = vld [vmem:[#allocation2 + $0x9d8] sm:$0xff]  ;;  %v9959_v43 = vcombine.high %v449_v4, %v453_v6  ;;  %v516_v6 = vld [vmem:[#allocation2 + $0xbb0] sm:$0xff] }
 0x211   :  { %3713 = vmatprep.subr.bf16.mxu0 %v9901_v45  ;;  %3885 = vmatprep.subr.bf16.mxu1 %v9903_v19  ;;  %v461_v45 = vld [vmem:[#allocation2 + $0x9f8] sm:$0xff]  ;;  %v464_v19 = vld [vmem:[#allocation2 + $0xa10] sm:$0xff] }
 0x212   :  { %v9966_v23 = vcombine.low %v457_v12, %v461_v45  ;;  %v9973_v25 = vcombine.high %v464_v19, %v468_v20 }
 0x214   :  { %3714 = vmatpush1.bf16.msra.mxu0 %v9900_v21  ;;  %3886 = vmatpush1.bf16.msra.mxu1 %v9902_v53  ;;  %v465_v21 = vld [vmem:[#allocation2 + $0xa18] sm:$0xff]  ;;  %v9967_v53 = vcombine.high %v457_v12, %v461_v45  ;;  %v524_v45 = vld [vmem:[#allocation2 + $0xbf0] sm:$0xff] }
 0x215   :  { %3726 = vmatprep.subr.bf16.mxu0 %v9909_v54  ;;  %3898 = vmatprep.subr.bf16.mxu1 %v9911_v26  ;;  %v469_v54 = vld [vmem:[#allocation2 + $0xa38] sm:$0xff]  ;;  %v472_v26 = vld [vmem:[#allocation2 + $0xa50] sm:$0xff] }
 0x216   :  { %v9974_v58 = vcombine.low %v465_v21, %v469_v54  ;;  %v9981_v35 = vcombine.high %v472_v26, %v476_v28 }
 0x217   :  { %3716 = vmatmul.mubr.bf16.vlgmr.msra.gmra.mrb[4].mxu0 %v12573_v30  ;;  %3888 = vmatmul.mubr.bf16.vlgmr.msra.gmra.mrb[4].mxu1 %v12573_v30  ;;  %v9926_v30 = vcombine.low %v417_v36, %v421_v15  ;;  %v480_v36 = vld [vmem:[#allocation2 + $0xa90] sm:$0xff] }
 0x218   :  { %3727 = vmatpush1.bf16.msra.mxu0 %v9908_v31  ;;  %3899 = vmatpush1.bf16.msra.mxu1 %v9910_v32  ;;  %v473_v31 = vld [vmem:[#allocation2 + $0xa58] sm:$0xff]  ;;  %v9975_v32 = vcombine.high %v465_v21, %v469_v54  ;;  %v484_v15 = vld [vmem:[#allocation2 + $0xab0] sm:$0xff] }
 0x219   :  { %3728 = vmatprep.subr.bf16.mxu0 %v9917_v33  ;;  %3900 = vmatprep.subr.bf16.mxu1 %v9919_v34  ;;  %v477_v33 = vld [vmem:[#allocation2 + $0xa78] sm:$0xff]  ;;  %v9972_v34 = vcombine.low %v464_v19, %v468_v20  ;;  %v9989_v41 = vcombine.high %v480_v36, %v484_v15  ;;  %v9988_v24 = vcombine.low %v480_v36, %v484_v15  ;;  %v532_v54 = vld [vmem:[#allocation2 + $0xc30] sm:$0xff] }
 0x21a   :  { %3758 = vmatprep.mubr.bf16.mxu0 %v12577_v39  ;;  %3930 = vmatprep.mubr.bf16.mxu1 %v12577_v39  ;;  %v444_v39 = vld [vmem:[#allocation2 + $0x970] sm:$0xff]  ;;  %v9982_v40 = vcombine.low %v473_v31, %v477_v33 }
 0x21b   :  { %v9949_v0 = vcombine.high %v440_v29, %v444_v39  ;;  %v9948_v7 = vcombine.low %v440_v29, %v444_v39  ;;  %v9996_v29 = vcombine.low %v488_v42, %v492_v44  ;;  %v544_v15 = vld [vmem:[#allocation2 + $0xc90] sm:$0xff] }
 0x21c   :  { %3729 = vmatpush1.bf16.msra.mxu0 %v9916_v37  ;;  %3901 = vmatpush1.bf16.msra.mxu1 %v9918_v38  ;;  %v481_v37 = vld [vmem:[#allocation2 + $0xa98] sm:$0xff]  ;;  %v9983_v38 = vcombine.high %v473_v31, %v477_v33  ;;  %v540_v33 = vld [vmem:[#allocation2 + $0xc70] sm:$0xff] }
 0x21d   :  { %3730 = vmatprep.subr.bf16.mxu0 %v9925_v17  ;;  %3902 = vmatprep.subr.bf16.mxu1 %v9927_v18  ;;  %v485_v17 = vld [vmem:[#allocation2 + $0xab8] sm:$0xff]  ;;  %v9980_v18 = vcombine.low %v472_v26, %v476_v28 }
 0x21e   :  { %v9990_v49 = vcombine.low %v481_v37, %v485_v17 }
 0x220   :  { %3731 = vmatpush1.bf16.msra.mxu0 %v9924_v47  ;;  %3903 = vmatpush1.bf16.msra.mxu1 %v9926_v30  ;;  %v489_v47 = vld [vmem:[#allocation2 + $0xad8] sm:$0xff]  ;;  %v9991_v30 = vcombine.high %v481_v37, %v485_v17  ;;  %v548_v37 = vld [vmem:[#allocation2 + $0xcb0] sm:$0xff] }
 0x221   :  { %3732 = vmatprep.subr.bf16.mxu0 %v9933_v48  ;;  %3904 = vmatprep.subr.bf16.mxu1 %v9935_v51  ;;  %v493_v48 = vld [vmem:[#allocation2 + $0xaf8] sm:$0xff]  ;;  %v496_v51 = vld [vmem:[#allocation2 + $0xb10] sm:$0xff] }
 0x222   :  { %v9998_v39 = vcombine.low %v489_v47, %v493_v48  ;;  %v10005_v59 = vcombine.high %v496_v51, %v500_v52  ;;  %v10004_v1 = vcombine.low %v496_v51, %v500_v52  ;;  %v557_v51 = vld [vmem:[#allocation2 + $0xcf8] sm:$0xff]  ;;  %v10052_v52 = vcombine.low %v544_v15, %v548_v37 }
 0x224   :  { %3733 = vmatpush1.bf16.msra.mxu0 %v9932_v55  ;;  %3905 = vmatpush1.bf16.msra.mxu1 %v9934_v56  ;;  %v497_v55 = vld [vmem:[#allocation2 + $0xb18] sm:$0xff]  ;;  %v9999_v56 = vcombine.high %v489_v47, %v493_v48  ;;  %v10053_v47 = vcombine.high %v544_v15, %v548_v37 }
 0x225   :  { %3734 = vmatprep.subr.bf16.mxu0 %v9941_v27  ;;  %3906 = vmatprep.subr.bf16.mxu1 %v9943_v60  ;;  %v501_v27 = vld [vmem:[#allocation2 + $0xb38] sm:$0xff]  ;;  %v504_v60 = vld [vmem:[#allocation2 + $0xb50] sm:$0xff] }
 0x226   :  { %v10006_v2 = vcombine.low %v497_v55, %v501_v27  ;;  %v10013_v4 = vcombine.high %v504_v60, %v508_v61  ;;  %v10012_v10 = vcombine.low %v504_v60, %v508_v61  ;;  %v565_v60 = vld [vmem:[#allocation2 + $0xd38] sm:$0xff] }
 0x228   :  { %3735 = vmatpush1.bf16.msra.mxu0 %v9940_v62  ;;  %3907 = vmatpush1.bf16.msra.mxu1 %v9942_v63  ;;  %v505_v62 = vld [vmem:[#allocation2 + $0xb58] sm:$0xff]  ;;  %v10007_v63 = vcombine.high %v497_v55, %v501_v27  ;;  %v564_v27 = vld [vmem:[#allocation2 + $0xd30] sm:$0xff] }
 0x229   :  { %3736 = vmatprep.subr.bf16.mxu0 %v9949_v0  ;;  %3908 = vmatprep.subr.bf16.mxu1 %v9951_v5  ;;  %v509_v0 = vld [vmem:[#allocation2 + $0xb78] sm:$0xff]  ;;  %v512_v5 = vld [vmem:[#allocation2 + $0xb90] sm:$0xff] }
 0x22a   :  { %v10014_v11 = vcombine.low %v505_v62, %v509_v0  ;;  %v10021_v12 = vcombine.high %v512_v5, %v516_v6  ;;  %v10020_v19 = vcombine.low %v512_v5, %v516_v6  ;;  %v654_v6 = vld [vmem:[#allocation4] sm:$0xff] }
 0x22c   :  { %3737 = vmatpush1.bf16.msra.mxu0 %v9948_v7  ;;  %3909 = vmatpush1.bf16.msra.mxu1 %v9950_v8  ;;  %v513_v7 = vld [vmem:[#allocation2 + $0xb98] sm:$0xff]  ;;  %v10015_v8 = vcombine.high %v505_v62, %v509_v0 }
 0x22d   :  { %3738 = vmatprep.subr.bf16.mxu0 %v9957_v9  ;;  %3910 = vmatprep.subr.bf16.mxu1 %v9959_v43  ;;  %v517_v9 = vld [vmem:[#allocation2 + $0xbb8] sm:$0xff]  ;;  %v520_v43 = vld [vmem:[#allocation2 + $0xbd0] sm:$0xff] }
 0x22e   :  { %v10022_v20 = vcombine.low %v513_v7, %v517_v9  ;;  %v10029_v21 = vcombine.high %v520_v43, %v524_v45  ;;  %v10028_v26 = vcombine.low %v520_v43, %v524_v45  ;;  %v576_v43 = vld [vmem:[#allocation2 + $0xd90] sm:$0xff] }
 0x22f   :  { %v580_v45 = vld [vmem:[#allocation2 + $0xdb0] sm:$0xff] }
 0x230   :  { %3739 = vmatpush1.bf16.msra.mxu0 %v9956_v13  ;;  %3911 = vmatpush1.bf16.msra.mxu1 %v9958_v14  ;;  %v521_v13 = vld [vmem:[#allocation2 + $0xbd8] sm:$0xff]  ;;  %v10023_v14 = vcombine.high %v513_v7, %v517_v9 }
 0x231   :  { %3740 = vmatprep.subr.bf16.mxu0 %v9965_v16  ;;  %3912 = vmatprep.subr.bf16.mxu1 %v9967_v53  ;;  %v525_v16 = vld [vmem:[#allocation2 + $0xbf8] sm:$0xff]  ;;  %v528_v53 = vld [vmem:[#allocation2 + $0xc10] sm:$0xff] }
 0x232   :  { %v10030_v28 = vcombine.low %v521_v13, %v525_v16  ;;  %v10037_v31 = vcombine.high %v528_v53, %v532_v54  ;;  %v10036_v36 = vcombine.low %v528_v53, %v532_v54 }
 0x234   :  { %3741 = vmatpush1.bf16.msra.mxu0 %v9964_v22  ;;  %3913 = vmatpush1.bf16.msra.mxu1 %v9966_v23  ;;  %v529_v22 = vld [vmem:[#allocation2 + $0xc18] sm:$0xff]  ;;  %v10031_v23 = vcombine.high %v521_v13, %v525_v16 }
 0x235   :  { %3742 = vmatprep.subr.bf16.mxu0 %v9973_v25  ;;  %3914 = vmatprep.subr.bf16.mxu1 %v9975_v32  ;;  %v533_v25 = vld [vmem:[#allocation2 + $0xc38] sm:$0xff]  ;;  %v536_v32 = vld [vmem:[#allocation2 + $0xc50] sm:$0xff] }
 0x236   :  { %v10045_v17 = vcombine.high %v536_v32, %v540_v33  ;;  %v10044_v42 = vcombine.low %v536_v32, %v540_v33  ;;  %v577_v13 = vld [vmem:[#allocation2 + $0xd98] sm:$0xff] }
 0x237   :  { %v581_v16 = vld [vmem:[#allocation2 + $0xdb8] sm:$0xff] }
 0x238   :  { %3743 = vmatpush1.bf16.msra.mxu0 %v9972_v34  ;;  %3915 = vmatpush1.bf16.msra.mxu1 %v9974_v58  ;;  %v537_v34 = vld [vmem:[#allocation2 + $0xc58] sm:$0xff]  ;;  %v10039_v58 = vcombine.high %v529_v22, %v533_v25 }
 0x239   :  { %3744 = vmatprep.subr.bf16.mxu0 %v9981_v35  ;;  %3916 = vmatprep.subr.bf16.mxu1 %v9983_v38  ;;  %v541_v35 = vld [vmem:[#allocation2 + $0xc78] sm:$0xff]  ;;  %v10038_v38 = vcombine.low %v529_v22, %v533_v25 }
 0x23a   :  { %v10046_v44 = vcombine.low %v537_v34, %v541_v35 }
 0x23c   :  { %3745 = vmatpush1.bf16.msra.mxu0 %v9980_v18  ;;  %3917 = vmatpush1.bf16.msra.mxu1 %v9982_v40  ;;  %v10047_v18 = vcombine.high %v537_v34, %v541_v35  ;;  %v545_v40 = vld [vmem:[#allocation2 + $0xc98] sm:$0xff] }
 0x23d   :  { %3746 = vmatprep.subr.bf16.mxu0 %v9989_v41  ;;  %3918 = vmatprep.subr.bf16.mxu1 %v9991_v30  ;;  %v549_v41 = vld [vmem:[#allocation2 + $0xcb8] sm:$0xff]  ;;  %v656_v30 = vlaneseq }
 0x23e   :  { %v10055_v48 = vcombine.high %v545_v40, %v549_v41  ;;  %v589_v35 = vld [vmem:[#allocation2 + $0xdf8] sm:$0xff] }
 0x240   :  { %3747 = vmatpush1.bf16.msra.mxu0 %v9988_v24  ;;  %3919 = vmatpush1.bf16.msra.mxu1 %v9990_v49  ;;  %v552_v24 = vld [vmem:[#allocation2 + $0xcd0] sm:$0xff] }
 0x241   :  { %3748 = vmatprep.subr.bf16.mxu0 %v9997_v50  ;;  %3920 = vmatprep.subr.bf16.mxu1 %v9999_v56  ;;  %v556_v49 = vld [vmem:[#allocation2 + $0xcf0] sm:$0xff]  ;;  %v553_v50 = vld [vmem:[#allocation2 + $0xcd8] sm:$0xff] }
 0x242   :  { %v10061_v55 = vcombine.high %v552_v24, %v556_v49  ;;  %v560_v56 = vld [vmem:[#allocation2 + $0xd10] sm:$0xff]  ;;  %v10060_v61 = vcombine.low %v552_v24, %v556_v49  ;;  %v10062_v62 = vcombine.low %v553_v50, %v557_v51 }
 0x243   :  { %v10068_v9 = vcombine.low %v560_v56, %v564_v27 }
 0x244   :  { %3749 = vmatpush1.bf16.msra.mxu0 %v9996_v29  ;;  %3921 = vmatpush1.bf16.msra.mxu1 %v9998_v39  ;;  %v561_v29 = vld [vmem:[#allocation2 + $0xd18] sm:$0xff]  ;;  %v12625_v39 = vshrl.u32 %v656_v30, 7 }
 0x245   :  { %3750 = vmatprep.subr.bf16.mxu0 %v10005_v59  ;;  %3922 = vmatprep.subr.bf16.mxu1 %v10007_v63  ;;  %v10063_v59 = vcombine.high %v553_v50, %v557_v51  ;;  %v10071_v5 = vcombine.high %v561_v29, %v565_v60  ;;  %v592_v51 = vld [vmem:[#allocation2 + $0xe10] sm:$0xff] }
 0x246   :  { %v12628_v63 = vsub.s32 0, %v12625_v39  ;;  %v12631_v0 = vsub.s32 2, %v12625_v39  ;;  %v12634_v7 = vsub.s32 1, %v12625_v39 }
 0x248   :  { %3751 = vmatpush1.bf16.msra.mxu0 %v10004_v1  ;;  %3923 = vmatpush1.bf16.msra.mxu1 %v10006_v2  ;;  %v568_v1 = vld [vmem:[#allocation2 + $0xd50] sm:$0xff] }
 0x249   :  { %3752 = vmatprep.subr.bf16.mxu0 %v10013_v4  ;;  %3924 = vmatprep.subr.bf16.mxu1 %v10015_v8  ;;  %v572_v2 = vld [vmem:[#allocation2 + $0xd70] sm:$0xff]  ;;  %v569_v4 = vld [vmem:[#allocation2 + $0xd58] sm:$0xff] }
 0x24a   :  { %v573_v8 = vld [vmem:[#allocation2 + $0xd78] sm:$0xff]  ;;  %v10076_v53 = vcombine.low %v568_v1, %v572_v2 }
 0x24b   :  { %v10078_v22 = vcombine.low %v569_v4, %v573_v8 }
 0x24c   :  { %3753 = vmatpush1.bf16.msra.mxu0 %v10012_v10  ;;  %3925 = vmatpush1.bf16.msra.mxu1 %v10014_v11  ;;  %v10070_v10 = vcombine.low %v561_v29, %v565_v60  ;;  %v12637_v11 = vsub.s32 3, %v12625_v39  ;;  %v593_v29 = vld [vmem:[#allocation2 + $0xe18] sm:$0xff] }
 0x24d   :  { %3754 = vmatprep.subr.bf16.mxu0 %v10021_v12  ;;  %3926 = vmatprep.subr.bf16.mxu1 %v10023_v14  ;;  %v10077_v12 = vcombine.high %v568_v1, %v572_v2  ;;  %v10079_v14 = vcombine.high %v569_v4, %v573_v8 }
 0x24e   :  { %v671_v54 = vrot.slane %v654_v6, %v12637_v11 }
 0x250   :  { %3755 = vmatpush1.bf16.msra.mxu0 %v10020_v19  ;;  %3927 = vmatpush1.bf16.msra.mxu1 %v10022_v20  ;;  %v659_v19 = vrot.slane %v654_v6, %v12628_v63  ;;  %v667_v20 = vrot.slane %v654_v6, %v12631_v0 }
 0x251   :  { %3756 = vmatprep.subr.bf16.mxu0 %v10029_v21  ;;  %3928 = vmatprep.subr.bf16.mxu1 %v10031_v23  ;;  %v663_v21 = vrot.slane %v654_v6, %v12634_v7  ;;  %v10085_v23 = vcombine.high %v576_v43, %v580_v45 }
 0x254   :  { %3757 = vmatpush1.bf16.msra.mxu0 %v10028_v26  ;;  %3929 = vmatpush1.bf16.msra.mxu1 %v10030_v28  ;;  %v10087_v26 = vcombine.high %v577_v13, %v581_v16  ;;  %v584_v28 = vld [vmem:[#allocation2 + $0xdd0] sm:$0xff] }
 0x255   :  { %3769 = vmatprep.subr.bf16.mxu0 %v10037_v31  ;;  %3941 = vmatprep.subr.bf16.mxu1 %v10039_v58  ;;  %v588_v31 = vld [vmem:[#allocation2 + $0xdf0] sm:$0xff]  ;;  %v585_v58 = vld [vmem:[#allocation2 + $0xdd8] sm:$0xff] }
 0x256   :  { %v10092_v49 = vcombine.low %v584_v28, %v588_v31  ;;  %v10095_v50 = vcombine.high %v585_v58, %v589_v35 }
 0x257   :  { %3759 = vmatmul.mubr.bf16.vlgmr.msra.gmra.mrb[4].mxu0 %v12595_v46  ;;  %3931 = vmatmul.mubr.bf16.vlgmr.msra.gmra.mrb[4].mxu1 %v12595_v46  ;;  %v10054_v46 = vcombine.low %v545_v40, %v549_v41 }
 0x258   :  { %3770 = vmatpush1.bf16.msra.mxu0 %v10036_v36  ;;  %3942 = vmatpush1.bf16.msra.mxu1 %v10038_v38 }
 0x259   :  { %3771 = vmatprep.subr.bf16.mxu0 %v10045_v17  ;;  %3943 = vmatprep.subr.bf16.mxu1 %v10047_v18  ;;  %v10084_v17 = vcombine.low %v576_v43, %v580_v45  ;;  %v10086_v18 = vcombine.low %v577_v13, %v581_v16  ;;  %v601_v45 = vld [vmem:[#allocation2 + $0xe58] sm:$0xff] }
 0x25a   :  { %3801 = vmatprep.mubr.bf16.mxu0 %v12599_v57  ;;  %3973 = vmatprep.mubr.bf16.mxu1 %v12599_v57  ;;  %v10069_v57 = vcombine.high %v560_v56, %v564_v27  ;;  %v10094_v27 = vcombine.low %v585_v58, %v589_v35  ;;  %v605_v13 = vld [vmem:[#allocation2 + $0xe78] sm:$0xff] }
 0x25c   :  { %3772 = vmatpush1.bf16.msra.mxu0 %v10044_v42  ;;  %3944 = vmatpush1.bf16.msra.mxu1 %v10046_v44 }
 0x25d   :  { %3773 = vmatprep.subr.bf16.mxu0 %v10053_v47  ;;  %3945 = vmatprep.subr.bf16.mxu1 %v10055_v48  ;;  %v10093_v47 = vcombine.high %v584_v28, %v588_v31  ;;  %v616_v31 = vld [vmem:[#allocation2 + $0xed0] sm:$0xff] }
 0x260   :  { %3774 = vmatpush1.bf16.msra.mxu0 %v10052_v52  ;;  %3946 = vmatpush1.bf16.msra.mxu1 %v10054_v46  ;;  %v596_v52 = vld [vmem:[#allocation2 + $0xe30] sm:$0xff] }
 0x261   :  { %3775 = vmatprep.subr.bf16.mxu0 %v10061_v55  ;;  %3947 = vmatprep.subr.bf16.mxu1 %v10063_v59  ;;  %v597_v59 = vld [vmem:[#allocation2 + $0xe38] sm:$0xff] }
 0x262   :  { %v10102_v16 = vcombine.low %v593_v29, %v597_v59 }
 0x264   :  { %3776 = vmatpush1.bf16.msra.mxu0 %v10060_v61  ;;  %3948 = vmatpush1.bf16.msra.mxu1 %v10062_v62 }
 0x265   :  { %3777 = vmatprep.subr.bf16.mxu0 %v10069_v57  ;;  %3949 = vmatprep.subr.bf16.mxu1 %v10071_v5  ;;  %v10101_v5 = vcombine.high %v592_v51, %v596_v52 }
 0x268   :  { %3778 = vmatpush1.bf16.msra.mxu0 %v10068_v9  ;;  %3950 = vmatpush1.bf16.msra.mxu1 %v10070_v10  ;;  %v10103_v9 = vcombine.high %v593_v29, %v597_v59  ;;  %v600_v10 = vld [vmem:[#allocation2 + $0xe50] sm:$0xff] }
 0x269   :  { %3779 = vmatprep.subr.bf16.mxu0 %v10077_v12  ;;  %3951 = vmatprep.subr.bf16.mxu1 %v10079_v14  ;;  %v604_v12 = vld [vmem:[#allocation2 + $0xe70] sm:$0xff]  ;;  %v10100_v14 = vcombine.low %v592_v51, %v596_v52 }
 0x26a   :  { %v3459_v25 = vpop.f32.mrb[0].mxu0  ;;  %v3631_v33 = vpop.f32.mrb[0].mxu1 }
 0x26b   :  { %v10997_v32 = vadd.f32 %v3459_v25, %v659_v19  ;;  %v3461_v34 = vpop.f32.mrb[1].mxu0  ;;  %v11001_v36 = vadd.f32 %v3631_v33, %v667_v20  ;;  %v3633_v37 = vpop.f32.mrb[1].mxu1  ;;  %v10110_v25 = vcombine.low %v601_v45, %v605_v13  ;;  %v617_v33 = vld [vmem:[#allocation2 + $0xed8] sm:$0xff] }
 0x26c   :  { %v10998_v15 = vadd.f32 %v3461_v34, %v663_v21  ;;  %v3463_v38 = vpop.f32.mrb[2].mxu0  ;;  %3780 = vmatpush1.bf16.msra.mxu0 %v10076_v53  ;;  %v11002_v40 = vadd.f32 %v3633_v37, %v671_v54  ;;  %v3635_v42 = vpop.f32.mrb[2].mxu1  ;;  %3952 = vmatpush1.bf16.msra.mxu1 %v10078_v22  ;;  %v612_v53 = vld [vmem:[#allocation2 + $0xeb0] sm:$0xff]  ;;  %v613_v22 = vld [vmem:[#allocation2 + $0xeb8] sm:$0xff] }
 0x26d   :  { %v10999_v41 = vadd.f32 %v3463_v38, %v659_v19  ;;  %v3465_v44 = vpop.f32.mrb[3].mxu0  ;;  %3781 = vmatprep.subr.bf16.mxu0 %v10085_v23  ;;  %v11003_v30 = vadd.f32 %v3635_v42, %v667_v20  ;;  %v3637_v24 = vpop.f32.mrb[3].mxu1  ;;  %3953 = vmatprep.subr.bf16.mxu1 %v10087_v26  ;;  %v3984_v46 = vmax.f32 %v10997_v32, 0.0  ;;  %v3986_v60 = vmax.f32 %v11001_v36, 0.0  ;;  %v620_v32 = vld [vmem:[#allocation2 + $0xef0] sm:$0xff]  ;;  %v621_v34 = vld [vmem:[#allocation2 + $0xef8] sm:$0xff] }
 0x26e   :  { %v11000_v48 = vadd.f32 %v3465_v44, %v663_v21  ;;  %v11004_v56 = vadd.f32 %v3637_v24, %v671_v54  ;;  %v3985_v61 = vmax.f32 %v10998_v15, 0.0  ;;  %v3987_v1 = vmax.f32 %v11002_v40, 0.0  ;;  %v608_v21 = vld [vmem:[#allocation2 + $0xe90] sm:$0xff]  ;;  %v609_v54 = vld [vmem:[#allocation2 + $0xe98] sm:$0xff] }
 0x26f   :  { %v3992_v55 = vmax.f32 %v10999_v41, 0.0  ;;  %v3994_v62 = vmax.f32 %v11003_v30, 0.0  ;;  %v10109_v19 = vcombine.high %v600_v10, %v604_v12  ;;  %v10111_v20 = vcombine.high %v601_v45, %v605_v13  ;;  %v624_v37 = vld [vmem:[#allocation2 + $0xf10] sm:$0xff]  ;;  %v637_v24 = vld [vmem:[#allocation2 + $0xf78] sm:$0xff] }
 0x270   :  { %v3993_v57 = vmax.f32 %v11000_v48, 0.0  ;;  %3782 = vmatpush1.bf16.msra.mxu0 %v10084_v17  ;;  %v3995_v4 = vmax.f32 %v11004_v56, 0.0  ;;  %3954 = vmatpush1.bf16.msra.mxu1 %v10086_v18  ;;  %v10108_v23 = vcombine.low %v600_v10, %v604_v12  ;;  %v10117_v26 = vcombine.high %v608_v21, %v612_v53  ;;  %v628_v38 = vld [vmem:[#allocation2 + $0xf30] sm:$0xff]  ;;  %v625_v17 = vld [vmem:[#allocation2 + $0xf18] sm:$0xff] }
 0x271   :  { %v12643_v2 = vpack.c.bf16 %v3992_v55, %v3984_v46  ;;  %3783 = vmatprep.subr.bf16.mxu0 %v10093_v47  ;;  %v12645_v6 = vpack.c.bf16 %v3994_v62, %v3986_v60  ;;  %3955 = vmatprep.subr.bf16.mxu1 %v10095_v50  ;;  %v10119_v28 = vcombine.high %v609_v54, %v613_v22  ;;  %v629_v18 = vld [vmem:[#allocation2 + $0xf38] sm:$0xff]  ;;  %v632_v47 = vld [vmem:[#allocation2 + $0xf50] sm:$0xff] }
 0x272   :  { %v12647_v8 = vpack.c.bf16 %v3993_v57, %v3985_v61  ;;  %v12649_v43 = vpack.c.bf16 %v3995_v4, %v3987_v1  ;;  %v10116_v58 = vcombine.low %v608_v21, %v612_v53  ;;  %v10118_v35 = vcombine.low %v609_v54, %v613_v22  ;;  %v636_v30 = vld [vmem:[#allocation2 + $0xf70] sm:$0xff]  ;;  %v633_v48 = vld [vmem:[#allocation2 + $0xf58] sm:$0xff]  ;;  %v11166_v21 = vld [vmem:[#allocation6 + $0x3c] ss:$28 sps:$4 sm:$0xff]  }
 0x273   :  { %v10125_v36 = vcombine.high %v616_v31, %v620_v32  ;;  %v10127_v15 = vcombine.high %v617_v33, %v621_v34  ;;  %v10124_v40 = vcombine.low %v616_v31, %v620_v32  ;;  %v10126_v41 = vcombine.low %v617_v33, %v621_v34  ;;  %v640_v46 = vld [vmem:[#allocation2 + $0xf90] sm:$0xff]  ;;  %v641_v56 = vld [vmem:[#allocation2 + $0xf98] sm:$0xff]  ;;  %v11169_v53 = vld [vmem:[#allocation6 + $0x44] ss:$28 sps:$4 sm:$0xff]  }
 0x274   :  { %3784 = vmatpush1.bf16.msra.mxu0 %v10092_v49  ;;  %3956 = vmatpush1.bf16.msra.mxu1 %v10094_v27  ;;  %v10133_v42 = vcombine.high %v624_v37, %v628_v38  ;;  %v10135_v44 = vcombine.high %v625_v17, %v629_v18  ;;  %v10132_v49 = vcombine.low %v624_v37, %v628_v38  ;;  %v644_v55 = vld [vmem:[#allocation2 + $0xfb0] sm:$0xff]  ;;  %v645_v27 = vld [vmem:[#allocation2 + $0xfb8] sm:$0xff]  ;;  %v11167_v22 = vld [vmem:[#allocation6 + $0x40] ss:$28 sps:$4 sm:$0xff]  }
 0x275   :  { %3785 = vmatprep.subr.bf16.mxu0 %v10101_v5  ;;  %3957 = vmatprep.subr.bf16.mxu1 %v10103_v9  ;;  %v10134_v50 = vcombine.low %v625_v17, %v629_v18  ;;  %v10141_v51 = vcombine.high %v632_v47, %v636_v30  ;;  %v10143_v52 = vcombine.high %v633_v48, %v637_v24  ;;  %v648_v62 = vld [vmem:[#allocation2 + $0xfd0] sm:$0xff]  ;;  %v649_v1 = vld [vmem:[#allocation2 + $0xfd8] sm:$0xff]  ;;  %v11184_v34 = vld [vmem:[#allocation6 + $0xe4] ss:$28 sps:$4 sm:$0xff]  }
 0x276   :  { %v10140_v29 = vcombine.low %v632_v47, %v636_v30  ;;  %v10142_v59 = vcombine.low %v633_v48, %v637_v24  ;;  %v10149_v60 = vcombine.high %v640_v46, %v644_v55  ;;  %v10151_v61 = vcombine.high %v641_v56, %v645_v27  ;;  %v652_v57 = vld [vmem:[#allocation2 + $0xff0] sm:$0xff]  ;;  %v653_v4 = vld [vmem:[#allocation2 + $0xff8] sm:$0xff]  ;;  %v11193_v37 = vld [vmem:[#allocation6 + $0x124] ss:$28 sps:$4 sm:$0xff]  }
 0x277   :  { %v10148_v5 = vcombine.low %v640_v46, %v644_v55  ;;  %v10150_v9 = vcombine.low %v641_v56, %v645_v27  ;;  %v10157_v10 = vcombine.high %v648_v62, %v652_v57  ;;  %v10159_v12 = vcombine.high %v649_v1, %v653_v4  ;;  %v11164_v54 = vld [vmem:[#allocation6 + $0x38] ss:$28 sps:$4 sm:$0xff]   ;;  %v11178_v31 = vld [vmem:[#allocation6 + $0xac] ss:$28 sps:$4 sm:$0xff]   ;;  %v11191_v17 = vld [vmem:[#allocation6 + $0x120] ss:$28 sps:$4 sm:$0xff]  }
 0x278   :  { %3786 = vmatpush1.bf16.msra.mxu0 %v10100_v14  ;;  %3958 = vmatpush1.bf16.msra.mxu1 %v10102_v16  ;;  %v10156_v45 = vcombine.low %v648_v62, %v652_v57  ;;  %v10158_v13 = vcombine.low %v649_v1, %v653_v4  ;;  %v11160_v14 = vld [vmem:[#allocation6 + $0x4] ss:$28 sps:$4 sm:$0xff]   ;;  %v11163_v16 = vld [vmem:[#allocation6 + $0xc] ss:$28 sps:$4 sm:$0xff]   ;;  %v11188_v38 = vld [vmem:[#allocation6 + $0x118] ss:$28 sps:$4 sm:$0xff]  }
 0x279   :  { %3787 = vmatprep.subr.bf16.mxu0 %v10109_v19  ;;  %3959 = vmatprep.subr.bf16.mxu1 %v10111_v20  ;;  %v11158_v19 = vld [vmem:[#allocation6] ss:$28 sps:$4 sm:$0xff]   ;;  %v11161_v20 = vld [vmem:[#allocation6 + $0x8] ss:$28 sps:$4 sm:$0xff]   ;;  %v11179_v33 = vld [vmem:[#allocation6 + $0xb0] ss:$28 sps:$4 sm:$0xff]  }
 0x27a   :  { %v11176_v32 = vld [vmem:[#allocation6 + $0xa8] ss:$28 sps:$4 sm:$0xff]   ;;  %v11196_v18 = vld [vmem:[#allocation6 + $0x154] ss:$28 sps:$4 sm:$0xff]   ;;  %v11215_v56 = vld [vmem:[#allocation6 + $0x200] ss:$28 sps:$4 sm:$0xff]  }
 0x27b   :  { %v11205_v47 = vld [vmem:[#allocation6 + $0x194] ss:$28 sps:$4 sm:$0xff]   ;;  %v11200_v30 = vld [vmem:[#allocation6 + $0x188] ss:$28 sps:$4 sm:$0xff]  }
 0x27c   :  { %3788 = vmatpush1.bf16.msra.mxu0 %v10108_v23  ;;  %3960 = vmatpush1.bf16.msra.mxu1 %v10110_v25  ;;  %v11172_v23 = vld [vmem:[#allocation6 + $0x74] ss:$28 sps:$4 sm:$0xff]   ;;  %v11175_v25 = vld [vmem:[#allocation6 + $0x7c] ss:$28 sps:$4 sm:$0xff]   ;;  %v11208_v24 = vld [vmem:[#allocation6 + $0x1c4] ss:$28 sps:$4 sm:$0xff]  }
 0x27d   :  { %3789 = vmatprep.subr.bf16.mxu0 %v10117_v26  ;;  %3961 = vmatprep.subr.bf16.mxu1 %v10119_v28  ;;  %v11170_v26 = vld [vmem:[#allocation6 + $0x70] ss:$28 sps:$4 sm:$0xff]   ;;  %v11173_v28 = vld [vmem:[#allocation6 + $0x78] ss:$28 sps:$4 sm:$0xff]   ;;  %v11217_v46 = vld [vmem:[#allocation6 + $0x204] ss:$28 sps:$4 sm:$0xff]  }
 0x27e   :  { %v11203_v48 = vld [vmem:[#allocation6 + $0x190] ss:$28 sps:$4 sm:$0xff]   ;;  %v11212_v55 = vld [vmem:[#allocation6 + $0x1f8] ss:$28 sps:$4 sm:$0xff]   ;;  %v11224_v57 = vld [vmem:[#allocation6 + $0x268] ss:$28 sps:$4 sm:$0xff]  }
 0x27f   :  { %v11220_v27 = vld [vmem:[#allocation6 + $0x234] ss:$28 sps:$4 sm:$0xff]   ;;  %v11232_v4 = vld [vmem:[#allocation6 + $0x2a4] ss:$28 sps:$4 sm:$0xff]  }
 0x280   :  { %3790 = vmatpush1.bf16.msra.mxu0 %v10116_v58  ;;  %3962 = vmatpush1.bf16.msra.mxu1 %v10118_v35  ;;  %v11187_v58 = vld [vmem:[#allocation6 + $0xec] ss:$28 sps:$4 sm:$0xff]   ;;  %v11182_v35 = vld [vmem:[#allocation6 + $0xe0] ss:$28 sps:$4 sm:$0xff]   ;;  %v11229_v62 = vld [vmem:[#allocation6 + $0x274] ss:$28 sps:$4 sm:$0xff]  }
 0x281   :  { %3791 = vmatprep.subr.bf16.mxu0 %v10125_v36  ;;  %3963 = vmatprep.subr.bf16.mxu1 %v10127_v15  ;;  %v11185_v36 = vld [vmem:[#allocation6 + $0xe8] ss:$28 sps:$4 sm:$0xff]   ;;  %v11190_v15 = vld [vmem:[#allocation6 + $0x11c] ss:$28 sps:$4 sm:$0xff]   ;;  %v11227_v1 = vld [vmem:[#allocation6 + $0x270] ss:$28 sps:$4 sm:$0xff]  }
 0x284   :  { %3792 = vmatpush1.bf16.msra.mxu0 %v10124_v40  ;;  %3964 = vmatpush1.bf16.msra.mxu1 %v10126_v41  ;;  %v11199_v40 = vld [vmem:[#allocation6 + $0x15c] ss:$28 sps:$4 sm:$0xff]   ;;  %v11194_v41 = vld [vmem:[#allocation6 + $0x150] ss:$28 sps:$4 sm:$0xff]  }
 0x285   :  { %3793 = vmatprep.subr.bf16.mxu0 %v10133_v42  ;;  %3965 = vmatprep.subr.bf16.mxu1 %v10135_v44  ;;  %v11197_v42 = vld [vmem:[#allocation6 + $0x158] ss:$28 sps:$4 sm:$0xff]   ;;  %v11202_v44 = vld [vmem:[#allocation6 + $0x18c] ss:$28 sps:$4 sm:$0xff]  }
 0x288   :  { %3794 = vmatpush1.bf16.msra.mxu0 %v10132_v49  ;;  %3966 = vmatpush1.bf16.msra.mxu1 %v10134_v50  ;;  %v11211_v49 = vld [vmem:[#allocation6 + $0x1cc] ss:$28 sps:$4 sm:$0xff]   ;;  %v11206_v50 = vld [vmem:[#allocation6 + $0x1c0] ss:$28 sps:$4 sm:$0xff]  }
 0x289   :  { %3795 = vmatprep.subr.bf16.mxu0 %v10141_v51  ;;  %3967 = vmatprep.subr.bf16.mxu1 %v10143_v52  ;;  %v11209_v51 = vld [vmem:[#allocation6 + $0x1c8] ss:$28 sps:$4 sm:$0xff]   ;;  %v11214_v52 = vld [vmem:[#allocation6 + $0x1fc] ss:$28 sps:$4 sm:$0xff]  }
 0x28c   :  { %3796 = vmatpush1.bf16.msra.mxu0 %v10140_v29  ;;  %3968 = vmatpush1.bf16.msra.mxu1 %v10142_v59  ;;  %v11223_v29 = vld [vmem:[#allocation6 + $0x23c] ss:$28 sps:$4 sm:$0xff]   ;;  %v11218_v59 = vld [vmem:[#allocation6 + $0x230] ss:$28 sps:$4 sm:$0xff]  }
 0x28d   :  { %3797 = vmatprep.subr.bf16.mxu0 %v10149_v60  ;;  %3969 = vmatprep.subr.bf16.mxu1 %v10151_v61  ;;  %v11221_v60 = vld [vmem:[#allocation6 + $0x238] ss:$28 sps:$4 sm:$0xff]   ;;  %v11226_v61 = vld [vmem:[#allocation6 + $0x26c] ss:$28 sps:$4 sm:$0xff]  }
 0x290   :  { %3798 = vmatpush1.bf16.msra.mxu0 %v10148_v5  ;;  %3970 = vmatpush1.bf16.msra.mxu1 %v10150_v9  ;;  %v11235_v5 = vld [vmem:[#allocation6 + $0x2ac] ss:$28 sps:$4 sm:$0xff]   ;;  %v11230_v9 = vld [vmem:[#allocation6 + $0x2a0] ss:$28 sps:$4 sm:$0xff]  }
 0x291   :  { %3799 = vmatprep.subr.bf16.mxu0 %v10157_v10  ;;  %3971 = vmatprep.subr.bf16.mxu1 %v10159_v12  ;;  %v11233_v10 = vld [vmem:[#allocation6 + $0x2a8] ss:$28 sps:$4 sm:$0xff]   ;;  %v11238_v12 = vld [vmem:[#allocation6 + $0x2dc] ss:$28 sps:$4 sm:$0xff]  }
 0x294   :  { %3800 = vmatpush1.bf16.msra.mxu0 %v10156_v45  ;;  %3972 = vmatpush1.bf16.msra.mxu1 %v10158_v13  ;;  %v11241_v45 = vld [vmem:[#allocation6 + $0x2e4] ss:$28 sps:$4 sm:$0xff]   ;;  %v11236_v13 = vld [vmem:[#allocation6 + $0x2d8] ss:$28 sps:$4 sm:$0xff]  }
 0x295   :  { %6861 = vmatprep.subr.bf16.mxu0 %v11160_v14  ;;  %7033 = vmatprep.subr.bf16.mxu1 %v11163_v16  ;;  %v11239_v14 = vld [vmem:[#allocation6 + $0x2e0] ss:$28 sps:$4 sm:$0xff]   ;;  %v11244_v16 = vld [vmem:[#allocation6 + $0x314] ss:$28 sps:$4 sm:$0xff]  }
 0x297   :  { %3802 = vmatmul.mubr.bf16.vlgmr.msra.gmra.mrb[4].mxu0 %v12607_v3  ;;  %3974 = vmatmul.mubr.bf16.vlgmr.msra.gmra.mrb[4].mxu1 %v12607_v3  ;;  %v11181_v3 = vld [vmem:[#allocation6 + $0xb4] ss:$28 sps:$4 sm:$0xff]  }
 0x298   :  { %6862 = vmatpush1.bf16.msra.mxu0 %v11158_v19  ;;  %6893 = vmatprep.mubr.bf16.mxu0 %v12647_v8  ;;  %v11247_v19 = vld [vmem:[#allocation6 + $0x31c] ss:$28 sps:$4 sm:$0xff]  }
 0x299   :  { %7034 = vmatpush1.bf16.msra.mxu1 %v11161_v20  ;;  %7065 = vmatprep.mubr.bf16.mxu1 %v12647_v8  ;;  %v11242_v20 = vld [vmem:[#allocation6 + $0x310] ss:$28 sps:$4 sm:$0xff]  }
 0x29a   :  { %6863 = vmatprep.subr.bf16.mxu0 %v11166_v21  ;;  %7035 = vmatprep.subr.bf16.mxu1 %v11169_v53  ;;  %v11245_v21 = vld [vmem:[#allocation6 + $0x318] ss:$28 sps:$4 sm:$0xff]   ;;  %v11250_v53 = vld [vmem:[#allocation6 + $0x34c] ss:$28 sps:$4 sm:$0xff]  }
 0x29c   :  { %6864 = vmatpush1.bf16.msra.mxu0 %v11164_v54  ;;  %v11253_v54 = vld [vmem:[#allocation6 + $0x354] ss:$28 sps:$4 sm:$0xff]  }
 0x29d   :  { %7036 = vmatpush1.bf16.msra.mxu1 %v11167_v22  ;;  %6865 = vmatprep.subr.bf16.mxu0 %v11172_v23  ;;  %v11248_v22 = vld [vmem:[#allocation6 + $0x348] ss:$28 sps:$4 sm:$0xff]   ;;  %v11251_v23 = vld [vmem:[#allocation6 + $0x350] ss:$28 sps:$4 sm:$0xff]  }
 0x29e   :  { %7037 = vmatprep.subr.bf16.mxu1 %v11175_v25  ;;  %v11256_v25 = vld [vmem:[#allocation6 + $0x384] ss:$28 sps:$4 sm:$0xff]  }
 0x2a0   :  { %6866 = vmatpush1.bf16.msra.mxu0 %v11170_v26  ;;  %v11259_v26 = vld [vmem:[#allocation6 + $0x38c] ss:$28 sps:$4 sm:$0xff]  }
 0x2a1   :  { %7038 = vmatpush1.bf16.msra.mxu1 %v11173_v28  ;;  %6867 = vmatprep.subr.bf16.mxu0 %v11178_v31  ;;  %v11254_v28 = vld [vmem:[#allocation6 + $0x380] ss:$28 sps:$4 sm:$0xff]   ;;  %v11257_v31 = vld [vmem:[#allocation6 + $0x388] ss:$28 sps:$4 sm:$0xff]  }
 0x2a2   :  { %7039 = vmatprep.subr.bf16.mxu1 %v11181_v3  ;;  %v11262_v3 = vld [vmem:[#allocation6 + $0x3bc] ss:$28 sps:$4 sm:$0xff]  }
 0x2a4   :  { %6868 = vmatpush1.bf16.msra.mxu0 %v11176_v32  ;;  %v11265_v32 = vld [vmem:[#allocation6 + $0x3c4] ss:$28 sps:$4 sm:$0xff]  }
 0x2a5   :  { %7040 = vmatpush1.bf16.msra.mxu1 %v11179_v33  ;;  %6869 = vmatprep.subr.bf16.mxu0 %v11184_v34  ;;  %v11260_v33 = vld [vmem:[#allocation6 + $0x3b8] ss:$28 sps:$4 sm:$0xff]   ;;  %v11263_v34 = vld [vmem:[#allocation6 + $0x3c0] ss:$28 sps:$4 sm:$0xff]  }
 0x2a6   :  { %7041 = vmatprep.subr.bf16.mxu1 %v11187_v58  ;;  %v11268_v58 = vld [vmem:[#allocation6 + $0x3f4] ss:$28 sps:$4 sm:$0xff]  }
 0x2a8   :  { %6870 = vmatpush1.bf16.msra.mxu0 %v11182_v35  ;;  %v11271_v35 = vld [vmem:[#allocation6 + $0x3fc] ss:$28 sps:$4 sm:$0xff]  }
 0x2a9   :  { %7042 = vmatpush1.bf16.msra.mxu1 %v11185_v36  ;;  %6871 = vmatprep.subr.bf16.mxu0 %v11190_v15  ;;  %v11266_v36 = vld [vmem:[#allocation6 + $0x3f0] ss:$28 sps:$4 sm:$0xff]   ;;  %v11269_v15 = vld [vmem:[#allocation6 + $0x3f8] ss:$28 sps:$4 sm:$0xff]  }
 0x2aa   :  { %7043 = vmatprep.subr.bf16.mxu1 %v11193_v37  ;;  %v11274_v37 = vld [vmem:[#allocation6 + $0x42c] ss:$28 sps:$4 sm:$0xff]  }
 0x2ac   :  { %6872 = vmatpush1.bf16.msra.mxu0 %v11188_v38  ;;  %v11277_v38 = vld [vmem:[#allocation6 + $0x434] ss:$28 sps:$4 sm:$0xff]  }
 0x2ad   :  { %7044 = vmatpush1.bf16.msra.mxu1 %v11191_v17  ;;  %6873 = vmatprep.subr.bf16.mxu0 %v11196_v18  ;;  %v11272_v17 = vld [vmem:[#allocation6 + $0x428] ss:$28 sps:$4 sm:$0xff]   ;;  %v11275_v18 = vld [vmem:[#allocation6 + $0x430] ss:$28 sps:$4 sm:$0xff]  }
 0x2ae   :  { %7045 = vmatprep.subr.bf16.mxu1 %v11199_v40  ;;  %v11280_v40 = vld [vmem:[#allocation6 + $0x464] ss:$28 sps:$4 sm:$0xff]  }
 0x2b0   :  { %6874 = vmatpush1.bf16.msra.mxu0 %v11194_v41  ;;  %v11283_v41 = vld [vmem:[#allocation6 + $0x46c] ss:$28 sps:$4 sm:$0xff]  }
 0x2b1   :  { %7046 = vmatpush1.bf16.msra.mxu1 %v11197_v42  ;;  %6875 = vmatprep.subr.bf16.mxu0 %v11202_v44  ;;  %v11278_v42 = vld [vmem:[#allocation6 + $0x460] ss:$28 sps:$4 sm:$0xff]   ;;  %v11281_v44 = vld [vmem:[#allocation6 + $0x468] ss:$28 sps:$4 sm:$0xff]  }
 0x2b2   :  { %7047 = vmatprep.subr.bf16.mxu1 %v11205_v47  ;;  %v11286_v47 = vld [vmem:[#allocation6 + $0x49c] ss:$28 sps:$4 sm:$0xff]  }
 0x2b4   :  { %6876 = vmatpush1.bf16.msra.mxu0 %v11200_v30  ;;  %v11289_v30 = vld [vmem:[#allocation6 + $0x4a4] ss:$28 sps:$4 sm:$0xff]  }
 0x2b5   :  { %7048 = vmatpush1.bf16.msra.mxu1 %v11203_v48  ;;  %6877 = vmatprep.subr.bf16.mxu0 %v11208_v24  ;;  %v11284_v48 = vld [vmem:[#allocation6 + $0x498] ss:$28 sps:$4 sm:$0xff]   ;;  %v11287_v24 = vld [vmem:[#allocation6 + $0x4a0] ss:$28 sps:$4 sm:$0xff]  }
 0x2b6   :  { %7049 = vmatprep.subr.bf16.mxu1 %v11211_v49  ;;  %v11292_v49 = vld [vmem:[#allocation6 + $0x4d4] ss:$28 sps:$4 sm:$0xff]  }
 0x2b8   :  { %6878 = vmatpush1.bf16.msra.mxu0 %v11206_v50  ;;  %v11295_v50 = vld [vmem:[#allocation6 + $0x4dc] ss:$28 sps:$4 sm:$0xff]  }
 0x2b9   :  { %7050 = vmatpush1.bf16.msra.mxu1 %v11209_v51  ;;  %6879 = vmatprep.subr.bf16.mxu0 %v11214_v52  ;;  %v11290_v51 = vld [vmem:[#allocation6 + $0x4d0] ss:$28 sps:$4 sm:$0xff]   ;;  %v11293_v52 = vld [vmem:[#allocation6 + $0x4d8] ss:$28 sps:$4 sm:$0xff]  }
 0x2ba   :  { %7051 = vmatprep.subr.bf16.mxu1 %v11217_v46  ;;  %v11298_v46 = vld [vmem:[#allocation6 + $0x50c] ss:$28 sps:$4 sm:$0xff]  }
 0x2bc   :  { %6880 = vmatpush1.bf16.msra.mxu0 %v11212_v55  ;;  %v11301_v55 = vld [vmem:[#allocation6 + $0x514] ss:$28 sps:$4 sm:$0xff]  }
 0x2bd   :  { %7052 = vmatpush1.bf16.msra.mxu1 %v11215_v56  ;;  %6881 = vmatprep.subr.bf16.mxu0 %v11220_v27  ;;  %v11296_v56 = vld [vmem:[#allocation6 + $0x508] ss:$28 sps:$4 sm:$0xff]   ;;  %v11299_v27 = vld [vmem:[#allocation6 + $0x510] ss:$28 sps:$4 sm:$0xff]  }
 0x2be   :  { %7053 = vmatprep.subr.bf16.mxu1 %v11223_v29  ;;  %v11304_v29 = vld [vmem:[#allocation6 + $0x544] ss:$28 sps:$4 sm:$0xff]  }
 0x2c0   :  { %6882 = vmatpush1.bf16.msra.mxu0 %v11218_v59  ;;  %v11307_v59 = vld [vmem:[#allocation6 + $0x54c] ss:$28 sps:$4 sm:$0xff]  }
 0x2c1   :  { %7054 = vmatpush1.bf16.msra.mxu1 %v11221_v60  ;;  %6883 = vmatprep.subr.bf16.mxu0 %v11226_v61  ;;  %v11302_v60 = vld [vmem:[#allocation6 + $0x540] ss:$28 sps:$4 sm:$0xff]   ;;  %v11305_v61 = vld [vmem:[#allocation6 + $0x548] ss:$28 sps:$4 sm:$0xff]  }
 0x2c2   :  { %7055 = vmatprep.subr.bf16.mxu1 %v11229_v62  ;;  %v11310_v62 = vld [vmem:[#allocation6 + $0x57c] ss:$28 sps:$4 sm:$0xff]  }
 0x2c4   :  { %6884 = vmatpush1.bf16.msra.mxu0 %v11224_v57  ;;  %v11313_v57 = vld [vmem:[#allocation6 + $0x584] ss:$28 sps:$4 sm:$0xff]  }
 0x2c5   :  { %7056 = vmatpush1.bf16.msra.mxu1 %v11227_v1  ;;  %6885 = vmatprep.subr.bf16.mxu0 %v11232_v4  ;;  %v11308_v1 = vld [vmem:[#allocation6 + $0x578] ss:$28 sps:$4 sm:$0xff]   ;;  %v11311_v4 = vld [vmem:[#allocation6 + $0x580] ss:$28 sps:$4 sm:$0xff]  }
 0x2c6   :  { %7057 = vmatprep.subr.bf16.mxu1 %v11235_v5  ;;  %v11316_v5 = vld [vmem:[#allocation6 + $0x5b4] ss:$28 sps:$4 sm:$0xff]  }
 0x2c8   :  { %6886 = vmatpush1.bf16.msra.mxu0 %v11230_v9  ;;  %v11319_v9 = vld [vmem:[#allocation6 + $0x5bc] ss:$28 sps:$4 sm:$0xff]  }
 0x2c9   :  { %7058 = vmatpush1.bf16.msra.mxu1 %v11233_v10  ;;  %6887 = vmatprep.subr.bf16.mxu0 %v11238_v12  ;;  %v11314_v10 = vld [vmem:[#allocation6 + $0x5b0] ss:$28 sps:$4 sm:$0xff]   ;;  %v11317_v12 = vld [vmem:[#allocation6 + $0x5b8] ss:$28 sps:$4 sm:$0xff]  }
 0x2ca   :  { %7059 = vmatprep.subr.bf16.mxu1 %v11241_v45  ;;  %v11322_v45 = vld [vmem:[#allocation6 + $0x5ec] ss:$28 sps:$4 sm:$0xff]  }
 0x2cc   :  { %6888 = vmatpush1.bf16.msra.mxu0 %v11236_v13  ;;  %v11325_v13 = vld [vmem:[#allocation6 + $0x5f4] ss:$28 sps:$4 sm:$0xff]  }
 0x2cd   :  { %7060 = vmatpush1.bf16.msra.mxu1 %v11239_v14  ;;  %6889 = vmatprep.subr.bf16.mxu0 %v11244_v16  ;;  %v11320_v14 = vld [vmem:[#allocation6 + $0x5e8] ss:$28 sps:$4 sm:$0xff]   ;;  %v11323_v16 = vld [vmem:[#allocation6 + $0x5f0] ss:$28 sps:$4 sm:$0xff]  }
 0x2ce   :  { %7061 = vmatprep.subr.bf16.mxu1 %v11247_v19  ;;  %v11328_v19 = vld [vmem:[#allocation6 + $0x624] ss:$28 sps:$4 sm:$0xff]  }
 0x2d0   :  { %6890 = vmatpush1.bf16.msra.mxu0 %v11242_v20  ;;  %v11331_v20 = vld [vmem:[#allocation6 + $0x62c] ss:$28 sps:$4 sm:$0xff]  }
 0x2d1   :  { %7062 = vmatpush1.bf16.msra.mxu1 %v11245_v21  ;;  %6891 = vmatprep.subr.bf16.mxu0 %v11250_v53  ;;  %v11326_v21 = vld [vmem:[#allocation6 + $0x620] ss:$28 sps:$4 sm:$0xff]   ;;  %v11329_v53 = vld [vmem:[#allocation6 + $0x628] ss:$28 sps:$4 sm:$0xff]  }
 0x2d2   :  { %7063 = vmatprep.subr.bf16.mxu1 %v11253_v54  ;;  %v11334_v54 = vld [vmem:[#allocation6 + $0x65c] ss:$28 sps:$4 sm:$0xff]  }
 0x2d4   :  { %6892 = vmatpush1.bf16.msra.mxu0 %v11248_v22  ;;  %v11337_v22 = vld [vmem:[#allocation6 + $0x664] ss:$28 sps:$4 sm:$0xff]  }
 0x2d5   :  { %7064 = vmatpush1.bf16.msra.mxu1 %v11251_v23  ;;  %6904 = vmatprep.subr.bf16.mxu0 %v11256_v25  ;;  %v11332_v23 = vld [vmem:[#allocation6 + $0x658] ss:$28 sps:$4 sm:$0xff]   ;;  %v11335_v25 = vld [vmem:[#allocation6 + $0x660] ss:$28 sps:$4 sm:$0xff]  }
 0x2d6   :  { %7076 = vmatprep.subr.bf16.mxu1 %v11259_v26  ;;  %v11340_v26 = vld [vmem:[#allocation6 + $0x694] ss:$28 sps:$4 sm:$0xff]  }
 0x2d7   :  { %6894 = vmatmul.mubr.bf16.vlgmr.msra.gmra.mrb[8].mxu0 %v12643_v2 }
 0x2d8   :  { %7066 = vmatmul.mubr.bf16.vlgmr.msra.gmra.mrb[8].mxu1 %v12643_v2  ;;  %6905 = vmatpush1.bf16.msra.mxu0 %v11254_v28  ;;  %v11343_v28 = vld [vmem:[#allocation6 + $0x69c] ss:$28 sps:$4 sm:$0xff]  }
 0x2d9   :  { %6936 = vmatprep.mubr.bf16.mxu0 %v12649_v43  ;;  %7077 = vmatpush1.bf16.msra.mxu1 %v11257_v31  ;;  %v11338_v31 = vld [vmem:[#allocation6 + $0x690] ss:$28 sps:$4 sm:$0xff]  }
 0x2da   :  { %7108 = vmatprep.mubr.bf16.mxu1 %v12649_v43  ;;  %6906 = vmatprep.subr.bf16.mxu0 %v11262_v3  ;;  %v11341_v3 = vld [vmem:[#allocation6 + $0x698] ss:$28 sps:$4 sm:$0xff]  }
 0x2db   :  { %7078 = vmatprep.subr.bf16.mxu1 %v11265_v32  ;;  %v11346_v32 = vld [vmem:[#allocation6 + $0x6cc] ss:$28 sps:$4 sm:$0xff]  }
 0x2dc   :  { %6907 = vmatpush1.bf16.msra.mxu0 %v11260_v33  ;;  %v11349_v33 = vld [vmem:[#allocation6 + $0x6d4] ss:$28 sps:$4 sm:$0xff]  }
 0x2dd   :  { %7079 = vmatpush1.bf16.msra.mxu1 %v11263_v34  ;;  %6908 = vmatprep.subr.bf16.mxu0 %v11268_v58  ;;  %v11344_v34 = vld [vmem:[#allocation6 + $0x6c8] ss:$28 sps:$4 sm:$0xff]   ;;  %v11347_v58 = vld [vmem:[#allocation6 + $0x6d0] ss:$28 sps:$4 sm:$0xff]  }
 0x2de   :  { %7080 = vmatprep.subr.bf16.mxu1 %v11271_v35  ;;  %v11352_v35 = vld [vmem:[#allocation6 + $0x704] ss:$28 sps:$4 sm:$0xff]  }
 0x2e0   :  { %6909 = vmatpush1.bf16.msra.mxu0 %v11266_v36  ;;  %v11355_v36 = vld [vmem:[#allocation6 + $0x70c] ss:$28 sps:$4 sm:$0xff]  }
 0x2e1   :  { %7081 = vmatpush1.bf16.msra.mxu1 %v11269_v15  ;;  %6910 = vmatprep.subr.bf16.mxu0 %v11274_v37  ;;  %v11350_v15 = vld [vmem:[#allocation6 + $0x700] ss:$28 sps:$4 sm:$0xff]   ;;  %v11353_v37 = vld [vmem:[#allocation6 + $0x708] ss:$28 sps:$4 sm:$0xff]  }
 0x2e2   :  { %7082 = vmatprep.subr.bf16.mxu1 %v11277_v38  ;;  %v11358_v38 = vld [vmem:[#allocation6 + $0x73c] ss:$28 sps:$4 sm:$0xff]  }
 0x2e4   :  { %6911 = vmatpush1.bf16.msra.mxu0 %v11272_v17  ;;  %v11361_v17 = vld [vmem:[#allocation6 + $0x744] ss:$28 sps:$4 sm:$0xff]  }
 0x2e5   :  { %7083 = vmatpush1.bf16.msra.mxu1 %v11275_v18  ;;  %6912 = vmatprep.subr.bf16.mxu0 %v11280_v40  ;;  %v11356_v18 = vld [vmem:[#allocation6 + $0x738] ss:$28 sps:$4 sm:$0xff]   ;;  %v11359_v40 = vld [vmem:[#allocation6 + $0x740] ss:$28 sps:$4 sm:$0xff]  }
 0x2e6   :  { %7084 = vmatprep.subr.bf16.mxu1 %v11283_v41  ;;  %v11364_v41 = vld [vmem:[#allocation6 + $0x774] ss:$28 sps:$4 sm:$0xff]  }
 0x2e8   :  { %6913 = vmatpush1.bf16.msra.mxu0 %v11278_v42  ;;  %v11367_v42 = vld [vmem:[#allocation6 + $0x77c] ss:$28 sps:$4 sm:$0xff]  }
 0x2e9   :  { %7085 = vmatpush1.bf16.msra.mxu1 %v11281_v44  ;;  %6914 = vmatprep.subr.bf16.mxu0 %v11286_v47  ;;  %v11362_v44 = vld [vmem:[#allocation6 + $0x770] ss:$28 sps:$4 sm:$0xff]   ;;  %v11365_v47 = vld [vmem:[#allocation6 + $0x778] ss:$28 sps:$4 sm:$0xff]  }
 0x2ea   :  { %7086 = vmatprep.subr.bf16.mxu1 %v11289_v30  ;;  %v11370_v30 = vld [vmem:[#allocation6 + $0x7ac] ss:$28 sps:$4 sm:$0xff]  }
 0x2ec   :  { %6915 = vmatpush1.bf16.msra.mxu0 %v11284_v48  ;;  %v11373_v48 = vld [vmem:[#allocation6 + $0x7b4] ss:$28 sps:$4 sm:$0xff]  }
 0x2ed   :  { %7087 = vmatpush1.bf16.msra.mxu1 %v11287_v24  ;;  %6916 = vmatprep.subr.bf16.mxu0 %v11292_v49  ;;  %v11368_v24 = vld [vmem:[#allocation6 + $0x7a8] ss:$28 sps:$4 sm:$0xff]   ;;  %v11371_v49 = vld [vmem:[#allocation6 + $0x7b0] ss:$28 sps:$4 sm:$0xff]  }
 0x2ee   :  { %7088 = vmatprep.subr.bf16.mxu1 %v11295_v50  ;;  %v11376_v50 = vld [vmem:[#allocation6 + $0x7e4] ss:$28 sps:$4 sm:$0xff]  }
 0x2f0   :  { %6917 = vmatpush1.bf16.msra.mxu0 %v11290_v51  ;;  %v11379_v51 = vld [vmem:[#allocation6 + $0x7ec] ss:$28 sps:$4 sm:$0xff]  }
 0x2f1   :  { %7089 = vmatpush1.bf16.msra.mxu1 %v11293_v52  ;;  %6918 = vmatprep.subr.bf16.mxu0 %v11298_v46  ;;  %v11374_v52 = vld [vmem:[#allocation6 + $0x7e0] ss:$28 sps:$4 sm:$0xff]   ;;  %v11377_v46 = vld [vmem:[#allocation6 + $0x7e8] ss:$28 sps:$4 sm:$0xff]  }
 0x2f2   :  { %7090 = vmatprep.subr.bf16.mxu1 %v11301_v55  ;;  %v11382_v55 = vld [vmem:[#allocation6 + $0x81c] ss:$28 sps:$4 sm:$0xff]  }
 0x2f4   :  { %6919 = vmatpush1.bf16.msra.mxu0 %v11296_v56  ;;  %v11385_v56 = vld [vmem:[#allocation6 + $0x824] ss:$28 sps:$4 sm:$0xff]  }
 0x2f5   :  { %7091 = vmatpush1.bf16.msra.mxu1 %v11299_v27  ;;  %6920 = vmatprep.subr.bf16.mxu0 %v11304_v29  ;;  %v11380_v27 = vld [vmem:[#allocation6 + $0x818] ss:$28 sps:$4 sm:$0xff]   ;;  %v11383_v29 = vld [vmem:[#allocation6 + $0x820] ss:$28 sps:$4 sm:$0xff]  }
 0x2f6   :  { %7092 = vmatprep.subr.bf16.mxu1 %v11307_v59  ;;  %v11388_v59 = vld [vmem:[#allocation6 + $0x854] ss:$28 sps:$4 sm:$0xff]  }
 0x2f8   :  { %6921 = vmatpush1.bf16.msra.mxu0 %v11302_v60  ;;  %v11391_v60 = vld [vmem:[#allocation6 + $0x85c] ss:$28 sps:$4 sm:$0xff]  }
 0x2f9   :  { %7093 = vmatpush1.bf16.msra.mxu1 %v11305_v61  ;;  %6922 = vmatprep.subr.bf16.mxu0 %v11310_v62  ;;  %v11386_v61 = vld [vmem:[#allocation6 + $0x850] ss:$28 sps:$4 sm:$0xff]   ;;  %v11389_v62 = vld [vmem:[#allocation6 + $0x858] ss:$28 sps:$4 sm:$0xff]  }
 0x2fa   :  { %7094 = vmatprep.subr.bf16.mxu1 %v11313_v57  ;;  %v11394_v57 = vld [vmem:[#allocation6 + $0x88c] ss:$28 sps:$4 sm:$0xff]  }
 0x2fc   :  { %6923 = vmatpush1.bf16.msra.mxu0 %v11308_v1  ;;  %v11397_v1 = vld [vmem:[#allocation6 + $0x894] ss:$28 sps:$4 sm:$0xff]  }
 0x2fd   :  { %7095 = vmatpush1.bf16.msra.mxu1 %v11311_v4  ;;  %6924 = vmatprep.subr.bf16.mxu0 %v11316_v5  ;;  %v11392_v4 = vld [vmem:[#allocation6 + $0x888] ss:$28 sps:$4 sm:$0xff]   ;;  %v11395_v5 = vld [vmem:[#allocation6 + $0x890] ss:$28 sps:$4 sm:$0xff]  }
 0x2fe   :  { %7096 = vmatprep.subr.bf16.mxu1 %v11319_v9  ;;  %v11400_v9 = vld [vmem:[#allocation6 + $0x8c4] ss:$28 sps:$4 sm:$0xff]  }
 0x300   :  { %6925 = vmatpush1.bf16.msra.mxu0 %v11314_v10  ;;  %v11403_v10 = vld [vmem:[#allocation6 + $0x8cc] ss:$28 sps:$4 sm:$0xff]  }
 0x301   :  { %7097 = vmatpush1.bf16.msra.mxu1 %v11317_v12  ;;  %6926 = vmatprep.subr.bf16.mxu0 %v11322_v45  ;;  %v11398_v12 = vld [vmem:[#allocation6 + $0x8c0] ss:$28 sps:$4 sm:$0xff]   ;;  %v11401_v45 = vld [vmem:[#allocation6 + $0x8c8] ss:$28 sps:$4 sm:$0xff]  }
 0x302   :  { %7098 = vmatprep.subr.bf16.mxu1 %v11325_v13  ;;  %v11406_v13 = vld [vmem:[#allocation6 + $0x8fc] ss:$28 sps:$4 sm:$0xff]  }
 0x304   :  { %6927 = vmatpush1.bf16.msra.mxu0 %v11320_v14  ;;  %v11409_v14 = vld [vmem:[#allocation6 + $0x904] ss:$28 sps:$4 sm:$0xff]  }
 0x305   :  { %7099 = vmatpush1.bf16.msra.mxu1 %v11323_v16  ;;  %6928 = vmatprep.subr.bf16.mxu0 %v11328_v19  ;;  %v11404_v16 = vld [vmem:[#allocation6 + $0x8f8] ss:$28 sps:$4 sm:$0xff]   ;;  %v11407_v19 = vld [vmem:[#allocation6 + $0x900] ss:$28 sps:$4 sm:$0xff]  }
 0x306   :  { %7100 = vmatprep.subr.bf16.mxu1 %v11331_v20  ;;  %v11412_v20 = vld [vmem:[#allocation6 + $0x934] ss:$28 sps:$4 sm:$0xff]  }
 0x308   :  { %6929 = vmatpush1.bf16.msra.mxu0 %v11326_v21  ;;  %v11415_v21 = vld [vmem:[#allocation6 + $0x93c] ss:$28 sps:$4 sm:$0xff]  }
 0x309   :  { %7101 = vmatpush1.bf16.msra.mxu1 %v11329_v53  ;;  %6930 = vmatprep.subr.bf16.mxu0 %v11334_v54  ;;  %v11410_v53 = vld [vmem:[#allocation6 + $0x930] ss:$28 sps:$4 sm:$0xff]   ;;  %v11413_v54 = vld [vmem:[#allocation6 + $0x938] ss:$28 sps:$4 sm:$0xff]  }
 0x30a   :  { %7102 = vmatprep.subr.bf16.mxu1 %v11337_v22  ;;  %v11418_v22 = vld [vmem:[#allocation6 + $0x96c] ss:$28 sps:$4 sm:$0xff]  }
 0x30c   :  { %6931 = vmatpush1.bf16.msra.mxu0 %v11332_v23  ;;  %v11421_v23 = vld [vmem:[#allocation6 + $0x974] ss:$28 sps:$4 sm:$0xff]  }
 0x30d   :  { %7103 = vmatpush1.bf16.msra.mxu1 %v11335_v25  ;;  %6932 = vmatprep.subr.bf16.mxu0 %v11340_v26  ;;  %v11416_v25 = vld [vmem:[#allocation6 + $0x968] ss:$28 sps:$4 sm:$0xff]   ;;  %v11419_v26 = vld [vmem:[#allocation6 + $0x970] ss:$28 sps:$4 sm:$0xff]  }
 0x30e   :  { %7104 = vmatprep.subr.bf16.mxu1 %v11343_v28  ;;  %v11424_v28 = vld [vmem:[#allocation6 + $0x9a4] ss:$28 sps:$4 sm:$0xff]  }
 0x310   :  { %6933 = vmatpush1.bf16.msra.mxu0 %v11338_v31  ;;  %v11427_v31 = vld [vmem:[#allocation6 + $0x9ac] ss:$28 sps:$4 sm:$0xff]  }
 0x311   :  { %7105 = vmatpush1.bf16.msra.mxu1 %v11341_v3  ;;  %6934 = vmatprep.subr.bf16.mxu0 %v11346_v32  ;;  %v11422_v3 = vld [vmem:[#allocation6 + $0x9a0] ss:$28 sps:$4 sm:$0xff]   ;;  %v11425_v32 = vld [vmem:[#allocation6 + $0x9a8] ss:$28 sps:$4 sm:$0xff]  }
 0x312   :  { %7106 = vmatprep.subr.bf16.mxu1 %v11349_v33  ;;  %v11430_v33 = vld [vmem:[#allocation6 + $0x9dc] ss:$28 sps:$4 sm:$0xff]  }
 0x314   :  { %6935 = vmatpush1.bf16.msra.mxu0 %v11344_v34  ;;  %v11433_v34 = vld [vmem:[#allocation6 + $0x9e4] ss:$28 sps:$4 sm:$0xff]  }
 0x315   :  { %7107 = vmatpush1.bf16.msra.mxu1 %v11347_v58  ;;  %6947 = vmatprep.subr.bf16.mxu0 %v11352_v35  ;;  %v11428_v58 = vld [vmem:[#allocation6 + $0x9d8] ss:$28 sps:$4 sm:$0xff]   ;;  %v11431_v35 = vld [vmem:[#allocation6 + $0x9e0] ss:$28 sps:$4 sm:$0xff]  }
 0x316   :  { %7119 = vmatprep.subr.bf16.mxu1 %v11355_v36  ;;  %v11436_v36 = vld [vmem:[#allocation6 + $0xa14] ss:$28 sps:$4 sm:$0xff]  }
 0x317   :  { %6937 = vmatmul.mubr.bf16.vlgmr.msra.gmra.mrb[8].mxu0 %v12645_v6 }
 0x318   :  { %7109 = vmatmul.mubr.bf16.vlgmr.msra.gmra.mrb[8].mxu1 %v12645_v6  ;;  %6948 = vmatpush1.bf16.msra.mxu0 %v11350_v15  ;;  %v11439_v15 = vld [vmem:[#allocation6 + $0xa1c] ss:$28 sps:$4 sm:$0xff]  }
 0x319   :  { %7120 = vmatpush1.bf16.msra.mxu1 %v11353_v37  ;;  %6949 = vmatprep.subr.bf16.mxu0 %v11358_v38  ;;  %v11434_v37 = vld [vmem:[#allocation6 + $0xa10] ss:$28 sps:$4 sm:$0xff]   ;;  %v11437_v38 = vld [vmem:[#allocation6 + $0xa18] ss:$28 sps:$4 sm:$0xff]  }
 0x31a   :  { %7121 = vmatprep.subr.bf16.mxu1 %v11361_v17  ;;  %v11442_v17 = vld [vmem:[#allocation6 + $0xa4c] ss:$28 sps:$4 sm:$0xff]  }
 0x31c   :  { %6950 = vmatpush1.bf16.msra.mxu0 %v11356_v18  ;;  %v11445_v18 = vld [vmem:[#allocation6 + $0xa54] ss:$28 sps:$4 sm:$0xff]  }
 0x31d   :  { %7122 = vmatpush1.bf16.msra.mxu1 %v11359_v40  ;;  %6951 = vmatprep.subr.bf16.mxu0 %v11364_v41  ;;  %v11440_v40 = vld [vmem:[#allocation6 + $0xa48] ss:$28 sps:$4 sm:$0xff]   ;;  %v11443_v41 = vld [vmem:[#allocation6 + $0xa50] ss:$28 sps:$4 sm:$0xff]  }
 0x31e   :  { %7123 = vmatprep.subr.bf16.mxu1 %v11367_v42  ;;  %v11448_v42 = vld [vmem:[#allocation6 + $0xa84] ss:$28 sps:$4 sm:$0xff]  }
 0x320   :  { %6952 = vmatpush1.bf16.msra.mxu0 %v11362_v44  ;;  %v11451_v44 = vld [vmem:[#allocation6 + $0xa8c] ss:$28 sps:$4 sm:$0xff]  }
 0x321   :  { %7124 = vmatpush1.bf16.msra.mxu1 %v11365_v47  ;;  %6953 = vmatprep.subr.bf16.mxu0 %v11370_v30  ;;  %v674_v47 = vsub.s32 4, %v12625_v39  ;;  %v682_v30 = vsub.s32 6, %v12625_v39 }
 0x322   :  { %7125 = vmatprep.subr.bf16.mxu1 %v11373_v48  ;;  %v678_v48 = vsub.s32 5, %v12625_v39 }
 0x324   :  { %6954 = vmatpush1.bf16.msra.mxu0 %v11368_v24  ;;  %v686_v24 = vsub.s32 7, %v12625_v39  ;;  %v12089_v39 = vld [vmem:[#allocation9 + $0x620] ss:$16 sps:$4 sm:$0xff]  }
 0x325   :  { %7126 = vmatpush1.bf16.msra.mxu1 %v11371_v49  ;;  %6955 = vmatprep.subr.bf16.mxu0 %v11376_v50  ;;  %v12166_v49 = vld [vmem:[#allocation4] sm:$0xff] }
 0x326   :  { %7127 = vmatprep.subr.bf16.mxu1 %v11379_v51  ;;  %v675_v50 = vrot.slane %v12166_v49, %v674_v47  ;;  %v683_v51 = vrot.slane %v12166_v49, %v682_v30 }
 0x328   :  { %6956 = vmatpush1.bf16.msra.mxu0 %v11374_v52  ;;  %v679_v52 = vrot.slane %v12166_v49, %v678_v48 }
 0x329   :  { %7128 = vmatpush1.bf16.msra.mxu1 %v11377_v46  ;;  %6957 = vmatprep.subr.bf16.mxu0 %v11382_v55  ;;  %v687_v46 = vrot.slane %v12166_v49, %v686_v24  ;;  %v11478_v24 = vld [vmem:[#allocation6 + $0xb9c] ss:$28 sps:$4 sm:$0xff]   ;;  %v11481_v49 = vld [vmem:[#allocation6 + $0xba4] ss:$28 sps:$4 sm:$0xff]  }
 0x32a   :  { %7129 = vmatprep.subr.bf16.mxu1 %v11385_v56 }
 0x32c   :  { %6958 = vmatpush1.bf16.msra.mxu0 %v11380_v27 }
 0x32d   :  { %7130 = vmatpush1.bf16.msra.mxu1 %v11383_v29  ;;  %6959 = vmatprep.subr.bf16.mxu0 %v11388_v59 }
 0x32e   :  { %7131 = vmatprep.subr.bf16.mxu1 %v11391_v60 }
 0x330   :  { %6960 = vmatpush1.bf16.msra.mxu0 %v11386_v61 }
 0x331   :  { %7132 = vmatpush1.bf16.msra.mxu1 %v11389_v62  ;;  %6961 = vmatprep.subr.bf16.mxu0 %v11394_v57 }
 0x332   :  { %7133 = vmatprep.subr.bf16.mxu1 %v11397_v1 }
 0x334   :  { %6962 = vmatpush1.bf16.msra.mxu0 %v11392_v4 }
 0x335   :  { %7134 = vmatpush1.bf16.msra.mxu1 %v11395_v5  ;;  %6963 = vmatprep.subr.bf16.mxu0 %v11400_v9 }
 0x336   :  { %7135 = vmatprep.subr.bf16.mxu1 %v11403_v10 }
 0x338   :  { %6964 = vmatpush1.bf16.msra.mxu0 %v11398_v12 }
 0x339   :  { %7136 = vmatpush1.bf16.msra.mxu1 %v11401_v45  ;;  %6965 = vmatprep.subr.bf16.mxu0 %v11406_v13 }
 0x33a   :  { %7137 = vmatprep.subr.bf16.mxu1 %v11409_v14 }
 0x33c   :  { %6966 = vmatpush1.bf16.msra.mxu0 %v11404_v16 }
 0x33d   :  { %7138 = vmatpush1.bf16.msra.mxu1 %v11407_v19  ;;  %6967 = vmatprep.subr.bf16.mxu0 %v11412_v20 }
 0x33e   :  { %7139 = vmatprep.subr.bf16.mxu1 %v11415_v21 }
 0x340   :  { %6968 = vmatpush1.bf16.msra.mxu0 %v11410_v53 }
 0x341   :  { %7140 = vmatpush1.bf16.msra.mxu1 %v11413_v54  ;;  %6969 = vmatprep.subr.bf16.mxu0 %v11418_v22 }
 0x342   :  { %7141 = vmatprep.subr.bf16.mxu1 %v11421_v23 }
 0x344   :  { %6970 = vmatpush1.bf16.msra.mxu0 %v11416_v25 }
 0x345   :  { %7142 = vmatpush1.bf16.msra.mxu1 %v11419_v26  ;;  %6971 = vmatprep.subr.bf16.mxu0 %v11424_v28  ;;  %v11446_v26 = vld [vmem:[#allocation6 + $0xa80] ss:$28 sps:$4 sm:$0xff]   ;;  %v11449_v28 = vld [vmem:[#allocation6 + $0xa88] ss:$28 sps:$4 sm:$0xff]  }
 0x346   :  { %7143 = vmatprep.subr.bf16.mxu1 %v11427_v31 }
 0x348   :  { %6972 = vmatpush1.bf16.msra.mxu0 %v11422_v3  ;;  %v11454_v3 = vld [vmem:[#allocation6 + $0xabc] ss:$28 sps:$4 sm:$0xff]  }
 0x349   :  { %7144 = vmatpush1.bf16.msra.mxu1 %v11425_v32  ;;  %6973 = vmatprep.subr.bf16.mxu0 %v11430_v33  ;;  %v11457_v32 = vld [vmem:[#allocation6 + $0xac4] ss:$28 sps:$4 sm:$0xff]   ;;  %v11452_v33 = vld [vmem:[#allocation6 + $0xab8] ss:$28 sps:$4 sm:$0xff]  }
 0x34a   :  { %7145 = vmatprep.subr.bf16.mxu1 %v11433_v34  ;;  %v11455_v34 = vld [vmem:[#allocation6 + $0xac0] ss:$28 sps:$4 sm:$0xff]  }
 0x34c   :  { %6974 = vmatpush1.bf16.msra.mxu0 %v11428_v58  ;;  %v11460_v58 = vld [vmem:[#allocation6 + $0xaf4] ss:$28 sps:$4 sm:$0xff]  }
 0x34d   :  { %7146 = vmatpush1.bf16.msra.mxu1 %v11431_v35  ;;  %6975 = vmatprep.subr.bf16.mxu0 %v11436_v36  ;;  %v11463_v35 = vld [vmem:[#allocation6 + $0xafc] ss:$28 sps:$4 sm:$0xff]   ;;  %v11458_v36 = vld [vmem:[#allocation6 + $0xaf0] ss:$28 sps:$4 sm:$0xff]  }
 0x34e   :  { %7147 = vmatprep.subr.bf16.mxu1 %v11439_v15  ;;  %v11461_v15 = vld [vmem:[#allocation6 + $0xaf8] ss:$28 sps:$4 sm:$0xff]  }
 0x350   :  { %6976 = vmatpush1.bf16.msra.mxu0 %v11434_v37  ;;  %v11466_v37 = vld [vmem:[#allocation6 + $0xb2c] ss:$28 sps:$4 sm:$0xff]  }
 0x351   :  { %7148 = vmatpush1.bf16.msra.mxu1 %v11437_v38  ;;  %6977 = vmatprep.subr.bf16.mxu0 %v11442_v17  ;;  %v11469_v38 = vld [vmem:[#allocation6 + $0xb34] ss:$28 sps:$4 sm:$0xff]   ;;  %v11464_v17 = vld [vmem:[#allocation6 + $0xb28] ss:$28 sps:$4 sm:$0xff]  }
 0x352   :  { %7149 = vmatprep.subr.bf16.mxu1 %v11445_v18  ;;  %v11467_v18 = vld [vmem:[#allocation6 + $0xb30] ss:$28 sps:$4 sm:$0xff]  }
 0x354   :  { %6978 = vmatpush1.bf16.msra.mxu0 %v11440_v40  ;;  %v11472_v40 = vld [vmem:[#allocation6 + $0xb64] ss:$28 sps:$4 sm:$0xff]  }
 0x355   :  { %7150 = vmatpush1.bf16.msra.mxu1 %v11443_v41  ;;  %6990 = vmatprep.subr.bf16.mxu0 %v11448_v42  ;;  %v11475_v41 = vld [vmem:[#allocation6 + $0xb6c] ss:$28 sps:$4 sm:$0xff]   ;;  %v11470_v42 = vld [vmem:[#allocation6 + $0xb60] ss:$28 sps:$4 sm:$0xff]  }
 0x356   :  { %7162 = vmatprep.subr.bf16.mxu1 %v11451_v44  ;;  %v11473_v44 = vld [vmem:[#allocation6 + $0xb68] ss:$28 sps:$4 sm:$0xff]  }
 0x36a   :  { %v3803_v55 = vpop.f32.mrb[4].mxu0  ;;  %v3975_v27 = vpop.f32.mrb[4].mxu1 }
 0x36b   :  { %v11005_v56 = vadd.f32 %v3803_v55, %v675_v50  ;;  %v3805_v29 = vpop.f32.mrb[5].mxu0  ;;  %v11009_v59 = vadd.f32 %v3975_v27, %v683_v51  ;;  %v3977_v61 = vpop.f32.mrb[5].mxu1  ;;  %v11482_v55 = vld [vmem:[#allocation6 + $0xbd0] ss:$28 sps:$4 sm:$0xff]  }
 0x36c   :  { %v11006_v60 = vadd.f32 %v3805_v29, %v679_v52  ;;  %v3807_v62 = vpop.f32.mrb[6].mxu0  ;;  %v11010_v57 = vadd.f32 %v3977_v61, %v687_v46  ;;  %v3979_v4 = vpop.f32.mrb[6].mxu1  ;;  %v11490_v27 = vld [vmem:[#allocation6 + $0xc0c] ss:$28 sps:$4 sm:$0xff]   ;;  %v11493_v29 = vld [vmem:[#allocation6 + $0xc14] ss:$28 sps:$4 sm:$0xff]  }
 0x36d   :  { %v11007_v1 = vadd.f32 %v3807_v62, %v675_v50  ;;  %v3809_v5 = vpop.f32.mrb[7].mxu0  ;;  %v11011_v9 = vadd.f32 %v3979_v4, %v683_v51  ;;  %v3981_v12 = vpop.f32.mrb[7].mxu1  ;;  %v3988_v45 = vmax.f32 %v11005_v56, 0.0  ;;  %v3990_v16 = vmax.f32 %v11009_v59, 0.0  ;;  %v11476_v50 = vld [vmem:[#allocation6 + $0xb98] ss:$28 sps:$4 sm:$0xff]  }
 0x36e   :  { %v11008_v10 = vadd.f32 %v3809_v5, %v679_v52  ;;  %v11012_v14 = vadd.f32 %v3981_v12, %v687_v46  ;;  %v3989_v19 = vmax.f32 %v11006_v60, 0.0  ;;  %v3991_v53 = vmax.f32 %v11010_v57, 0.0  ;;  %v11479_v51 = vld [vmem:[#allocation6 + $0xba0] ss:$28 sps:$4 sm:$0xff]   ;;  %v11484_v52 = vld [vmem:[#allocation6 + $0xbd4] ss:$28 sps:$4 sm:$0xff]  }
 0x36f   :  { %v3996_v13 = vmax.f32 %v11007_v1, 0.0  ;;  %v3998_v20 = vmax.f32 %v11011_v9, 0.0  ;;  %v11487_v46 = vld [vmem:[#allocation6 + $0xbdc] ss:$28 sps:$4 sm:$0xff]   ;;  %v11488_v59 = vld [vmem:[#allocation6 + $0xc08] ss:$28 sps:$4 sm:$0xff]  }
 0x370   :  { %v3997_v21 = vmax.f32 %v11008_v10, 0.0  ;;  %v3999_v22 = vmax.f32 %v11012_v14, 0.0  ;;  %v11485_v56 = vld [vmem:[#allocation6 + $0xbd8] ss:$28 sps:$4 sm:$0xff]   ;;  %v11491_v60 = vld [vmem:[#allocation6 + $0xc10] ss:$28 sps:$4 sm:$0xff]  }
 0x371   :  { %v12671_v54 = vpack.c.bf16 %v3996_v13, %v3988_v45  ;;  %v12673_v23 = vpack.c.bf16 %v3998_v20, %v3990_v16  ;;  %v11496_v61 = vld [vmem:[#allocation6 + $0xc44] ss:$28 sps:$4 sm:$0xff]   ;;  %v11499_v62 = vld [vmem:[#allocation6 + $0xc4c] ss:$28 sps:$4 sm:$0xff]   ;;  %v11502_v4 = vld [vmem:[#allocation6 + $0xc7c] ss:$28 sps:$4 sm:$0xff]  }
 0x372   :  { %v12675_v25 = vpack.c.bf16 %v3997_v21, %v3989_v19  ;;  %v12677_v31 = vpack.c.bf16 %v3999_v22, %v3991_v53  ;;  %v11494_v57 = vld [vmem:[#allocation6 + $0xc40] ss:$28 sps:$4 sm:$0xff]   ;;  %v11497_v1 = vld [vmem:[#allocation6 + $0xc48] ss:$28 sps:$4 sm:$0xff]   ;;  %v11500_v9 = vld [vmem:[#allocation6 + $0xc78] ss:$28 sps:$4 sm:$0xff]  }
 0x373   :  { %v11505_v5 = vld [vmem:[#allocation6 + $0xc84] ss:$28 sps:$4 sm:$0xff]   ;;  %v11508_v12 = vld [vmem:[#allocation6 + $0xcb4] ss:$28 sps:$4 sm:$0xff]   ;;  %v11511_v45 = vld [vmem:[#allocation6 + $0xcbc] ss:$28 sps:$4 sm:$0xff]  }
 0x374   :  { %6979 = vmatprep.mubr.bf16.mxu0 %v12675_v25  ;;  %7151 = vmatprep.mubr.bf16.mxu1 %v12675_v25  ;;  %v11503_v10 = vld [vmem:[#allocation6 + $0xc80] ss:$28 sps:$4 sm:$0xff]   ;;  %v11506_v13 = vld [vmem:[#allocation6 + $0xcb0] ss:$28 sps:$4 sm:$0xff]   ;;  %v11509_v14 = vld [vmem:[#allocation6 + $0xcb8] ss:$28 sps:$4 sm:$0xff]  }
 0x375   :  { %6980 = vmatmul.mubr.bf16.vlgmr.msra.gmra.mrb[8].mxu0 %v12671_v54  ;;  %7152 = vmatmul.mubr.bf16.vlgmr.msra.gmra.mrb[8].mxu1 %v12671_v54  ;;  %v11514_v16 = vld [vmem:[#allocation6 + $0xcec] ss:$28 sps:$4 sm:$0xff]   ;;  %v11517_v19 = vld [vmem:[#allocation6 + $0xcf4] ss:$28 sps:$4 sm:$0xff]   ;;  %v11520_v53 = vld [vmem:[#allocation6 + $0xd24] ss:$28 sps:$4 sm:$0xff]  }
 0x376   :  { %6991 = vmatpush1.bf16.msra.mxu0 %v11446_v26  ;;  %7163 = vmatpush1.bf16.msra.mxu1 %v11449_v28  ;;  %v11512_v20 = vld [vmem:[#allocation6 + $0xce8] ss:$28 sps:$4 sm:$0xff]   ;;  %v11515_v21 = vld [vmem:[#allocation6 + $0xcf0] ss:$28 sps:$4 sm:$0xff]   ;;  %v11518_v26 = vld [vmem:[#allocation6 + $0xd20] ss:$28 sps:$4 sm:$0xff]  }
 0x377   :  { %7022 = vmatprep.mubr.bf16.mxu0 %v12677_v31  ;;  %7194 = vmatprep.mubr.bf16.mxu1 %v12677_v31  ;;  %v11523_v22 = vld [vmem:[#allocation6 + $0xd2c] ss:$28 sps:$4 sm:$0xff]  }
 0x378   :  { %6992 = vmatprep.subr.bf16.mxu0 %v11454_v3  ;;  %7164 = vmatprep.subr.bf16.mxu1 %v11457_v32  ;;  %v11521_v28 = vld [vmem:[#allocation6 + $0xd28] ss:$28 sps:$4 sm:$0xff]   ;;  %v11526_v3 = vld [vmem:[#allocation6 + $0xd5c] ss:$28 sps:$4 sm:$0xff]  }
 0x379   :  { %v11529_v32 = vld [vmem:[#allocation6 + $0xd64] ss:$28 sps:$4 sm:$0xff]  }
 0x37a   :  { %6993 = vmatpush1.bf16.msra.mxu0 %v11452_v33  ;;  %7165 = vmatpush1.bf16.msra.mxu1 %v11455_v34  ;;  %v11524_v33 = vld [vmem:[#allocation6 + $0xd58] ss:$28 sps:$4 sm:$0xff]   ;;  %v11527_v34 = vld [vmem:[#allocation6 + $0xd60] ss:$28 sps:$4 sm:$0xff]  }
 0x37b   :  { %6994 = vmatprep.subr.bf16.mxu0 %v11460_v58  ;;  %7166 = vmatprep.subr.bf16.mxu1 %v11463_v35  ;;  %v11532_v58 = vld [vmem:[#allocation6 + $0xd94] ss:$28 sps:$4 sm:$0xff]   ;;  %v11535_v35 = vld [vmem:[#allocation6 + $0xd9c] ss:$28 sps:$4 sm:$0xff]  }
 0x37e   :  { %6995 = vmatpush1.bf16.msra.mxu0 %v11458_v36  ;;  %7167 = vmatpush1.bf16.msra.mxu1 %v11461_v15  ;;  %v11530_v36 = vld [vmem:[#allocation6 + $0xd90] ss:$28 sps:$4 sm:$0xff]   ;;  %v11533_v15 = vld [vmem:[#allocation6 + $0xd98] ss:$28 sps:$4 sm:$0xff]  }
 0x37f   :  { %6996 = vmatprep.subr.bf16.mxu0 %v11466_v37  ;;  %7168 = vmatprep.subr.bf16.mxu1 %v11469_v38  ;;  %v11538_v37 = vld [vmem:[#allocation6 + $0xdcc] ss:$28 sps:$4 sm:$0xff]   ;;  %v11541_v38 = vld [vmem:[#allocation6 + $0xdd4] ss:$28 sps:$4 sm:$0xff]  }
 0x382   :  { %6997 = vmatpush1.bf16.msra.mxu0 %v11464_v17  ;;  %7169 = vmatpush1.bf16.msra.mxu1 %v11467_v18  ;;  %v11536_v17 = vld [vmem:[#allocation6 + $0xdc8] ss:$28 sps:$4 sm:$0xff]   ;;  %v11539_v18 = vld [vmem:[#allocation6 + $0xdd0] ss:$28 sps:$4 sm:$0xff]  }
 0x383   :  { %6998 = vmatprep.subr.bf16.mxu0 %v11472_v40  ;;  %7170 = vmatprep.subr.bf16.mxu1 %v11475_v41  ;;  %v11544_v40 = vld [vmem:[#allocation6 + $0x14] ss:$28 sps:$4 sm:$0xff]  }
 0x384   :  { %v11545_v41 = vld [vmem:[#allocation6 + $0x1d8] ss:$28 sps:$4 sm:$0xff]  }
 0x386   :  { %6999 = vmatpush1.bf16.msra.mxu0 %v11470_v42  ;;  %7171 = vmatpush1.bf16.msra.mxu1 %v11473_v44  ;;  %v11542_v42 = vld [vmem:[#allocation6 + $0x10] ss:$28 sps:$4 sm:$0xff]   ;;  %v11546_v44 = vld [vmem:[#allocation6 + $0x18] ss:$28 sps:$4 sm:$0xff]  }
 0x387   :  { %7000 = vmatprep.subr.bf16.mxu0 %v11478_v24  ;;  %7172 = vmatprep.subr.bf16.mxu1 %v11481_v49  ;;  %v11549_v24 = vld [vmem:[#allocation6 + $0x4c] ss:$28 sps:$4 sm:$0xff]  }
 0x388   :  { %v11550_v49 = vld [vmem:[#allocation6 + $0x210] ss:$28 sps:$4 sm:$0xff]  }
 0x38a   :  { %7001 = vmatpush1.bf16.msra.mxu0 %v11476_v50  ;;  %7173 = vmatpush1.bf16.msra.mxu1 %v11479_v51  ;;  %v11547_v50 = vld [vmem:[#allocation6 + $0x48] ss:$28 sps:$4 sm:$0xff]   ;;  %v11551_v51 = vld [vmem:[#allocation6 + $0x50] ss:$28 sps:$4 sm:$0xff]  }
 0x38b   :  { %7002 = vmatprep.subr.bf16.mxu0 %v11484_v52  ;;  %7174 = vmatprep.subr.bf16.mxu1 %v11487_v46  ;;  %v11554_v52 = vld [vmem:[#allocation6 + $0x84] ss:$28 sps:$4 sm:$0xff]  }
 0x38c   :  { %v11555_v46 = vld [vmem:[#allocation6 + $0x248] ss:$28 sps:$4 sm:$0xff]  }
 0x38e   :  { %7003 = vmatpush1.bf16.msra.mxu0 %v11482_v55  ;;  %7175 = vmatpush1.bf16.msra.mxu1 %v11485_v56  ;;  %v11552_v55 = vld [vmem:[#allocation6 + $0x80] ss:$28 sps:$4 sm:$0xff]   ;;  %v11556_v56 = vld [vmem:[#allocation6 + $0x88] ss:$28 sps:$4 sm:$0xff]  }
 0x38f   :  { %7004 = vmatprep.subr.bf16.mxu0 %v11490_v27  ;;  %7176 = vmatprep.subr.bf16.mxu1 %v11493_v29  ;;  %v11559_v27 = vld [vmem:[#allocation6 + $0xbc] ss:$28 sps:$4 sm:$0xff]  }
 0x390   :  { %v11560_v29 = vld [vmem:[#allocation6 + $0x280] ss:$28 sps:$4 sm:$0xff]  }
 0x392   :  { %7005 = vmatpush1.bf16.msra.mxu0 %v11488_v59  ;;  %7177 = vmatpush1.bf16.msra.mxu1 %v11491_v60  ;;  %v11557_v59 = vld [vmem:[#allocation6 + $0xb8] ss:$28 sps:$4 sm:$0xff]   ;;  %v11561_v60 = vld [vmem:[#allocation6 + $0xc0] ss:$28 sps:$4 sm:$0xff]  }
 0x393   :  { %7006 = vmatprep.subr.bf16.mxu0 %v11496_v61  ;;  %7178 = vmatprep.subr.bf16.mxu1 %v11499_v62  ;;  %v11564_v61 = vld [vmem:[#allocation6 + $0xf4] ss:$28 sps:$4 sm:$0xff]  }
 0x394   :  { %v11562_v62 = vld [vmem:[#allocation6 + $0xf0] ss:$28 sps:$4 sm:$0xff]  }
 0x396   :  { %7007 = vmatpush1.bf16.msra.mxu0 %v11494_v57  ;;  %7179 = vmatpush1.bf16.msra.mxu1 %v11497_v1  ;;  %v11566_v57 = vld [vmem:[#allocation6 + $0xf8] ss:$28 sps:$4 sm:$0xff]   ;;  %v11569_v1 = vld [vmem:[#allocation6 + $0x12c] ss:$28 sps:$4 sm:$0xff]  }
 0x397   :  { %7008 = vmatprep.subr.bf16.mxu0 %v11502_v4  ;;  %7180 = vmatprep.subr.bf16.mxu1 %v11505_v5  ;;  %v11570_v4 = vld [vmem:[#allocation6 + $0x2f0] ss:$28 sps:$4 sm:$0xff]   ;;  %v11567_v5 = vld [vmem:[#allocation6 + $0x128] ss:$28 sps:$4 sm:$0xff]  }
 0x39a   :  { %7009 = vmatpush1.bf16.msra.mxu0 %v11500_v9  ;;  %7181 = vmatpush1.bf16.msra.mxu1 %v11503_v10  ;;  %v11571_v9 = vld [vmem:[#allocation6 + $0x130] ss:$28 sps:$4 sm:$0xff]   ;;  %v11574_v10 = vld [vmem:[#allocation6 + $0x164] ss:$28 sps:$4 sm:$0xff]  }
 0x39b   :  { %7010 = vmatprep.subr.bf16.mxu0 %v11508_v12  ;;  %7182 = vmatprep.subr.bf16.mxu1 %v11511_v45  ;;  %v11575_v12 = vld [vmem:[#allocation6 + $0x328] ss:$28 sps:$4 sm:$0xff]   ;;  %v11572_v45 = vld [vmem:[#allocation6 + $0x160] ss:$28 sps:$4 sm:$0xff]  }
 0x39e   :  { %7011 = vmatpush1.bf16.msra.mxu0 %v11506_v13  ;;  %7183 = vmatpush1.bf16.msra.mxu1 %v11509_v14  ;;  %v11576_v13 = vld [vmem:[#allocation6 + $0x168] ss:$28 sps:$4 sm:$0xff]   ;;  %v11579_v14 = vld [vmem:[#allocation6 + $0x19c] ss:$28 sps:$4 sm:$0xff]  }
 0x39f   :  { %7012 = vmatprep.subr.bf16.mxu0 %v11514_v16  ;;  %7184 = vmatprep.subr.bf16.mxu1 %v11517_v19  ;;  %v11580_v16 = vld [vmem:[#allocation6 + $0x360] ss:$28 sps:$4 sm:$0xff]   ;;  %v11577_v19 = vld [vmem:[#allocation6 + $0x198] ss:$28 sps:$4 sm:$0xff]  }
 0x3a2   :  { %7013 = vmatpush1.bf16.msra.mxu0 %v11512_v20  ;;  %7185 = vmatpush1.bf16.msra.mxu1 %v11515_v21  ;;  %v11581_v20 = vld [vmem:[#allocation6 + $0x1a0] ss:$28 sps:$4 sm:$0xff]   ;;  %v11584_v21 = vld [vmem:[#allocation6 + $0x1d4] ss:$28 sps:$4 sm:$0xff]  }
 0x3a3   :  { %7014 = vmatprep.subr.bf16.mxu0 %v11520_v53  ;;  %7186 = vmatprep.subr.bf16.mxu1 %v11523_v22  ;;  %v11585_v53 = vld [vmem:[#allocation6 + $0x558] ss:$28 sps:$4 sm:$0xff]   ;;  %v11582_v22 = vld [vmem:[#allocation6 + $0x1d0] ss:$28 sps:$4 sm:$0xff]  }
 0x3a6   :  { %7015 = vmatpush1.bf16.msra.mxu0 %v11518_v26  ;;  %7187 = vmatpush1.bf16.msra.mxu1 %v11521_v28  ;;  %v11586_v26 = vld [vmem:[#allocation6 + $0x398] ss:$28 sps:$4 sm:$0xff]   ;;  %v11589_v28 = vld [vmem:[#allocation6 + $0x20c] ss:$28 sps:$4 sm:$0xff]  }
 0x3a7   :  { %7016 = vmatprep.subr.bf16.mxu0 %v11526_v3  ;;  %7188 = vmatprep.subr.bf16.mxu1 %v11529_v32  ;;  %v11590_v3 = vld [vmem:[#allocation6 + $0x590] ss:$28 sps:$4 sm:$0xff]   ;;  %v11587_v32 = vld [vmem:[#allocation6 + $0x208] ss:$28 sps:$4 sm:$0xff]  }
 0x3aa   :  { %7017 = vmatpush1.bf16.msra.mxu0 %v11524_v33  ;;  %7189 = vmatpush1.bf16.msra.mxu1 %v11527_v34  ;;  %v11591_v33 = vld [vmem:[#allocation6 + $0x3d0] ss:$28 sps:$4 sm:$0xff]   ;;  %v11594_v34 = vld [vmem:[#allocation6 + $0x244] ss:$28 sps:$4 sm:$0xff]  }
 0x3ab   :  { %7018 = vmatprep.subr.bf16.mxu0 %v11532_v58  ;;  %7190 = vmatprep.subr.bf16.mxu1 %v11535_v35  ;;  %v11595_v58 = vld [vmem:[#allocation6 + $0x5c8] ss:$28 sps:$4 sm:$0xff]   ;;  %v11592_v35 = vld [vmem:[#allocation6 + $0x240] ss:$28 sps:$4 sm:$0xff]  }
 0x3ae   :  { %7019 = vmatpush1.bf16.msra.mxu0 %v11530_v36  ;;  %7191 = vmatpush1.bf16.msra.mxu1 %v11533_v15  ;;  %v11596_v36 = vld [vmem:[#allocation6 + $0x408] ss:$28 sps:$4 sm:$0xff]   ;;  %v11599_v15 = vld [vmem:[#allocation6 + $0x27c] ss:$28 sps:$4 sm:$0xff]  }
 0x3af   :  { %7020 = vmatprep.subr.bf16.mxu0 %v11538_v37  ;;  %7192 = vmatprep.subr.bf16.mxu1 %v11541_v38  ;;  %v11600_v37 = vld [vmem:[#allocation6 + $0x600] ss:$28 sps:$4 sm:$0xff]   ;;  %v11597_v38 = vld [vmem:[#allocation6 + $0x278] ss:$28 sps:$4 sm:$0xff]  }
 0x3b2   :  { %7021 = vmatpush1.bf16.msra.mxu0 %v11536_v17  ;;  %7193 = vmatpush1.bf16.msra.mxu1 %v11539_v18  ;;  %v11601_v17 = vld [vmem:[#allocation6 + $0x440] ss:$28 sps:$4 sm:$0xff]   ;;  %v11604_v18 = vld [vmem:[#allocation6 + $0x2b4] ss:$28 sps:$4 sm:$0xff]  }
 0x3b3   :  { %7205 = vmatprep.subr.bf16.mxu0 %v11544_v40  ;;  %10865 = vmatprep.subr.bf16.mxu1 %v11545_v41  ;;  %v11605_v40 = vld [vmem:[#allocation6 + $0x638] ss:$28 sps:$4 sm:$0xff]   ;;  %v11602_v41 = vld [vmem:[#allocation6 + $0x2b0] ss:$28 sps:$4 sm:$0xff]  }
 0x3b5   :  { %7023 = vmatmul.mubr.bf16.vlgmr.msra.gmra.mrb[8].mxu0 %v12673_v23  ;;  %7195 = vmatmul.mubr.bf16.vlgmr.msra.gmra.mrb[8].mxu1 %v12673_v23 }
 0x3b6   :  { %7206 = vmatpush1.bf16.msra.mxu0 %v11542_v42  ;;  %7237 = vmatprep.mubr.bf16.mxu0 %v12647_v8  ;;  %v11606_v42 = vld [vmem:[#allocation6 + $0x478] ss:$28 sps:$4 sm:$0xff]  }
 0x3b7   :  { %10866 = vmatpush3.bf16.msra.mxu1 %v11546_v44  ;;  %7409 = vmatprep.mubr.bf16.mxu1 %v12647_v8  ;;  %v11565_v8 = vld [vmem:[#allocation6 + $0x2b8] ss:$28 sps:$4 sm:$0xff]   ;;  %v11609_v44 = vld [vmem:[#allocation6 + $0x2ec] ss:$28 sps:$4 sm:$0xff]  }
 0x3b8   :  { %7207 = vmatprep.subr.bf16.mxu0 %v11549_v24  ;;  %10867 = vmatprep.subr.bf16.mxu1 %v11550_v49  ;;  %v11610_v24 = vld [vmem:[#allocation6 + $0x670] ss:$28 sps:$4 sm:$0xff]   ;;  %v11607_v49 = vld [vmem:[#allocation6 + $0x2e8] ss:$28 sps:$4 sm:$0xff]  }
 0x3ba   :  { %7208 = vmatpush1.bf16.msra.mxu0 %v11547_v50  ;;  %v11611_v50 = vld [vmem:[#allocation6 + $0x4b0] ss:$28 sps:$4 sm:$0xff]  }
 0x3bb   :  { %10868 = vmatpush3.bf16.msra.mxu1 %v11551_v51  ;;  %7209 = vmatprep.subr.bf16.mxu0 %v11554_v52  ;;  %v11614_v51 = vld [vmem:[#allocation6 + $0x324] ss:$28 sps:$4 sm:$0xff]  }
 0x3bc   :  { %10869 = vmatprep.subr.bf16.mxu1 %v11555_v46  ;;  %v11615_v52 = vld [vmem:[#allocation6 + $0x6a8] ss:$28 sps:$4 sm:$0xff]   ;;  %v11612_v46 = vld [vmem:[#allocation6 + $0x320] ss:$28 sps:$4 sm:$0xff]  }
 0x3be   :  { %7210 = vmatpush1.bf16.msra.mxu0 %v11552_v55  ;;  %v11616_v55 = vld [vmem:[#allocation6 + $0x4e8] ss:$28 sps:$4 sm:$0xff]  }
 0x3bf   :  { %10870 = vmatpush3.bf16.msra.mxu1 %v11556_v56  ;;  %7211 = vmatprep.subr.bf16.mxu0 %v11559_v27  ;;  %v11619_v56 = vld [vmem:[#allocation6 + $0x35c] ss:$28 sps:$4 sm:$0xff]  }
 0x3c0   :  { %10871 = vmatprep.subr.bf16.mxu1 %v11560_v29  ;;  %v11620_v27 = vld [vmem:[#allocation6 + $0x6e0] ss:$28 sps:$4 sm:$0xff]   ;;  %v11617_v29 = vld [vmem:[#allocation6 + $0x358] ss:$28 sps:$4 sm:$0xff]  }
 0x3c2   :  { %7212 = vmatpush1.bf16.msra.mxu0 %v11557_v59  ;;  %v11621_v59 = vld [vmem:[#allocation6 + $0x520] ss:$28 sps:$4 sm:$0xff]  }
 0x3c3   :  { %10872 = vmatpush3.bf16.msra.mxu1 %v11561_v60  ;;  %7213 = vmatprep.subr.bf16.mxu0 %v11564_v61  ;;  %v11624_v60 = vld [vmem:[#allocation6 + $0x394] ss:$28 sps:$4 sm:$0xff]  }
 0x3c4   :  { %10873 = vmatprep.subr.bf16.mxu1 %v11565_v8  ;;  %v11625_v61 = vld [vmem:[#allocation6 + $0x8d8] ss:$28 sps:$4 sm:$0xff]   ;;  %v11622_v8 = vld [vmem:[#allocation6 + $0x390] ss:$28 sps:$4 sm:$0xff]  }
 0x3c6   :  { %7214 = vmatpush1.bf16.msra.mxu0 %v11562_v62  ;;  %v11626_v62 = vld [vmem:[#allocation6 + $0x718] ss:$28 sps:$4 sm:$0xff]  }
 0x3c7   :  { %10874 = vmatpush3.bf16.msra.mxu1 %v11566_v57  ;;  %7215 = vmatprep.subr.bf16.mxu0 %v11569_v1  ;;  %v11629_v57 = vld [vmem:[#allocation6 + $0x3cc] ss:$28 sps:$4 sm:$0xff]  }
 0x3c8   :  { %10875 = vmatprep.subr.bf16.mxu1 %v11570_v4  ;;  %v11630_v1 = vld [vmem:[#allocation6 + $0x910] ss:$28 sps:$4 sm:$0xff]   ;;  %v11627_v4 = vld [vmem:[#allocation6 + $0x3c8] ss:$28 sps:$4 sm:$0xff]  }
 0x3ca   :  { %7216 = vmatpush1.bf16.msra.mxu0 %v11567_v5  ;;  %v11631_v5 = vld [vmem:[#allocation6 + $0x750] ss:$28 sps:$4 sm:$0xff]  }
 0x3cb   :  { %10876 = vmatpush3.bf16.msra.mxu1 %v11571_v9  ;;  %7217 = vmatprep.subr.bf16.mxu0 %v11574_v10  ;;  %v11634_v9 = vld [vmem:[#allocation6 + $0x404] ss:$28 sps:$4 sm:$0xff]  }
 0x3cc   :  { %10877 = vmatprep.subr.bf16.mxu1 %v11575_v12  ;;  %v11635_v10 = vld [vmem:[#allocation6 + $0x948] ss:$28 sps:$4 sm:$0xff]   ;;  %v11632_v12 = vld [vmem:[#allocation6 + $0x400] ss:$28 sps:$4 sm:$0xff]  }
 0x3ce   :  { %7218 = vmatpush1.bf16.msra.mxu0 %v11572_v45  ;;  %v11639_v45 = vld [vmem:[#allocation6 + $0x43c] ss:$28 sps:$4 sm:$0xff]  }
 0x3cf   :  { %10878 = vmatpush3.bf16.msra.mxu1 %v11576_v13  ;;  %7219 = vmatprep.subr.bf16.mxu0 %v11579_v14  ;;  %v11640_v13 = vld [vmem:[#allocation6 + $0x980] ss:$28 sps:$4 sm:$0xff]   ;;  %v11637_v14 = vld [vmem:[#allocation6 + $0x438] ss:$28 sps:$4 sm:$0xff]  }
 0x3d0   :  { %10879 = vmatprep.subr.bf16.mxu1 %v11580_v16  ;;  %v11644_v16 = vld [vmem:[#allocation6 + $0x474] ss:$28 sps:$4 sm:$0xff]  }
 0x3d2   :  { %7220 = vmatpush1.bf16.msra.mxu0 %v11577_v19  ;;  %v11645_v19 = vld [vmem:[#allocation6 + $0x9b8] ss:$28 sps:$4 sm:$0xff]  }
 0x3d3   :  { %10880 = vmatpush3.bf16.msra.mxu1 %v11581_v20  ;;  %7221 = vmatprep.subr.bf16.mxu0 %v11584_v21  ;;  %v11642_v20 = vld [vmem:[#allocation6 + $0x470] ss:$28 sps:$4 sm:$0xff]   ;;  %v11646_v21 = vld [vmem:[#allocation6 + $0x7f8] ss:$28 sps:$4 sm:$0xff]  }
 0x3d4   :  { %10887 = vmatprep.subr.bf16.mxu1 %v11585_v53  ;;  %v11649_v53 = vld [vmem:[#allocation6 + $0x4ac] ss:$28 sps:$4 sm:$0xff]  }
 0x3d6   :  { %7410 = vmatmul.mubr.bf16.vlgmr.msra.gmra.mrb[12].mxu1 %v12643_v2  ;;  %7222 = vmatpush1.bf16.msra.mxu0 %v11582_v22  ;;  %v11650_v22 = vld [vmem:[#allocation6 + $0x9f0] ss:$28 sps:$4 sm:$0xff]  }
 0x3d7   :  { %10888 = vmatpush3.bf16.msra.mxu1 %v11586_v26  ;;  %7450 = vmatprep.mubr.bf16.mxu1 %v12649_v43  ;;  %v11647_v26 = vld [vmem:[#allocation6 + $0x4a8] ss:$28 sps:$4 sm:$0xff]  }
 0x3d8   :  { %7223 = vmatprep.subr.bf16.mxu0 %v11589_v28  ;;  %10889 = vmatprep.subr.bf16.mxu1 %v11590_v3  ;;  %v11651_v28 = vld [vmem:[#allocation6 + $0x830] ss:$28 sps:$4 sm:$0xff]   ;;  %v11654_v3 = vld [vmem:[#allocation6 + $0x4e4] ss:$28 sps:$4 sm:$0xff]  }
 0x3da   :  { %7224 = vmatpush1.bf16.msra.mxu0 %v11587_v32  ;;  %v11655_v32 = vld [vmem:[#allocation6 + $0xa28] ss:$28 sps:$4 sm:$0xff]  }
 0x3db   :  { %10890 = vmatpush3.bf16.msra.mxu1 %v11591_v33  ;;  %7225 = vmatprep.subr.bf16.mxu0 %v11594_v34  ;;  %v11652_v33 = vld [vmem:[#allocation6 + $0x4e0] ss:$28 sps:$4 sm:$0xff]   ;;  %v11656_v34 = vld [vmem:[#allocation6 + $0x868] ss:$28 sps:$4 sm:$0xff]  }
 0x3dc   :  { %10891 = vmatprep.subr.bf16.mxu1 %v11595_v58  ;;  %v11659_v58 = vld [vmem:[#allocation6 + $0x51c] ss:$28 sps:$4 sm:$0xff]  }
 0x3de   :  { %7226 = vmatpush1.bf16.msra.mxu0 %v11592_v35  ;;  %v11660_v35 = vld [vmem:[#allocation6 + $0xa60] ss:$28 sps:$4 sm:$0xff]  }
 0x3df   :  { %10892 = vmatpush3.bf16.msra.mxu1 %v11596_v36  ;;  %7227 = vmatprep.subr.bf16.mxu0 %v11599_v15  ;;  %v11657_v36 = vld [vmem:[#allocation6 + $0x518] ss:$28 sps:$4 sm:$0xff]   ;;  %v11661_v15 = vld [vmem:[#allocation6 + $0x8a0] ss:$28 sps:$4 sm:$0xff]  }
 0x3e0   :  { %10893 = vmatprep.subr.bf16.mxu1 %v11600_v37  ;;  %v11664_v37 = vld [vmem:[#allocation6 + $0x554] ss:$28 sps:$4 sm:$0xff]  }
 0x3e2   :  { %7228 = vmatpush1.bf16.msra.mxu0 %v11597_v38  ;;  %v11665_v38 = vld [vmem:[#allocation6 + $0xc58] ss:$28 sps:$4 sm:$0xff]  }
 0x3e3   :  { %10894 = vmatpush3.bf16.msra.mxu1 %v11601_v17  ;;  %7229 = vmatprep.subr.bf16.mxu0 %v11604_v18  ;;  %v11662_v17 = vld [vmem:[#allocation6 + $0x550] ss:$28 sps:$4 sm:$0xff]   ;;  %v11666_v18 = vld [vmem:[#allocation6 + $0xa98] ss:$28 sps:$4 sm:$0xff]  }
 0x3e4   :  { %10895 = vmatprep.subr.bf16.mxu1 %v11605_v40  ;;  %v11669_v40 = vld [vmem:[#allocation6 + $0x58c] ss:$28 sps:$4 sm:$0xff]  }
 0x3e6   :  { %7230 = vmatpush1.bf16.msra.mxu0 %v11602_v41  ;;  %v11670_v41 = vld [vmem:[#allocation6 + $0xc90] ss:$28 sps:$4 sm:$0xff]  }
 0x3e7   :  { %10896 = vmatpush3.bf16.msra.mxu1 %v11606_v42  ;;  %7231 = vmatprep.subr.bf16.mxu0 %v11609_v44  ;;  %v11667_v42 = vld [vmem:[#allocation6 + $0x588] ss:$28 sps:$4 sm:$0xff]   ;;  %v11671_v44 = vld [vmem:[#allocation6 + $0xad0] ss:$28 sps:$4 sm:$0xff]  }
 0x3e8   :  { %10897 = vmatprep.subr.bf16.mxu1 %v11610_v24  ;;  %v11674_v24 = vld [vmem:[#allocation6 + $0x5c4] ss:$28 sps:$4 sm:$0xff]  }
 0x3ea   :  { %7232 = vmatpush1.bf16.msra.mxu0 %v11607_v49  ;;  %v11675_v49 = vld [vmem:[#allocation6 + $0xcc8] ss:$28 sps:$4 sm:$0xff]  }
 0x3eb   :  { %10898 = vmatpush3.bf16.msra.mxu1 %v11611_v50  ;;  %7233 = vmatprep.subr.bf16.mxu0 %v11614_v51  ;;  %v11672_v50 = vld [vmem:[#allocation6 + $0x5c0] ss:$28 sps:$4 sm:$0xff]   ;;  %v11676_v51 = vld [vmem:[#allocation6 + $0xb08] ss:$28 sps:$4 sm:$0xff]  }
 0x3ec   :  { %10899 = vmatprep.subr.bf16.mxu1 %v11615_v52  ;;  %v11679_v52 = vld [vmem:[#allocation6 + $0x5fc] ss:$28 sps:$4 sm:$0xff]  }
 0x3ee   :  { %7234 = vmatpush1.bf16.msra.mxu0 %v11612_v46  ;;  %v11680_v46 = vld [vmem:[#allocation6 + $0xd00] ss:$28 sps:$4 sm:$0xff]  }
 0x3ef   :  { %10900 = vmatpush3.bf16.msra.mxu1 %v11616_v55  ;;  %7235 = vmatprep.subr.bf16.mxu0 %v11619_v56  ;;  %v11677_v55 = vld [vmem:[#allocation6 + $0x5f8] ss:$28 sps:$4 sm:$0xff]   ;;  %v11681_v56 = vld [vmem:[#allocation6 + $0xb40] ss:$28 sps:$4 sm:$0xff]  }
 0x3f0   :  { %10901 = vmatprep.subr.bf16.mxu1 %v11620_v27  ;;  %v11684_v27 = vld [vmem:[#allocation6 + $0x634] ss:$28 sps:$4 sm:$0xff]  }
 0x3f2   :  { %7236 = vmatpush1.bf16.msra.mxu0 %v11617_v29  ;;  %v11685_v29 = vld [vmem:[#allocation6 + $0xd38] ss:$28 sps:$4 sm:$0xff]  }
 0x3f3   :  { %10902 = vmatpush3.bf16.msra.mxu1 %v11621_v59  ;;  %7248 = vmatprep.subr.bf16.mxu0 %v11624_v60  ;;  %v11682_v59 = vld [vmem:[#allocation6 + $0x630] ss:$28 sps:$4 sm:$0xff]   ;;  %v11686_v60 = vld [vmem:[#allocation6 + $0xb78] ss:$28 sps:$4 sm:$0xff]  }
 0x3f4   :  { %10909 = vmatprep.subr.bf16.mxu1 %v11625_v61  ;;  %v11689_v61 = vld [vmem:[#allocation6 + $0x66c] ss:$28 sps:$4 sm:$0xff]  }
 0x3f5   :  { %7238 = vmatmul.mubr.bf16.vlgmr.msra.gmra.mrb[12].mxu0 %v12643_v2  ;;  %v11636_v2 = vld [vmem:[#allocation6 + $0x788] ss:$28 sps:$4 sm:$0xff]  }
 0x3f6   :  { %7451 = vmatmul.mubr.bf16.vlgmr.msra.gmra.mrb[16].mxu1 %v12645_v6  ;;  %7249 = vmatpush1.bf16.msra.mxu0 %v11622_v8  ;;  %v11690_v8 = vld [vmem:[#allocation6 + $0xd70] ss:$28 sps:$4 sm:$0xff]  }
 0x3f7   :  { %7280 = vmatprep.mubr.bf16.mxu0 %v12649_v43  ;;  %10910 = vmatpush3.bf16.msra.mxu1 %v11626_v62  ;;  %v11641_v43 = vld [vmem:[#allocation6 + $0x7c0] ss:$28 sps:$4 sm:$0xff]   ;;  %v11687_v62 = vld [vmem:[#allocation6 + $0x668] ss:$28 sps:$4 sm:$0xff]  }
 0x3f8   :  { %7491 = vmatprep.mubr.bf16.mxu1 %v12675_v25  ;;  %7250 = vmatprep.subr.bf16.mxu0 %v11629_v57  ;;  %v11691_v57 = vld [vmem:[#allocation6 + $0xbb0] ss:$28 sps:$4 sm:$0xff]  }
 0x3f9   :  { %10911 = vmatprep.subr.bf16.mxu1 %v11630_v1  ;;  %v11694_v1 = vld [vmem:[#allocation6 + $0x6a4] ss:$28 sps:$4 sm:$0xff]  }
 0x3fa   :  { %7251 = vmatpush1.bf16.msra.mxu0 %v11627_v4  ;;  %v11695_v4 = vld [vmem:[#allocation6 + $0xda8] ss:$28 sps:$4 sm:$0xff]  }
 0x3fb   :  { %10912 = vmatpush3.bf16.msra.mxu1 %v11631_v5  ;;  %7252 = vmatprep.subr.bf16.mxu0 %v11634_v9  ;;  %v11692_v5 = vld [vmem:[#allocation6 + $0x6a0] ss:$28 sps:$4 sm:$0xff]   ;;  %v11696_v9 = vld [vmem:[#allocation6 + $0xbe8] ss:$28 sps:$4 sm:$0xff]  }
 0x3fc   :  { %10913 = vmatprep.subr.bf16.mxu1 %v11635_v10  ;;  %v11699_v10 = vld [vmem:[#allocation6 + $0x6dc] ss:$28 sps:$4 sm:$0xff]  }
 0x3fe   :  { %7253 = vmatpush1.bf16.msra.mxu0 %v11632_v12  ;;  %v11700_v12 = vld [vmem:[#allocation6 + $0xde0] ss:$28 sps:$4 sm:$0xff]  }
 0x3ff   :  { %10914 = vmatpush3.bf16.msra.mxu1 %v11636_v2  ;;  %7254 = vmatprep.subr.bf16.mxu0 %v11639_v45  ;;  %v11697_v2 = vld [vmem:[#allocation6 + $0x6d8] ss:$28 sps:$4 sm:$0xff]   ;;  %v11701_v45 = vld [vmem:[#allocation6 + $0xc20] ss:$28 sps:$4 sm:$0xff]  }
 0x400   :  { %10915 = vmatprep.subr.bf16.mxu1 %v11640_v13  ;;  %v11704_v13 = vld [vmem:[#allocation6 + $0x714] ss:$28 sps:$4 sm:$0xff]  }
 0x402   :  { %7255 = vmatpush1.bf16.msra.mxu0 %v11637_v14  ;;  %v11728_v14 = vld [vmem:[#allocation9 + $0x4] ss:$16 sps:$4 sm:$0xff]  }
 0x403   :  { %10916 = vmatpush3.bf16.msra.mxu1 %v11641_v43  ;;  %7256 = vmatprep.subr.bf16.mxu0 %v11644_v16  ;;  %v11702_v43 = vld [vmem:[#allocation6 + $0x710] ss:$28 sps:$4 sm:$0xff]  }
 0x404   :  { %10917 = vmatprep.subr.bf16.mxu1 %v11645_v19  ;;  %v11707_v16 = vld [vmem:[#allocation6 + $0x74c] ss:$28 sps:$4 sm:$0xff]  }
 0x405   :  { %v11726_v19 = vld [vmem:[#allocation9] ss:$16 sps:$4 sm:$0xff]  }
 0x406   :  { %7257 = vmatpush1.bf16.msra.mxu0 %v11642_v20  ;;  %v11734_v20 = vld [vmem:[#allocation9 + $0x24] ss:$16 sps:$4 sm:$0xff]  }
 0x407   :  { %10918 = vmatpush3.bf16.msra.mxu1 %v11646_v21  ;;  %7258 = vmatprep.subr.bf16.mxu0 %v11649_v53  ;;  %v11705_v21 = vld [vmem:[#allocation6 + $0x748] ss:$28 sps:$4 sm:$0xff]  }
 0x408   :  { %10919 = vmatprep.subr.bf16.mxu1 %v11650_v22  ;;  %v11710_v53 = vld [vmem:[#allocation6 + $0x784] ss:$28 sps:$4 sm:$0xff]   ;;  %v11732_v22 = vld [vmem:[#allocation9 + $0x20] ss:$16 sps:$4 sm:$0xff]  }
 0x40a   :  { %7259 = vmatpush1.bf16.msra.mxu0 %v11647_v26  ;;  %v11740_v26 = vld [vmem:[#allocation9 + $0x44] ss:$16 sps:$4 sm:$0xff]  }
 0x40b   :  { %10920 = vmatpush3.bf16.msra.mxu1 %v11651_v28  ;;  %7260 = vmatprep.subr.bf16.mxu0 %v11654_v3  ;;  %v11708_v28 = vld [vmem:[#allocation6 + $0x780] ss:$28 sps:$4 sm:$0xff]  }
 0x40c   :  { %10921 = vmatprep.subr.bf16.mxu1 %v11655_v32  ;;  %v11713_v3 = vld [vmem:[#allocation6 + $0x7bc] ss:$28 sps:$4 sm:$0xff]  }
 0x40d   :  { %v11738_v32 = vld [vmem:[#allocation9 + $0x40] ss:$16 sps:$4 sm:$0xff]  }
 0x40e   :  { %7261 = vmatpush1.bf16.msra.mxu0 %v11652_v33  ;;  %v11711_v33 = vld [vmem:[#allocation6 + $0x7b8] ss:$28 sps:$4 sm:$0xff]  }
 0x40f   :  { %10922 = vmatpush3.bf16.msra.mxu1 %v11656_v34  ;;  %7262 = vmatprep.subr.bf16.mxu0 %v11659_v58  ;;  %v11716_v34 = vld [vmem:[#allocation6 + $0x7f4] ss:$28 sps:$4 sm:$0xff]   ;;  %v11752_v58 = vld [vmem:[#allocation9 + $0x84] ss:$16 sps:$4 sm:$0xff]  }
 0x410   :  { %10923 = vmatprep.subr.bf16.mxu1 %v11660_v35  ;;  %v11714_v35 = vld [vmem:[#allocation6 + $0x7f0] ss:$28 sps:$4 sm:$0xff]  }
 0x412   :  { %7263 = vmatpush1.bf16.msra.mxu0 %v11657_v36  ;;  %v11719_v36 = vld [vmem:[#allocation6 + $0x82c] ss:$28 sps:$4 sm:$0xff]  }
 0x413   :  { %10924 = vmatpush3.bf16.msra.mxu1 %v11661_v15  ;;  %7264 = vmatprep.subr.bf16.mxu0 %v11664_v37  ;;  %v11750_v15 = vld [vmem:[#allocation9 + $0x80] ss:$16 sps:$4 sm:$0xff]   ;;  %v11758_v37 = vld [vmem:[#allocation9 + $0xa4] ss:$16 sps:$4 sm:$0xff]  }
 0x414   :  { %10931 = vmatprep.subr.bf16.mxu1 %v11665_v38  ;;  %v11717_v38 = vld [vmem:[#allocation6 + $0x828] ss:$28 sps:$4 sm:$0xff]  }
 0x416   :  { %7492 = vmatmul.mubr.bf16.vlgmr.msra.gmra.mrb[20].mxu1 %v12671_v54  ;;  %7265 = vmatpush1.bf16.msra.mxu0 %v11662_v17  ;;  %v11722_v17 = vld [vmem:[#allocation6 + $0x864] ss:$28 sps:$4 sm:$0xff]  }
 0x417   :  { %10932 = vmatpush3.bf16.msra.mxu1 %v11666_v18  ;;  %7532 = vmatprep.mubr.bf16.mxu1 %v12677_v31  ;;  %v11756_v18 = vld [vmem:[#allocation9 + $0xa0] ss:$16 sps:$4 sm:$0xff]  }
 0x418   :  { %7266 = vmatprep.subr.bf16.mxu0 %v11669_v40  ;;  %10933 = vmatprep.subr.bf16.mxu1 %v11670_v41  ;;  %v11764_v40 = vld [vmem:[#allocation9 + $0xc4] ss:$16 sps:$4 sm:$0xff]  }
 0x419   :  { %v11720_v41 = vld [vmem:[#allocation6 + $0x860] ss:$28 sps:$4 sm:$0xff]  }
 0x41a   :  { %7267 = vmatpush1.bf16.msra.mxu0 %v11667_v42  ;;  %v11725_v42 = vld [vmem:[#allocation6 + $0x89c] ss:$28 sps:$4 sm:$0xff]  }
 0x41b   :  { %10934 = vmatpush3.bf16.msra.mxu1 %v11671_v44  ;;  %7268 = vmatprep.subr.bf16.mxu0 %v11674_v24  ;;  %v11762_v44 = vld [vmem:[#allocation9 + $0xc0] ss:$16 sps:$4 sm:$0xff]   ;;  %v11770_v24 = vld [vmem:[#allocation9 + $0xe4] ss:$16 sps:$4 sm:$0xff]  }
 0x41c   :  { %10935 = vmatprep.subr.bf16.mxu1 %v11675_v49  ;;  %v11723_v49 = vld [vmem:[#allocation6 + $0x898] ss:$28 sps:$4 sm:$0xff]  }
 0x41e   :  { %7269 = vmatpush1.bf16.msra.mxu0 %v11672_v50  ;;  %v11731_v50 = vld [vmem:[#allocation6 + $0x8d4] ss:$28 sps:$4 sm:$0xff]  }
 0x41f   :  { %10936 = vmatpush3.bf16.msra.mxu1 %v11676_v51  ;;  %7270 = vmatprep.subr.bf16.mxu0 %v11679_v52  ;;  %v11768_v51 = vld [vmem:[#allocation9 + $0xe0] ss:$16 sps:$4 sm:$0xff]   ;;  %v11776_v52 = vld [vmem:[#allocation9 + $0x104] ss:$16 sps:$4 sm:$0xff]  }
 0x420   :  { %10937 = vmatprep.subr.bf16.mxu1 %v11680_v46  ;;  %v11729_v46 = vld [vmem:[#allocation6 + $0x8d0] ss:$28 sps:$4 sm:$0xff]  }
 0x422   :  { %7271 = vmatpush1.bf16.msra.mxu0 %v11677_v55  ;;  %v11737_v55 = vld [vmem:[#allocation6 + $0x90c] ss:$28 sps:$4 sm:$0xff]  }
 0x423   :  { %10938 = vmatpush3.bf16.msra.mxu1 %v11681_v56  ;;  %7272 = vmatprep.subr.bf16.mxu0 %v11684_v27  ;;  %v11774_v56 = vld [vmem:[#allocation9 + $0x100] ss:$16 sps:$4 sm:$0xff]   ;;  %v11782_v27 = vld [vmem:[#allocation9 + $0x124] ss:$16 sps:$4 sm:$0xff]  }
 0x424   :  { %10939 = vmatprep.subr.bf16.mxu1 %v11685_v29  ;;  %v11735_v29 = vld [vmem:[#allocation6 + $0x908] ss:$28 sps:$4 sm:$0xff]  }
 0x426   :  { %7273 = vmatpush1.bf16.msra.mxu0 %v11682_v59  ;;  %v11743_v59 = vld [vmem:[#allocation6 + $0x944] ss:$28 sps:$4 sm:$0xff]  }
 0x427   :  { %10940 = vmatpush3.bf16.msra.mxu1 %v11686_v60  ;;  %7274 = vmatprep.subr.bf16.mxu0 %v11689_v61  ;;  %v11780_v60 = vld [vmem:[#allocation9 + $0x120] ss:$16 sps:$4 sm:$0xff]   ;;  %v11788_v61 = vld [vmem:[#allocation9 + $0x144] ss:$16 sps:$4 sm:$0xff]  }
 0x428   :  { %10941 = vmatprep.subr.bf16.mxu1 %v11690_v8  ;;  %v11741_v8 = vld [vmem:[#allocation6 + $0x940] ss:$28 sps:$4 sm:$0xff]  }
 0x42a   :  { %7275 = vmatpush1.bf16.msra.mxu0 %v11687_v62  ;;  %v11749_v62 = vld [vmem:[#allocation6 + $0x97c] ss:$28 sps:$4 sm:$0xff]  }
 0x42b   :  { %10942 = vmatpush3.bf16.msra.mxu1 %v11691_v57  ;;  %7276 = vmatprep.subr.bf16.mxu0 %v11694_v1  ;;  %v11786_v57 = vld [vmem:[#allocation9 + $0x140] ss:$16 sps:$4 sm:$0xff]   ;;  %v11794_v1 = vld [vmem:[#allocation9 + $0x164] ss:$16 sps:$4 sm:$0xff]  }
 0x42c   :  { %10943 = vmatprep.subr.bf16.mxu1 %v11695_v4  ;;  %v11747_v4 = vld [vmem:[#allocation6 + $0x978] ss:$28 sps:$4 sm:$0xff]  }
 0x42e   :  { %7277 = vmatpush1.bf16.msra.mxu0 %v11692_v5  ;;  %v11755_v5 = vld [vmem:[#allocation6 + $0x9b4] ss:$28 sps:$4 sm:$0xff]  }
 0x42f   :  { %10944 = vmatpush3.bf16.msra.mxu1 %v11696_v9  ;;  %7278 = vmatprep.subr.bf16.mxu0 %v11699_v10  ;;  %v11792_v9 = vld [vmem:[#allocation9 + $0x160] ss:$16 sps:$4 sm:$0xff]   ;;  %v11800_v10 = vld [vmem:[#allocation9 + $0x184] ss:$16 sps:$4 sm:$0xff]  }
 0x430   :  { %10945 = vmatprep.subr.bf16.mxu1 %v11700_v12  ;;  %v11753_v12 = vld [vmem:[#allocation6 + $0x9b0] ss:$28 sps:$4 sm:$0xff]  }
 0x432   :  { %7279 = vmatpush1.bf16.msra.mxu0 %v11697_v2  ;;  %v11761_v2 = vld [vmem:[#allocation6 + $0x9ec] ss:$28 sps:$4 sm:$0xff]  }
 0x433   :  { %10946 = vmatpush3.bf16.msra.mxu1 %v11701_v45  ;;  %7291 = vmatprep.subr.bf16.mxu0 %v11704_v13  ;;  %v11798_v45 = vld [vmem:[#allocation9 + $0x180] ss:$16 sps:$4 sm:$0xff]   ;;  %v11806_v13 = vld [vmem:[#allocation9 + $0x1a4] ss:$16 sps:$4 sm:$0xff]  }
 0x434   :  { %8928 = vmatprep.subr.bf16.mxu1 %v11728_v14  ;;  %v11759_v14 = vld [vmem:[#allocation6 + $0x9e8] ss:$28 sps:$4 sm:$0xff]  }
 0x435   :  { %7281 = vmatmul.mubr.bf16.vlgmr.msra.gmra.mrb[12].mxu0 %v12645_v6  ;;  %v11746_v6 = vld [vmem:[#allocation9 + $0x64] ss:$16 sps:$4 sm:$0xff]  }
 0x436   :  { %7533 = vmatmul.mubr.bf16.vlgmr.msra.gmra.mrb[24].mxu1 %v12673_v23  ;;  %7292 = vmatpush1.bf16.msra.mxu0 %v11702_v43  ;;  %v11767_v43 = vld [vmem:[#allocation6 + $0xa24] ss:$28 sps:$4 sm:$0xff]  }
 0x437   :  { %7323 = vmatprep.mubr.bf16.mxu0 %v12675_v25  ;;  %7293 = vmatprep.subr.bf16.mxu0 %v11707_v16  ;;  %v11744_v25 = vld [vmem:[#allocation9 + $0x60] ss:$16 sps:$4 sm:$0xff]  }
 0x438   :  { %8929 = vmatpush1.bf16.msra.mxu1 %v11726_v19  ;;  %v11804_v16 = vld [vmem:[#allocation9 + $0x1a0] ss:$16 sps:$4 sm:$0xff]   ;;  %v11812_v19 = vld [vmem:[#allocation9 + $0x1c4] ss:$16 sps:$4 sm:$0xff]  }
 0x439   :  { %8930 = vmatprep.subr.bf16.mxu1 %v11734_v20  ;;  %v11765_v20 = vld [vmem:[#allocation6 + $0xa20] ss:$28 sps:$4 sm:$0xff]  }
 0x43a   :  { %7294 = vmatpush1.bf16.msra.mxu0 %v11705_v21  ;;  %v11773_v21 = vld [vmem:[#allocation6 + $0xa5c] ss:$28 sps:$4 sm:$0xff]  }
 0x43b   :  { %7295 = vmatprep.subr.bf16.mxu0 %v11710_v53  ;;  %v11810_v53 = vld [vmem:[#allocation9 + $0x1c0] ss:$16 sps:$4 sm:$0xff]  }
 0x43c   :  { %8931 = vmatpush1.bf16.msra.mxu1 %v11732_v22  ;;  %v11818_v22 = vld [vmem:[#allocation9 + $0x1e4] ss:$16 sps:$4 sm:$0xff]  }
 0x43d   :  { %8932 = vmatprep.subr.bf16.mxu1 %v11740_v26  ;;  %v11771_v26 = vld [vmem:[#allocation6 + $0xa58] ss:$28 sps:$4 sm:$0xff]  }
 0x43e   :  { %7296 = vmatpush1.bf16.msra.mxu0 %v11708_v28  ;;  %v11779_v28 = vld [vmem:[#allocation6 + $0xa94] ss:$28 sps:$4 sm:$0xff]  }
 0x43f   :  { %7297 = vmatprep.subr.bf16.mxu0 %v11713_v3  ;;  %v11816_v3 = vld [vmem:[#allocation9 + $0x1e0] ss:$16 sps:$4 sm:$0xff]  }
 0x440   :  { %8933 = vmatpush1.bf16.msra.mxu1 %v11738_v32  ;;  %v11824_v32 = vld [vmem:[#allocation9 + $0x204] ss:$16 sps:$4 sm:$0xff]  }
 0x441   :  { %8934 = vmatprep.subr.bf16.mxu1 %v11746_v6  ;;  %v11777_v6 = vld [vmem:[#allocation6 + $0xa90] ss:$28 sps:$4 sm:$0xff]  }
 0x442   :  { %7298 = vmatpush1.bf16.msra.mxu0 %v11711_v33  ;;  %v11785_v33 = vld [vmem:[#allocation6 + $0xacc] ss:$28 sps:$4 sm:$0xff]  }
 0x443   :  { %7299 = vmatprep.subr.bf16.mxu0 %v11716_v34  ;;  %v11783_v34 = vld [vmem:[#allocation6 + $0xac8] ss:$28 sps:$4 sm:$0xff]  }
 0x444   :  { %8935 = vmatpush1.bf16.msra.mxu1 %v11744_v25  ;;  %v11791_v25 = vld [vmem:[#allocation6 + $0xb04] ss:$28 sps:$4 sm:$0xff]  }
 0x445   :  { %8936 = vmatprep.subr.bf16.mxu1 %v11752_v58  ;;  %v11789_v58 = vld [vmem:[#allocation6 + $0xb00] ss:$28 sps:$4 sm:$0xff]  }
 0x446   :  { %7300 = vmatpush1.bf16.msra.mxu0 %v11714_v35  ;;  %v11797_v35 = vld [vmem:[#allocation6 + $0xb3c] ss:$28 sps:$4 sm:$0xff]  }
 0x447   :  { %7301 = vmatprep.subr.bf16.mxu0 %v11719_v36  ;;  %v11795_v36 = vld [vmem:[#allocation6 + $0xb38] ss:$28 sps:$4 sm:$0xff]  }
 0x448   :  { %8937 = vmatpush1.bf16.msra.mxu1 %v11750_v15  ;;  %v11803_v15 = vld [vmem:[#allocation6 + $0xb74] ss:$28 sps:$4 sm:$0xff]  }
 0x449   :  { %8938 = vmatprep.subr.bf16.mxu1 %v11758_v37  ;;  %v11801_v37 = vld [vmem:[#allocation6 + $0xb70] ss:$28 sps:$4 sm:$0xff]  }
 0x44a   :  { %7302 = vmatpush1.bf16.msra.mxu0 %v11717_v38  ;;  %v12702_v38 = vld [vmem:[#allocation7] sm:$0xff] }
 0x44b   :  { %7303 = vmatprep.subr.bf16.mxu0 %v11722_v17  ;;  %v4533_v17 = vrot.slane %v12702_v38, %v12631_v0 }
 0x44c   :  { %8939 = vmatpush1.bf16.msra.mxu1 %v11756_v18  ;;  %v4529_v18 = vrot.slane %v12702_v38, %v12634_v7 }
 0x44d   :  { %8940 = vmatprep.subr.bf16.mxu1 %v11764_v40  ;;  %v4537_v40 = vrot.slane %v12702_v38, %v12637_v11 }
 0x44e   :  { %7304 = vmatpush1.bf16.msra.mxu0 %v11720_v41  ;;  %v11807_v41 = vld [vmem:[#allocation6 + $0xba8] ss:$28 sps:$4 sm:$0xff]  }
 0x44f   :  { %7305 = vmatprep.subr.bf16.mxu0 %v11725_v42  ;;  %v11815_v42 = vld [vmem:[#allocation6 + $0xbe4] ss:$28 sps:$4 sm:$0xff]  }
 0x450   :  { %8941 = vmatpush1.bf16.msra.mxu1 %v11762_v44 }
 0x451   :  { %8942 = vmatprep.subr.bf16.mxu1 %v11770_v24 }
 0x452   :  { %7306 = vmatpush1.bf16.msra.mxu0 %v11723_v49 }
 0x453   :  { %7307 = vmatprep.subr.bf16.mxu0 %v11731_v50 }
 0x454   :  { %8943 = vmatpush1.bf16.msra.mxu1 %v11768_v51 }
 0x455   :  { %8944 = vmatprep.subr.bf16.mxu1 %v11776_v52 }
 0x456   :  { %7308 = vmatpush1.bf16.msra.mxu0 %v11729_v46 }
 0x457   :  { %7309 = vmatprep.subr.bf16.mxu0 %v11737_v55 }
 0x458   :  { %8945 = vmatpush1.bf16.msra.mxu1 %v11774_v56 }
 0x459   :  { %8946 = vmatprep.subr.bf16.mxu1 %v11782_v27 }
 0x45a   :  { %7310 = vmatpush1.bf16.msra.mxu0 %v11735_v29  ;;  %v11813_v29 = vld [vmem:[#allocation6 + $0xbe0] ss:$28 sps:$4 sm:$0xff]  }
 0x45b   :  { %7311 = vmatprep.subr.bf16.mxu0 %v11743_v59 }
 0x45c   :  { %8947 = vmatpush1.bf16.msra.mxu1 %v11780_v60 }
 0x45d   :  { %8948 = vmatprep.subr.bf16.mxu1 %v11788_v61 }
 0x45e   :  { %7312 = vmatpush1.bf16.msra.mxu0 %v11741_v8 }
 0x45f   :  { %7313 = vmatprep.subr.bf16.mxu0 %v11749_v62  ;;  %v11821_v62 = vld [vmem:[#allocation6 + $0xc1c] ss:$28 sps:$4 sm:$0xff]  }
 0x460   :  { %8949 = vmatpush1.bf16.msra.mxu1 %v11786_v57 }
 0x461   :  { %8950 = vmatprep.subr.bf16.mxu1 %v11794_v1 }
 0x462   :  { %7314 = vmatpush1.bf16.msra.mxu0 %v11747_v4 }
 0x463   :  { %7315 = vmatprep.subr.bf16.mxu0 %v11755_v5 }
 0x464   :  { %8951 = vmatpush1.bf16.msra.mxu1 %v11792_v9 }
 0x465   :  { %8952 = vmatprep.subr.bf16.mxu1 %v11800_v10 }
 0x466   :  { %7316 = vmatpush1.bf16.msra.mxu0 %v11753_v12 }
 0x467   :  { %7317 = vmatprep.subr.bf16.mxu0 %v11761_v2 }
 0x468   :  { %8953 = vmatpush1.bf16.msra.mxu1 %v11798_v45 }
 0x469   :  { %8954 = vmatprep.subr.bf16.mxu1 %v11806_v13 }
 0x46a   :  { %7318 = vmatpush1.bf16.msra.mxu0 %v11759_v14  ;;  %v11819_v14 = vld [vmem:[#allocation6 + $0xc18] ss:$28 sps:$4 sm:$0xff]  }
 0x46b   :  { %7319 = vmatprep.subr.bf16.mxu0 %v11767_v43 }
 0x46c   :  { %8955 = vmatpush1.bf16.msra.mxu1 %v11804_v16 }
 0x46d   :  { %8956 = vmatprep.subr.bf16.mxu1 %v11812_v19  ;;  %v11827_v19 = vld [vmem:[#allocation6 + $0xc54] ss:$28 sps:$4 sm:$0xff]  }
 0x46e   :  { %7320 = vmatpush1.bf16.msra.mxu0 %v11765_v20 }
 0x46f   :  { %7321 = vmatprep.subr.bf16.mxu0 %v11773_v21 }
 0x470   :  { %8957 = vmatpush1.bf16.msra.mxu1 %v11810_v53  ;;  %v11822_v53 = vld [vmem:[#allocation9 + $0x200] ss:$16 sps:$4 sm:$0xff]  }
 0x471   :  { %8958 = vmatprep.subr.bf16.mxu1 %v11818_v22  ;;  %v11830_v22 = vld [vmem:[#allocation9 + $0x224] ss:$16 sps:$4 sm:$0xff]  }
 0x472   :  { %7322 = vmatpush1.bf16.msra.mxu0 %v11771_v26  ;;  %v11825_v26 = vld [vmem:[#allocation6 + $0xc50] ss:$28 sps:$4 sm:$0xff]  }
 0x473   :  { %7334 = vmatprep.subr.bf16.mxu0 %v11779_v28  ;;  %v11833_v28 = vld [vmem:[#allocation6 + $0xc8c] ss:$28 sps:$4 sm:$0xff]  }
 0x474   :  { %8959 = vmatpush1.bf16.msra.mxu1 %v11816_v3  ;;  %v11828_v3 = vld [vmem:[#allocation9 + $0x220] ss:$16 sps:$4 sm:$0xff]  }
 0x475   :  { %7324 = vmatmul.mubr.bf16.vlgmr.msra.gmra.mrb[12].mxu0 %v12671_v54  ;;  %8971 = vmatprep.subr.bf16.mxu1 %v11824_v32  ;;  %v11809_v54 = vld [vmem:[#allocation6 + $0xbac] ss:$28 sps:$4 sm:$0xff]  }
 0x476   :  { %7335 = vmatpush1.bf16.msra.mxu0 %v11777_v6  ;;  %7366 = vmatprep.mubr.bf16.mxu0 %v12677_v31  ;;  %v4525_v31 = vrot.slane %v12702_v38, %v12628_v63  ;;  %v11836_v32 = vld [vmem:[#allocation9 + $0x244] ss:$16 sps:$4 sm:$0xff]   ;;  %v11831_v6 = vld [vmem:[#allocation6 + $0xc88] ss:$28 sps:$4 sm:$0xff]  }
 0x477   :  { %7336 = vmatprep.subr.bf16.mxu0 %v11785_v33  ;;  %v11839_v33 = vld [vmem:[#allocation6 + $0xcc4] ss:$28 sps:$4 sm:$0xff]  }
 0x47a   :  { %7337 = vmatpush1.bf16.msra.mxu0 %v11783_v34  ;;  %v11834_v34 = vld [vmem:[#allocation9 + $0x240] ss:$16 sps:$4 sm:$0xff]  }
 0x47b   :  { %7338 = vmatprep.subr.bf16.mxu0 %v11791_v25  ;;  %v11842_v25 = vld [vmem:[#allocation9 + $0x264] ss:$16 sps:$4 sm:$0xff]  }
 0x47e   :  { %7339 = vmatpush1.bf16.msra.mxu0 %v11789_v58  ;;  %v11837_v58 = vld [vmem:[#allocation6 + $0xcc0] ss:$28 sps:$4 sm:$0xff]  }
 0x47f   :  { %7340 = vmatprep.subr.bf16.mxu0 %v11797_v35  ;;  %v11845_v35 = vld [vmem:[#allocation6 + $0xcfc] ss:$28 sps:$4 sm:$0xff]  }
 0x482   :  { %7341 = vmatpush1.bf16.msra.mxu0 %v11795_v36  ;;  %v11840_v36 = vld [vmem:[#allocation9 + $0x260] ss:$16 sps:$4 sm:$0xff]  }
 0x483   :  { %7342 = vmatprep.subr.bf16.mxu0 %v11803_v15  ;;  %v11848_v15 = vld [vmem:[#allocation9 + $0x284] ss:$16 sps:$4 sm:$0xff]  }
 0x486   :  { %7343 = vmatpush1.bf16.msra.mxu0 %v11801_v37  ;;  %v11843_v37 = vld [vmem:[#allocation6 + $0xcf8] ss:$28 sps:$4 sm:$0xff]  }
 0x487   :  { %7344 = vmatprep.subr.bf16.mxu0 %v11809_v54  ;;  %v11851_v54 = vld [vmem:[#allocation6 + $0xd34] ss:$28 sps:$4 sm:$0xff]  }
 0x488   :  { %v7024_v44 = vpop.f32.mrb[8].mxu0  ;;  %v7196_v24 = vpop.f32.mrb[8].mxu1 }
 0x489   :  { %v11013_v49 = vadd.f32 %v7024_v44, %v4525_v31  ;;  %v11017_v50 = vadd.f32 %v7196_v24, %v4533_v17  ;;  %v7026_v51 = vpop.f32.mrb[9].mxu0  ;;  %v7198_v52 = vpop.f32.mrb[9].mxu1  ;;  %v11855_v44 = vld [vmem:[#allocation6 + $0xd68] ss:$28 sps:$4 sm:$0xff]  }
 0x48a   :  { %v11014_v46 = vadd.f32 %v7026_v51, %v4529_v18  ;;  %v11018_v55 = vadd.f32 %v7198_v52, %v4537_v40  ;;  %v7028_v56 = vpop.f32.mrb[10].mxu0  ;;  %v7200_v27 = vpop.f32.mrb[10].mxu1  ;;  %7345 = vmatpush1.bf16.msra.mxu0 %v11807_v41  ;;  %v11852_v41 = vld [vmem:[#allocation9 + $0x2a0] ss:$16 sps:$4 sm:$0xff]   ;;  %v11863_v24 = vld [vmem:[#allocation6 + $0xda4] ss:$28 sps:$4 sm:$0xff]  }
 0x48b   :  { %v11015_v59 = vadd.f32 %v7028_v56, %v4525_v31  ;;  %v11019_v60 = vadd.f32 %v7200_v27, %v4533_v17  ;;  %v7030_v61 = vpop.f32.mrb[11].mxu0  ;;  %v7202_v8 = vpop.f32.mrb[11].mxu1  ;;  %7346 = vmatprep.subr.bf16.mxu0 %v11815_v42  ;;  %v7541_v4 = vmax.f32 %v11013_v49, 0.0  ;;  %v7543_v5 = vmax.f32 %v11017_v50, 0.0  ;;  %v11846_v31 = vld [vmem:[#allocation9 + $0x280] ss:$16 sps:$4 sm:$0xff]  }
 0x48c   :  { %v11016_v57 = vadd.f32 %v7030_v61, %v4529_v18  ;;  %v11020_v1 = vadd.f32 %v7202_v8, %v4537_v40  ;;  %v7542_v12 = vmax.f32 %v11014_v46, 0.0  ;;  %v7544_v2 = vmax.f32 %v11018_v55, 0.0  ;;  %v11854_v17 = vld [vmem:[#allocation9 + $0x2a4] ss:$16 sps:$4 sm:$0xff]   ;;  %v11858_v49 = vld [vmem:[#allocation9 + $0x2c0] ss:$16 sps:$4 sm:$0xff]  }
 0x48d   :  { %v7548_v9 = vmax.f32 %v11015_v59, 0.0  ;;  %v7550_v10 = vmax.f32 %v11019_v60, 0.0  ;;  %v11849_v18 = vld [vmem:[#allocation6 + $0xd30] ss:$28 sps:$4 sm:$0xff]   ;;  %v11861_v46 = vld [vmem:[#allocation6 + $0xda0] ss:$28 sps:$4 sm:$0xff]  }
 0x48e   :  { %v7549_v45 = vmax.f32 %v11016_v57, 0.0  ;;  %v7551_v13 = vmax.f32 %v11020_v1, 0.0  ;;  %7347 = vmatpush1.bf16.msra.mxu0 %v11813_v29  ;;  %v11857_v40 = vld [vmem:[#allocation6 + $0xd6c] ss:$28 sps:$4 sm:$0xff]   ;;  %v11869_v27 = vld [vmem:[#allocation6 + $0xddc] ss:$28 sps:$4 sm:$0xff]  }
 0x48f   :  { %v12712_v43 = vpack.c.bf16 %v7548_v9, %v7541_v4  ;;  %v12714_v16 = vpack.c.bf16 %v7550_v10, %v7543_v5  ;;  %7348 = vmatprep.subr.bf16.mxu0 %v11821_v62  ;;  %v11860_v42 = vld [vmem:[#allocation9 + $0x2c4] ss:$16 sps:$4 sm:$0xff]   ;;  %v11864_v59 = vld [vmem:[#allocation9 + $0x2e0] ss:$16 sps:$4 sm:$0xff]   ;;  %v11875_v62 = vld [vmem:[#allocation9 + $0xc] ss:$16 sps:$4 sm:$0xff]  }
 0x490   :  { %v12716_v20 = vpack.c.bf16 %v7549_v45, %v7542_v12  ;;  %v12718_v21 = vpack.c.bf16 %v7551_v13, %v7544_v2  ;;  %v11866_v51 = vld [vmem:[#allocation9 + $0x2e4] ss:$16 sps:$4 sm:$0xff]   ;;  %v11867_v8 = vld [vmem:[#allocation6 + $0xdd8] ss:$28 sps:$4 sm:$0xff]   ;;  %v11873_v4 = vld [vmem:[#allocation9 + $0x8] ss:$16 sps:$4 sm:$0xff]  }
 0x491   :  { %v11872_v61 = vld [vmem:[#allocation9 + $0x304] ss:$16 sps:$4 sm:$0xff]   ;;  %v11870_v57 = vld [vmem:[#allocation9 + $0x300] ss:$16 sps:$4 sm:$0xff]   ;;  %v11881_v5 = vld [vmem:[#allocation9 + $0x2c] ss:$16 sps:$4 sm:$0xff]  }
 0x492   :  { %7349 = vmatpush1.bf16.msra.mxu0 %v11819_v14  ;;  %8960 = vmatprep.mubr.bf16.mxu1 %v12716_v20  ;;  %v11878_v1 = vld [vmem:[#allocation9 + $0x324] ss:$16 sps:$4 sm:$0xff]   ;;  %v11876_v9 = vld [vmem:[#allocation9 + $0x320] ss:$16 sps:$4 sm:$0xff]   ;;  %v11879_v12 = vld [vmem:[#allocation9 + $0x28] ss:$16 sps:$4 sm:$0xff]  }
 0x493   :  { %8961 = vmatmul.mubr.bf16.vlgmr.msra.gmra.mrb[28].mxu1 %v12712_v43  ;;  %7350 = vmatprep.subr.bf16.mxu0 %v11827_v19  ;;  %v11884_v10 = vld [vmem:[#allocation9 + $0x344] ss:$16 sps:$4 sm:$0xff]   ;;  %v11887_v2 = vld [vmem:[#allocation9 + $0x4c] ss:$16 sps:$4 sm:$0xff]   ;;  %v11882_v45 = vld [vmem:[#allocation9 + $0x340] ss:$16 sps:$4 sm:$0xff]  }
 0x494   :  { %8972 = vmatpush1.bf16.msra.mxu1 %v11822_v53  ;;  %9003 = vmatprep.mubr.bf16.mxu1 %v12718_v21  ;;  %v11890_v13 = vld [vmem:[#allocation9 + $0x364] ss:$16 sps:$4 sm:$0xff]   ;;  %v11885_v14 = vld [vmem:[#allocation9 + $0x48] ss:$16 sps:$4 sm:$0xff]   ;;  %v11893_v19 = vld [vmem:[#allocation9 + $0x6c] ss:$16 sps:$4 sm:$0xff]  }
 0x495   :  { %8973 = vmatprep.subr.bf16.mxu1 %v11830_v22  ;;  %v11888_v53 = vld [vmem:[#allocation9 + $0x360] ss:$16 sps:$4 sm:$0xff]   ;;  %v11891_v22 = vld [vmem:[#allocation9 + $0x68] ss:$16 sps:$4 sm:$0xff]  }
 0x496   :  { %7351 = vmatpush1.bf16.msra.mxu0 %v11825_v26  ;;  %v11899_v26 = vld [vmem:[#allocation9 + $0x8c] ss:$16 sps:$4 sm:$0xff]  }
 0x497   :  { %7352 = vmatprep.subr.bf16.mxu0 %v11833_v28  ;;  %v11902_v28 = vld [vmem:[#allocation9 + $0x3a4] ss:$16 sps:$4 sm:$0xff]  }
 0x498   :  { %8974 = vmatpush1.bf16.msra.mxu1 %v11828_v3  ;;  %v11897_v3 = vld [vmem:[#allocation9 + $0x88] ss:$16 sps:$4 sm:$0xff]  }
 0x499   :  { %8975 = vmatprep.subr.bf16.mxu1 %v11836_v32  ;;  %v11905_v32 = vld [vmem:[#allocation9 + $0xac] ss:$16 sps:$4 sm:$0xff]  }
 0x49a   :  { %7353 = vmatpush1.bf16.msra.mxu0 %v11831_v6  ;;  %v11900_v6 = vld [vmem:[#allocation9 + $0x3a0] ss:$16 sps:$4 sm:$0xff]  }
 0x49b   :  { %7354 = vmatprep.subr.bf16.mxu0 %v11839_v33  ;;  %v11908_v33 = vld [vmem:[#allocation9 + $0x3c4] ss:$16 sps:$4 sm:$0xff]  }
 0x49c   :  { %8976 = vmatpush1.bf16.msra.mxu1 %v11834_v34  ;;  %v11903_v34 = vld [vmem:[#allocation9 + $0xa8] ss:$16 sps:$4 sm:$0xff]  }
 0x49d   :  { %8977 = vmatprep.subr.bf16.mxu1 %v11842_v25  ;;  %v4549_v25 = vrot.slane %v12702_v38, %v682_v30 }
 0x49e   :  { %7355 = vmatpush1.bf16.msra.mxu0 %v11837_v58  ;;  %v11911_v58 = vld [vmem:[#allocation9 + $0xcc] ss:$16 sps:$4 sm:$0xff]  }
 0x49f   :  { %7356 = vmatprep.subr.bf16.mxu0 %v11845_v35  ;;  %v11906_v35 = vld [vmem:[#allocation9 + $0x3c0] ss:$16 sps:$4 sm:$0xff]  }
 0x4a0   :  { %8978 = vmatpush1.bf16.msra.mxu1 %v11840_v36 }
 0x4a1   :  { %8979 = vmatprep.subr.bf16.mxu1 %v11848_v15  ;;  %v11914_v15 = vld [vmem:[#allocation9 + $0x3e4] ss:$16 sps:$4 sm:$0xff]  }
 0x4a2   :  { %7357 = vmatpush1.bf16.msra.mxu0 %v11843_v37 }
 0x4a3   :  { %7358 = vmatprep.subr.bf16.mxu0 %v11851_v54  ;;  %v11909_v54 = vld [vmem:[#allocation9 + $0xc8] ss:$16 sps:$4 sm:$0xff]  }
 0x4a4   :  { %8980 = vmatpush1.bf16.msra.mxu1 %v11846_v31 }
 0x4a5   :  { %8981 = vmatprep.subr.bf16.mxu1 %v11854_v17 }
 0x4a6   :  { %7359 = vmatpush1.bf16.msra.mxu0 %v11849_v18 }
 0x4a7   :  { %7360 = vmatprep.subr.bf16.mxu0 %v11857_v40  ;;  %v11917_v40 = vld [vmem:[#allocation9 + $0xec] ss:$16 sps:$4 sm:$0xff]  }
 0x4a8   :  { %8982 = vmatpush1.bf16.msra.mxu1 %v11852_v41 }
 0x4a9   :  { %v10881_v50 = vpop.f32.mrb[12].mxu1  ;;  %8983 = vmatprep.subr.bf16.mxu1 %v11860_v42  ;;  %v11912_v42 = vld [vmem:[#allocation9 + $0x3e0] ss:$16 sps:$4 sm:$0xff]  }
 0x4aa   :  { %v10882_v52 = vpop.f32.mrb[13].mxu1  ;;  %7361 = vmatpush1.bf16.msra.mxu0 %v11855_v44 }
 0x4ab   :  { %v12723_v55 = vadd.f32 %v10882_v52, %v10881_v50  ;;  %v10884_v56 = vpop.f32.mrb[14].mxu1  ;;  %7362 = vmatprep.subr.bf16.mxu0 %v11863_v24  ;;  %v11915_v50 = vld [vmem:[#allocation9 + $0xe8] ss:$16 sps:$4 sm:$0xff]   ;;  %v11920_v52 = vld [vmem:[#allocation9 + $0x10c] ss:$16 sps:$4 sm:$0xff]  }
 0x4ac   :  { %v10885_v29 = vpop.f32.mrb[15].mxu1  ;;  %8984 = vmatpush1.bf16.msra.mxu1 %v11858_v49  ;;  %v11992_v49 = vld [vmem:[#allocation9 + $0x404] ss:$16 sps:$4 sm:$0xff]  }
 0x4ad   :  { %v12725_v60 = vadd.f32 %v10885_v29, %v10884_v56  ;;  %8985 = vmatprep.subr.bf16.mxu1 %v11866_v51  ;;  %v7412_v31 = vadd.f32 %v12723_v55, %v4549_v25  ;;  %v11998_v55 = vld [vmem:[#allocation9 + $0x424] ss:$16 sps:$4 sm:$0xff]   ;;  %v11918_v56 = vld [vmem:[#allocation9 + $0x108] ss:$16 sps:$4 sm:$0xff]   ;;  %v11996_v29 = vld [vmem:[#allocation9 + $0x420] ss:$16 sps:$4 sm:$0xff]  }
 0x4ae   :  { %7363 = vmatpush1.bf16.msra.mxu0 %v11861_v46  ;;  %v11990_v46 = vld [vmem:[#allocation9 + $0x400] ss:$16 sps:$4 sm:$0xff]  }
 0x4af   :  { %7364 = vmatprep.subr.bf16.mxu0 %v11869_v27  ;;  %v7415_v30 = vadd.f32 %v12725_v60, %v4549_v25  ;;  %v11923_v27 = vld [vmem:[#allocation9 + $0x12c] ss:$16 sps:$4 sm:$0xff]   ;;  %v11921_v60 = vld [vmem:[#allocation9 + $0x128] ss:$16 sps:$4 sm:$0xff]   ;;  %v12032_v25 = vld [vmem:[#allocation9 + $0x4e0] ss:$16 sps:$4 sm:$0xff]  }
 0x4b0   :  { %8986 = vmatpush1.bf16.msra.mxu1 %v11864_v59  ;;  %v12004_v59 = vld [vmem:[#allocation9 + $0x444] ss:$16 sps:$4 sm:$0xff]  }
 0x4b1   :  { %8987 = vmatprep.subr.bf16.mxu1 %v11872_v61  ;;  %v11926_v61 = vld [vmem:[#allocation9 + $0x14c] ss:$16 sps:$4 sm:$0xff]  }
 0x4b2   :  { %7365 = vmatpush1.bf16.msra.mxu0 %v11867_v8  ;;  %v12002_v8 = vld [vmem:[#allocation9 + $0x440] ss:$16 sps:$4 sm:$0xff]  }
 0x4b3   :  { %9100 = vmatprep.subr.bf16.mxu0 %v11875_v62  ;;  %v12010_v62 = vld [vmem:[#allocation9 + $0x464] ss:$16 sps:$4 sm:$0xff]  }
 0x4b4   :  { %8988 = vmatpush1.bf16.msra.mxu1 %v11870_v57  ;;  %v11924_v57 = vld [vmem:[#allocation9 + $0x148] ss:$16 sps:$4 sm:$0xff]  }
 0x4b5   :  { %7367 = vmatmul.mubr.bf16.vlgmr.msra.gmra.mrb[12].mxu0 %v12673_v23  ;;  %8989 = vmatprep.subr.bf16.mxu1 %v11878_v1  ;;  %v11896_v23 = vld [vmem:[#allocation9 + $0x384] ss:$16 sps:$4 sm:$0xff]   ;;  %v11929_v1 = vld [vmem:[#allocation9 + $0x16c] ss:$16 sps:$4 sm:$0xff]  }
 0x4b6   :  { %9101 = vmatpush1.bf16.msra.mxu0 %v11873_v4  ;;  %9132 = vmatprep.mubr.bf16.mxu0 %v12716_v20  ;;  %v11894_v20 = vld [vmem:[#allocation9 + $0x380] ss:$16 sps:$4 sm:$0xff]  }
 0x4b7   :  { %9102 = vmatprep.subr.bf16.mxu0 %v11881_v5  ;;  %v12008_v4 = vld [vmem:[#allocation9 + $0x460] ss:$16 sps:$4 sm:$0xff]   ;;  %v12016_v5 = vld [vmem:[#allocation9 + $0x484] ss:$16 sps:$4 sm:$0xff]  }
 0x4b8   :  { %8990 = vmatpush1.bf16.msra.mxu1 %v11876_v9  ;;  %v11927_v9 = vld [vmem:[#allocation9 + $0x168] ss:$16 sps:$4 sm:$0xff]  }
 0x4b9   :  { %8991 = vmatprep.subr.bf16.mxu1 %v11884_v10  ;;  %v11932_v10 = vld [vmem:[#allocation9 + $0x18c] ss:$16 sps:$4 sm:$0xff]  }
 0x4ba   :  { %9103 = vmatpush1.bf16.msra.mxu0 %v11879_v12  ;;  %v12014_v12 = vld [vmem:[#allocation9 + $0x480] ss:$16 sps:$4 sm:$0xff]  }
 0x4bb   :  { %9104 = vmatprep.subr.bf16.mxu0 %v11887_v2  ;;  %v12022_v2 = vld [vmem:[#allocation9 + $0x4a4] ss:$16 sps:$4 sm:$0xff]  }
 0x4bc   :  { %8992 = vmatpush1.bf16.msra.mxu1 %v11882_v45  ;;  %v11930_v45 = vld [vmem:[#allocation9 + $0x188] ss:$16 sps:$4 sm:$0xff]  }
 0x4bd   :  { %8993 = vmatprep.subr.bf16.mxu1 %v11890_v13  ;;  %v11935_v13 = vld [vmem:[#allocation9 + $0x1ac] ss:$16 sps:$4 sm:$0xff]  }
 0x4be   :  { %9105 = vmatpush1.bf16.msra.mxu0 %v11885_v14  ;;  %v12020_v14 = vld [vmem:[#allocation9 + $0x4a0] ss:$16 sps:$4 sm:$0xff]  }
 0x4bf   :  { %9106 = vmatprep.subr.bf16.mxu0 %v11893_v19  ;;  %v12028_v19 = vld [vmem:[#allocation9 + $0x4c4] ss:$16 sps:$4 sm:$0xff]  }
 0x4c0   :  { %8994 = vmatpush1.bf16.msra.mxu1 %v11888_v53  ;;  %v11933_v53 = vld [vmem:[#allocation9 + $0x1a8] ss:$16 sps:$4 sm:$0xff]  }
 0x4c1   :  { %8995 = vmatprep.subr.bf16.mxu1 %v11896_v23  ;;  %v11938_v23 = vld [vmem:[#allocation9 + $0x1cc] ss:$16 sps:$4 sm:$0xff]  }
 0x4c2   :  { %9107 = vmatpush1.bf16.msra.mxu0 %v11891_v22  ;;  %v12026_v22 = vld [vmem:[#allocation9 + $0x4c0] ss:$16 sps:$4 sm:$0xff]  }
 0x4c3   :  { %9108 = vmatprep.subr.bf16.mxu0 %v11899_v26 }
 0x4c4   :  { %8996 = vmatpush1.bf16.msra.mxu1 %v11894_v20  ;;  %v12034_v20 = vld [vmem:[#allocation9 + $0x4e4] ss:$16 sps:$4 sm:$0xff]  }
 0x4c5   :  { %8997 = vmatprep.subr.bf16.mxu1 %v11902_v28 }
 0x4c6   :  { %9109 = vmatpush1.bf16.msra.mxu0 %v11897_v3  ;;  %v11936_v3 = vld [vmem:[#allocation9 + $0x1c8] ss:$16 sps:$4 sm:$0xff]  }
 0x4c7   :  { %9110 = vmatprep.subr.bf16.mxu0 %v11905_v32 }
 0x4c8   :  { %8998 = vmatpush1.bf16.msra.mxu1 %v11900_v6 }
 0x4c9   :  { %v10903_v36 = vpop.f32.mrb[16].mxu1  ;;  %8999 = vmatprep.subr.bf16.mxu1 %v11908_v33  ;;  %v11941_v33 = vld [vmem:[#allocation9 + $0x1ec] ss:$16 sps:$4 sm:$0xff]  }
 0x4ca   :  { %v10904_v37 = vpop.f32.mrb[17].mxu1  ;;  %9111 = vmatpush1.bf16.msra.mxu0 %v11903_v34 }
 0x4cb   :  { %v10905_v17 = vadd.f32 %v10904_v37, %v10903_v36  ;;  %v10906_v18 = vpop.f32.mrb[18].mxu1  ;;  %9112 = vmatprep.subr.bf16.mxu0 %v11911_v58  ;;  %v12040_v36 = vld [vmem:[#allocation9 + $0x504] ss:$16 sps:$4 sm:$0xff]  }
 0x4cc   :  { %v10907_v41 = vpop.f32.mrb[19].mxu1  ;;  %9000 = vmatpush1.bf16.msra.mxu1 %v11906_v35 }
 0x4cd   :  { %v12734_v44 = vadd.f32 %v10905_v17, %v7412_v31  ;;  %v10908_v24 = vadd.f32 %v10907_v41, %v10906_v18  ;;  %9001 = vmatprep.subr.bf16.mxu1 %v11914_v15  ;;  %v11939_v15 = vld [vmem:[#allocation9 + $0x1e8] ss:$16 sps:$4 sm:$0xff]   ;;  %v12038_v31 = vld [vmem:[#allocation9 + $0x500] ss:$16 sps:$4 sm:$0xff]   ;;  %v12046_v17 = vld [vmem:[#allocation9 + $0x524] ss:$16 sps:$4 sm:$0xff]  }
 0x4ce   :  { %9113 = vmatpush1.bf16.msra.mxu0 %v11909_v54  ;;  %v11944_v54 = vld [vmem:[#allocation9 + $0x20c] ss:$16 sps:$4 sm:$0xff]   ;;  %v11942_v18 = vld [vmem:[#allocation9 + $0x208] ss:$16 sps:$4 sm:$0xff]   ;;  %v12044_v41 = vld [vmem:[#allocation9 + $0x520] ss:$16 sps:$4 sm:$0xff]  }
 0x4cf   :  { %v12736_v51 = vadd.f32 %v10908_v24, %v7415_v30  ;;  %9114 = vmatprep.subr.bf16.mxu0 %v11917_v40  ;;  %v11947_v40 = vld [vmem:[#allocation9 + $0x22c] ss:$16 sps:$4 sm:$0xff]   ;;  %v11945_v30 = vld [vmem:[#allocation9 + $0x228] ss:$16 sps:$4 sm:$0xff]   ;;  %v12050_v24 = vld [vmem:[#allocation9 + $0x540] ss:$16 sps:$4 sm:$0xff]  }
 0x4d0   :  { %9002 = vmatpush1.bf16.msra.mxu1 %v11912_v42  ;;  %v12052_v42 = vld [vmem:[#allocation9 + $0x544] ss:$16 sps:$4 sm:$0xff]  }
 0x4d1   :  { %9014 = vmatprep.subr.bf16.mxu1 %v11992_v49  ;;  %v12058_v49 = vld [vmem:[#allocation9 + $0x564] ss:$16 sps:$4 sm:$0xff]  }
 0x4d2   :  { %9115 = vmatpush1.bf16.msra.mxu0 %v11915_v50  ;;  %v11948_v50 = vld [vmem:[#allocation9 + $0x248] ss:$16 sps:$4 sm:$0xff]  }
 0x4d3   :  { %9004 = vmatmul.mubr.bf16.vlgmr.msra.gmra.mrb[28].mxu1 %v12714_v16  ;;  %9116 = vmatprep.subr.bf16.mxu0 %v11920_v52  ;;  %v12056_v52 = vld [vmem:[#allocation9 + $0x560] ss:$16 sps:$4 sm:$0xff]  }
 0x4d4   :  { %9015 = vmatpush1.bf16.msra.mxu1 %v11990_v46  ;;  %v11951_v46 = vld [vmem:[#allocation9 + $0x268] ss:$16 sps:$4 sm:$0xff]  }
 0x4d5   :  { %9016 = vmatprep.subr.bf16.mxu1 %v11998_v55  ;;  %v11956_v55 = vld [vmem:[#allocation9 + $0x28c] ss:$16 sps:$4 sm:$0xff]  }
 0x4d6   :  { %9117 = vmatpush1.bf16.msra.mxu0 %v11918_v56  ;;  %v12070_v56 = vld [vmem:[#allocation9 + $0x5a4] ss:$16 sps:$4 sm:$0xff]  }
 0x4d7   :  { %9118 = vmatprep.subr.bf16.mxu0 %v11923_v27  ;;  %v11954_v27 = vld [vmem:[#allocation9 + $0x288] ss:$16 sps:$4 sm:$0xff]  }
 0x4d8   :  { %9017 = vmatpush1.bf16.msra.mxu1 %v11996_v29  ;;  %v11959_v29 = vld [vmem:[#allocation9 + $0x2ac] ss:$16 sps:$4 sm:$0xff]  }
 0x4d9   :  { %9018 = vmatprep.subr.bf16.mxu1 %v12004_v59  ;;  %v12068_v59 = vld [vmem:[#allocation9 + $0x5a0] ss:$16 sps:$4 sm:$0xff]  }
 0x4da   :  { %9119 = vmatpush1.bf16.msra.mxu0 %v11921_v60  ;;  %v11957_v60 = vld [vmem:[#allocation9 + $0x2a8] ss:$16 sps:$4 sm:$0xff]  }
 0x4db   :  { %9120 = vmatprep.subr.bf16.mxu0 %v11926_v61  ;;  %v11962_v61 = vld [vmem:[#allocation9 + $0x2cc] ss:$16 sps:$4 sm:$0xff]  }
 0x4dc   :  { %9019 = vmatpush1.bf16.msra.mxu1 %v12002_v8 }
 0x4dd   :  { %9020 = vmatprep.subr.bf16.mxu1 %v12010_v62 }
 0x4de   :  { %9121 = vmatpush1.bf16.msra.mxu0 %v11924_v57  ;;  %v11960_v57 = vld [vmem:[#allocation9 + $0x2c8] ss:$16 sps:$4 sm:$0xff]  }
 0x4df   :  { %9122 = vmatprep.subr.bf16.mxu0 %v11929_v1  ;;  %v12076_v1 = vld [vmem:[#allocation9 + $0x5c4] ss:$16 sps:$4 sm:$0xff]  }
 0x4e0   :  { %9021 = vmatpush1.bf16.msra.mxu1 %v12008_v4 }
 0x4e1   :  { %9022 = vmatprep.subr.bf16.mxu1 %v12016_v5 }
 0x4e2   :  { %9123 = vmatpush1.bf16.msra.mxu0 %v11927_v9  ;;  %v11965_v9 = vld [vmem:[#allocation9 + $0x2ec] ss:$16 sps:$4 sm:$0xff]  }
 0x4e3   :  { %9124 = vmatprep.subr.bf16.mxu0 %v11932_v10  ;;  %v12074_v10 = vld [vmem:[#allocation9 + $0x5c0] ss:$16 sps:$4 sm:$0xff]  }
 0x4e4   :  { %9023 = vmatpush1.bf16.msra.mxu1 %v12014_v12 }
 0x4e5   :  { %9024 = vmatprep.subr.bf16.mxu1 %v12022_v2 }
 0x4e6   :  { %9125 = vmatpush1.bf16.msra.mxu0 %v11930_v45 }
 0x4e7   :  { %9126 = vmatprep.subr.bf16.mxu0 %v11935_v13  ;;  %v11963_v13 = vld [vmem:[#allocation9 + $0x2e8] ss:$16 sps:$4 sm:$0xff]  }
 0x4e8   :  { %9025 = vmatpush1.bf16.msra.mxu1 %v12020_v14  ;;  %v12082_v14 = vld [vmem:[#allocation9 + $0x5e4] ss:$16 sps:$4 sm:$0xff]  }
 0x4e9   :  { %v10925_v26 = vpop.f32.mrb[20].mxu1  ;;  %9026 = vmatprep.subr.bf16.mxu1 %v12028_v19 }
 0x4ea   :  { %v10926_v28 = vpop.f32.mrb[21].mxu1  ;;  %9127 = vmatpush1.bf16.msra.mxu0 %v11933_v53  ;;  %v11968_v53 = vld [vmem:[#allocation9 + $0x30c] ss:$16 sps:$4 sm:$0xff]  }
 0x4eb   :  { %v10927_v32 = vadd.f32 %v10926_v28, %v10925_v26  ;;  %v10928_v6 = vpop.f32.mrb[22].mxu1  ;;  %9128 = vmatprep.subr.bf16.mxu0 %v11938_v23  ;;  %v12080_v23 = vld [vmem:[#allocation9 + $0x5e0] ss:$16 sps:$4 sm:$0xff]   ;;  %v12088_v28 = vld [vmem:[#allocation9 + $0x604] ss:$16 sps:$4 sm:$0xff]  }
 0x4ec   :  { %v10929_v34 = vpop.f32.mrb[23].mxu1  ;;  %9027 = vmatpush1.bf16.msra.mxu1 %v12026_v22 }
 0x4ed   :  { %v12740_v58 = vadd.f32 %v10927_v32, %v12734_v44  ;;  %v10930_v35 = vadd.f32 %v10929_v34, %v10928_v6  ;;  %9028 = vmatprep.subr.bf16.mxu1 %v12034_v20  ;;  %v11950_v44 = vld [vmem:[#allocation9 + $0x24c] ss:$16 sps:$4 sm:$0xff]   ;;  %v11966_v20 = vld [vmem:[#allocation9 + $0x308] ss:$16 sps:$4 sm:$0xff]  }
 0x4ee   :  { %9129 = vmatpush1.bf16.msra.mxu0 %v11936_v3  ;;  %v11971_v32 = vld [vmem:[#allocation9 + $0x32c] ss:$16 sps:$4 sm:$0xff]   ;;  %v11969_v6 = vld [vmem:[#allocation9 + $0x328] ss:$16 sps:$4 sm:$0xff]  }
 0x4ef   :  { %v12743_v37 = vadd.f32 %v10930_v35, %v12736_v51  ;;  %9130 = vmatprep.subr.bf16.mxu0 %v11941_v33  ;;  %v11953_v51 = vld [vmem:[#allocation9 + $0x26c] ss:$16 sps:$4 sm:$0xff]   ;;  %v11972_v34 = vld [vmem:[#allocation9 + $0x348] ss:$16 sps:$4 sm:$0xff]  }
 0x4f0   :  { %9029 = vmatpush1.bf16.msra.mxu1 %v12032_v25  ;;  %v11974_v33 = vld [vmem:[#allocation9 + $0x34c] ss:$16 sps:$4 sm:$0xff]  }
 0x4f1   :  { %9030 = vmatprep.subr.bf16.mxu1 %v12040_v36  ;;  %v11977_v25 = vld [vmem:[#allocation9 + $0x36c] ss:$16 sps:$4 sm:$0xff]   ;;  %v11978_v36 = vld [vmem:[#allocation9 + $0x388] ss:$16 sps:$4 sm:$0xff]  }
 0x4f2   :  { %9131 = vmatpush1.bf16.msra.mxu0 %v11939_v15  ;;  %v11980_v35 = vld [vmem:[#allocation9 + $0x38c] ss:$16 sps:$4 sm:$0xff]  }
 0x4f3   :  { %9143 = vmatprep.subr.bf16.mxu0 %v11944_v54  ;;  %v11983_v15 = vld [vmem:[#allocation9 + $0x3ac] ss:$16 sps:$4 sm:$0xff]  }
 0x4f4   :  { %9031 = vmatpush1.bf16.msra.mxu1 %v12038_v31  ;;  %v11986_v54 = vld [vmem:[#allocation9 + $0x3cc] ss:$16 sps:$4 sm:$0xff]   ;;  %v11984_v31 = vld [vmem:[#allocation9 + $0x3c8] ss:$16 sps:$4 sm:$0xff]  }
 0x4f5   :  { %9133 = vmatmul.mubr.bf16.vlgmr.msra.gmra.mrb[16].mxu0 %v12712_v43  ;;  %9032 = vmatprep.subr.bf16.mxu1 %v12046_v17  ;;  %v12064_v43 = vld [vmem:[#allocation9 + $0x584] ss:$16 sps:$4 sm:$0xff]   ;;  %v11989_v17 = vld [vmem:[#allocation9 + $0x3ec] ss:$16 sps:$4 sm:$0xff]  }
 0x4f6   :  { %9144 = vmatpush1.bf16.msra.mxu0 %v11942_v18  ;;  %9175 = vmatprep.mubr.bf16.mxu0 %v12718_v21  ;;  %v12062_v21 = vld [vmem:[#allocation9 + $0x580] ss:$16 sps:$4 sm:$0xff]   ;;  %v11987_v18 = vld [vmem:[#allocation9 + $0x3e8] ss:$16 sps:$4 sm:$0xff]  }
 0x4f7   :  { %9145 = vmatprep.subr.bf16.mxu0 %v11947_v40  ;;  %v11995_v40 = vld [vmem:[#allocation9 + $0x40c] ss:$16 sps:$4 sm:$0xff]  }
 0x4f8   :  { %9033 = vmatpush1.bf16.msra.mxu1 %v12044_v41  ;;  %v11993_v41 = vld [vmem:[#allocation9 + $0x408] ss:$16 sps:$4 sm:$0xff]  }
 0x4f9   :  { %9034 = vmatprep.subr.bf16.mxu1 %v12052_v42  ;;  %v12001_v42 = vld [vmem:[#allocation9 + $0x42c] ss:$16 sps:$4 sm:$0xff]  }
 0x4fa   :  { %9146 = vmatpush1.bf16.msra.mxu0 %v11945_v30  ;;  %v11999_v30 = vld [vmem:[#allocation9 + $0x428] ss:$16 sps:$4 sm:$0xff]  }
 0x4fb   :  { %9147 = vmatprep.subr.bf16.mxu0 %v11950_v44  ;;  %v12007_v44 = vld [vmem:[#allocation9 + $0x44c] ss:$16 sps:$4 sm:$0xff]  }
 0x4fc   :  { %9035 = vmatpush1.bf16.msra.mxu1 %v12050_v24  ;;  %v12005_v24 = vld [vmem:[#allocation9 + $0x448] ss:$16 sps:$4 sm:$0xff]  }
 0x4fd   :  { %9036 = vmatprep.subr.bf16.mxu1 %v12058_v49  ;;  %v12013_v49 = vld [vmem:[#allocation9 + $0x46c] ss:$16 sps:$4 sm:$0xff]  }
 0x4fe   :  { %9148 = vmatpush1.bf16.msra.mxu0 %v11948_v50  ;;  %v12011_v50 = vld [vmem:[#allocation9 + $0x468] ss:$16 sps:$4 sm:$0xff]  }
 0x4ff   :  { %9149 = vmatprep.subr.bf16.mxu0 %v11953_v51  ;;  %v12019_v51 = vld [vmem:[#allocation9 + $0x48c] ss:$16 sps:$4 sm:$0xff]  }
 0x500   :  { %9037 = vmatpush1.bf16.msra.mxu1 %v12056_v52  ;;  %v12017_v52 = vld [vmem:[#allocation9 + $0x488] ss:$16 sps:$4 sm:$0xff]  }
 0x501   :  { %9038 = vmatprep.subr.bf16.mxu1 %v12064_v43  ;;  %v12025_v43 = vld [vmem:[#allocation9 + $0x4ac] ss:$16 sps:$4 sm:$0xff]  }
 0x502   :  { %9150 = vmatpush1.bf16.msra.mxu0 %v11951_v46  ;;  %v12023_v46 = vld [vmem:[#allocation9 + $0x4a8] ss:$16 sps:$4 sm:$0xff]  }
 0x503   :  { %9151 = vmatprep.subr.bf16.mxu0 %v11956_v55  ;;  %v12029_v55 = vld [vmem:[#allocation9 + $0x4c8] ss:$16 sps:$4 sm:$0xff]  }
 0x504   :  { %9039 = vmatpush1.bf16.msra.mxu1 %v12062_v21  ;;  %v12037_v21 = vld [vmem:[#allocation9 + $0x4ec] ss:$16 sps:$4 sm:$0xff]  }
 0x505   :  { %9040 = vmatprep.subr.bf16.mxu1 %v12070_v56  ;;  %v12035_v56 = vld [vmem:[#allocation9 + $0x4e8] ss:$16 sps:$4 sm:$0xff]  }
 0x506   :  { %9152 = vmatpush1.bf16.msra.mxu0 %v11954_v27  ;;  %v12043_v27 = vld [vmem:[#allocation9 + $0x50c] ss:$16 sps:$4 sm:$0xff]  }
 0x507   :  { %9153 = vmatprep.subr.bf16.mxu0 %v11959_v29  ;;  %v12041_v29 = vld [vmem:[#allocation9 + $0x508] ss:$16 sps:$4 sm:$0xff]  }
 0x508   :  { %9041 = vmatpush1.bf16.msra.mxu1 %v12068_v59  ;;  %v12049_v59 = vld [vmem:[#allocation9 + $0x52c] ss:$16 sps:$4 sm:$0xff]  }
 0x509   :  { %v10947_v8 = vpop.f32.mrb[24].mxu1  ;;  %9042 = vmatprep.subr.bf16.mxu1 %v12076_v1  ;;  %v12067_v1 = vld [vmem:[#allocation9 + $0x58c] ss:$16 sps:$4 sm:$0xff]  }
 0x50a   :  { %v10948_v62 = vpop.f32.mrb[25].mxu1  ;;  %9154 = vmatpush1.bf16.msra.mxu0 %v11957_v60  ;;  %v12047_v60 = vld [vmem:[#allocation9 + $0x528] ss:$16 sps:$4 sm:$0xff]  }
 0x50b   :  { %v10949_v4 = vadd.f32 %v10948_v62, %v10947_v8  ;;  %v10950_v5 = vpop.f32.mrb[26].mxu1  ;;  %9155 = vmatprep.subr.bf16.mxu0 %v11962_v61  ;;  %v12055_v61 = vld [vmem:[#allocation9 + $0x54c] ss:$16 sps:$4 sm:$0xff]   ;;  %v12053_v8 = vld [vmem:[#allocation9 + $0x548] ss:$16 sps:$4 sm:$0xff]  }
 0x50c   :  { %v10951_v12 = vpop.f32.mrb[27].mxu1  ;;  %9043 = vmatpush1.bf16.msra.mxu1 %v12074_v10  ;;  %v12061_v62 = vld [vmem:[#allocation9 + $0x56c] ss:$16 sps:$4 sm:$0xff]  }
 0x50d   :  { %v7535_v2 = vadd.f32 %v10949_v4, %v12740_v58  ;;  %v10952_v45 = vadd.f32 %v10951_v12, %v10950_v5  ;;  %9044 = vmatprep.subr.bf16.mxu1 %v12082_v14  ;;  %v11975_v58 = vld [vmem:[#allocation9 + $0x368] ss:$16 sps:$4 sm:$0xff]   ;;  %v12073_v5 = vld [vmem:[#allocation9 + $0x5ac] ss:$16 sps:$4 sm:$0xff]   ;;  %v4545_v14 = vrot.slane %v12702_v38, %v678_v48  ;;  %v12369_v48 = vmov 0  }
 0x50e   :  { %9156 = vmatpush1.bf16.msra.mxu0 %v11960_v57  ;;  %v12059_v57 = vld [vmem:[#allocation9 + $0x568] ss:$16 sps:$4 sm:$0xff]   ;;  %v12079_v10 = vld [vmem:[#allocation9 + $0x5cc] ss:$16 sps:$4 sm:$0xff]  }
 0x50f   :  { %v7538_v19 = vadd.f32 %v10952_v45, %v12743_v37  ;;  %9157 = vmatprep.subr.bf16.mxu0 %v11965_v9  ;;  %v7547_v22 = vmax.f32 %v7535_v2, 0.0  ;;  %v11981_v37 = vld [vmem:[#allocation9 + $0x3a8] ss:$16 sps:$4 sm:$0xff]   ;;  %v12085_v2 = vld [vmem:[#allocation9 + $0x5ec] ss:$16 sps:$4 sm:$0xff]  }
 0x510   :  { %9045 = vmatpush1.bf16.msra.mxu1 %v12080_v23  ;;  %v12065_v4 = vld [vmem:[#allocation9 + $0x588] ss:$16 sps:$4 sm:$0xff]  }
 0x511   :  { %v7554_v26 = vmax.f32 %v7538_v19, 0.0  ;;  %9057 = vmatprep.subr.bf16.mxu1 %v12088_v28  ;;  %v12071_v9 = vld [vmem:[#allocation9 + $0x5a8] ss:$16 sps:$4 sm:$0xff]  }
 0x512   :  { %9158 = vmatpush1.bf16.msra.mxu0 %v11963_v13  ;;  %v12077_v12 = vld [vmem:[#allocation9 + $0x5c8] ss:$16 sps:$4 sm:$0xff]   ;;  %v4541_v13 = vrot.slane %v12702_v38, %v674_v47  ;;  %v12091_v47 = vld [vmem:[#allocation9 + $0x624] ss:$16 sps:$4 sm:$0xff]  }
 0x513   :  { %v12749_v3 = vpack.c.bf16 %v7554_v26, %v7547_v22  ;;  %9159 = vmatprep.subr.bf16.mxu0 %v11968_v53  ;;  %v12083_v45 = vld [vmem:[#allocation9 + $0x5e8] ss:$16 sps:$4 sm:$0xff]   ;;  %v12094_v38 = vld [vmem:[#allocation9 + $0x644] ss:$16 sps:$4 sm:$0xff]  }
 0x516   :  { %9160 = vmatpush1.bf16.msra.mxu0 %v11966_v20 }
 0x517   :  { %9161 = vmatprep.subr.bf16.mxu0 %v11971_v32 }
 0x51a   :  { %9162 = vmatpush1.bf16.msra.mxu0 %v11969_v6 }
 0x51b   :  { %9163 = vmatprep.subr.bf16.mxu0 %v11974_v33 }
 0x51e   :  { %9164 = vmatpush1.bf16.msra.mxu0 %v11972_v34 }
 0x51f   :  { %9165 = vmatprep.subr.bf16.mxu0 %v11977_v25 }
 0x522   :  { %9166 = vmatpush1.bf16.msra.mxu0 %v11975_v58 }
 0x523   :  { %9167 = vmatprep.subr.bf16.mxu0 %v11980_v35 }
 0x526   :  { %9168 = vmatpush1.bf16.msra.mxu0 %v11978_v36  ;;  %v12086_v36 = vld [vmem:[#allocation9 + $0x600] ss:$16 sps:$4 sm:$0xff]  }
 0x527   :  { %9169 = vmatprep.subr.bf16.mxu0 %v11983_v15  ;;  %v12092_v15 = vld [vmem:[#allocation9 + $0x640] ss:$16 sps:$4 sm:$0xff]  }
 0x52a   :  { %9170 = vmatpush1.bf16.msra.mxu0 %v11981_v37  ;;  %v12097_v37 = vld [vmem:[#allocation9 + $0x664] ss:$16 sps:$4 sm:$0xff]  }
 0x52b   :  { %9171 = vmatprep.subr.bf16.mxu0 %v11986_v54  ;;  %v12095_v54 = vld [vmem:[#allocation9 + $0x660] ss:$16 sps:$4 sm:$0xff]  }
 0x52e   :  { %9172 = vmatpush1.bf16.msra.mxu0 %v11984_v31  ;;  %v12100_v31 = vld [vmem:[#allocation9 + $0x684] ss:$16 sps:$4 sm:$0xff]  }
 0x52f   :  { %9173 = vmatprep.subr.bf16.mxu0 %v11989_v17  ;;  %v12098_v17 = vld [vmem:[#allocation9 + $0x680] ss:$16 sps:$4 sm:$0xff]  }
 0x532   :  { %9174 = vmatpush1.bf16.msra.mxu0 %v11987_v18  ;;  %v12103_v18 = vld [vmem:[#allocation9 + $0x6a4] ss:$16 sps:$4 sm:$0xff]  }
 0x533   :  { %9186 = vmatprep.subr.bf16.mxu0 %v11995_v40  ;;  %v12101_v40 = vld [vmem:[#allocation9 + $0x6a0] ss:$16 sps:$4 sm:$0xff]  }
 0x535   :  { %9176 = vmatmul.mubr.bf16.vlgmr.msra.gmra.mrb[16].mxu0 %v12714_v16  ;;  %v12031_v16 = vld [vmem:[#allocation9 + $0x4cc] ss:$16 sps:$4 sm:$0xff]  }
 0x536   :  { %9187 = vmatpush1.bf16.msra.mxu0 %v11993_v41  ;;  %v12106_v41 = vld [vmem:[#allocation9 + $0x6c4] ss:$16 sps:$4 sm:$0xff]  }
 0x537   :  { %9188 = vmatprep.subr.bf16.mxu0 %v12001_v42  ;;  %v12104_v42 = vld [vmem:[#allocation9 + $0x6c0] ss:$16 sps:$4 sm:$0xff]  }
 0x53a   :  { %9189 = vmatpush1.bf16.msra.mxu0 %v11999_v30  ;;  %v12109_v30 = vld [vmem:[#allocation9 + $0x6e4] ss:$16 sps:$4 sm:$0xff]  }
 0x53b   :  { %9190 = vmatprep.subr.bf16.mxu0 %v12007_v44  ;;  %v12107_v44 = vld [vmem:[#allocation9 + $0x6e0] ss:$16 sps:$4 sm:$0xff]  }
 0x53e   :  { %9191 = vmatpush1.bf16.msra.mxu0 %v12005_v24  ;;  %v12112_v24 = vld [vmem:[#allocation9 + $0x60c] ss:$16 sps:$4 sm:$0xff]  }
 0x53f   :  { %9192 = vmatprep.subr.bf16.mxu0 %v12013_v49  ;;  %v12110_v49 = vld [vmem:[#allocation9 + $0x608] ss:$16 sps:$4 sm:$0xff]  }
 0x542   :  { %9193 = vmatpush1.bf16.msra.mxu0 %v12011_v50  ;;  %v12115_v50 = vld [vmem:[#allocation9 + $0x62c] ss:$16 sps:$4 sm:$0xff]  }
 0x543   :  { %9194 = vmatprep.subr.bf16.mxu0 %v12019_v51  ;;  %v12113_v51 = vld [vmem:[#allocation9 + $0x628] ss:$16 sps:$4 sm:$0xff]  }
 0x546   :  { %9195 = vmatpush1.bf16.msra.mxu0 %v12017_v52  ;;  %v12118_v52 = vld [vmem:[#allocation9 + $0x64c] ss:$16 sps:$4 sm:$0xff]  }
 0x547   :  { %9196 = vmatprep.subr.bf16.mxu0 %v12025_v43  ;;  %v12116_v43 = vld [vmem:[#allocation9 + $0x648] ss:$16 sps:$4 sm:$0xff]  }
 0x54a   :  { %9197 = vmatpush1.bf16.msra.mxu0 %v12023_v46  ;;  %v12121_v46 = vld [vmem:[#allocation9 + $0x66c] ss:$16 sps:$4 sm:$0xff]  }
 0x54b   :  { %9198 = vmatprep.subr.bf16.mxu0 %v12031_v16  ;;  %v12119_v16 = vld [vmem:[#allocation9 + $0x668] ss:$16 sps:$4 sm:$0xff]  }
 0x54e   :  { %9199 = vmatpush1.bf16.msra.mxu0 %v12029_v55  ;;  %v12124_v55 = vld [vmem:[#allocation9 + $0x68c] ss:$16 sps:$4 sm:$0xff]  }
 0x54f   :  { %9200 = vmatprep.subr.bf16.mxu0 %v12037_v21  ;;  %v12122_v21 = vld [vmem:[#allocation9 + $0x688] ss:$16 sps:$4 sm:$0xff]  }
 0x552   :  { %9201 = vmatpush1.bf16.msra.mxu0 %v12035_v56  ;;  %v12127_v56 = vld [vmem:[#allocation9 + $0x6ac] ss:$16 sps:$4 sm:$0xff]  }
 0x553   :  { %9202 = vmatprep.subr.bf16.mxu0 %v12043_v27  ;;  %v12125_v27 = vld [vmem:[#allocation9 + $0x6a8] ss:$16 sps:$4 sm:$0xff]  }
 0x556   :  { %9203 = vmatpush1.bf16.msra.mxu0 %v12041_v29  ;;  %v12130_v29 = vld [vmem:[#allocation9 + $0x6cc] ss:$16 sps:$4 sm:$0xff]  }
 0x557   :  { %9204 = vmatprep.subr.bf16.mxu0 %v12049_v59  ;;  %v12128_v59 = vld [vmem:[#allocation9 + $0x6c8] ss:$16 sps:$4 sm:$0xff]  }
 0x55a   :  { %9205 = vmatpush1.bf16.msra.mxu0 %v12047_v60  ;;  %v12133_v60 = vld [vmem:[#allocation9 + $0x6ec] ss:$16 sps:$4 sm:$0xff]  }
 0x55b   :  { %9206 = vmatprep.subr.bf16.mxu0 %v12055_v61  ;;  %v12131_v61 = vld [vmem:[#allocation9 + $0x6e8] ss:$16 sps:$4 sm:$0xff]  }
 0x55e   :  { %9207 = vmatpush1.bf16.msra.mxu0 %v12053_v8  ;;  %v12134_v8 = vld [vmem:[#allocation12 + $0x40] sm:$0xff]  }
 0x55f   :  { %9208 = vmatprep.subr.bf16.mxu0 %v12061_v62  ;;  %v12135_v62 = vld [vmem:[#allocation12] sm:$0xff]  }
 0x562   :  { %9209 = vmatpush1.bf16.msra.mxu0 %v12059_v57  ;;  %v12136_v57 = vld [vmem:[#allocation12 + $0x48] sm:$0xff]  }
 0x563   :  { %9210 = vmatprep.subr.bf16.mxu0 %v12067_v1  ;;  %v12137_v1 = vld [vmem:[#allocation12 + $0x8] sm:$0xff]  }
 0x566   :  { %9211 = vmatpush1.bf16.msra.mxu0 %v12065_v4  ;;  %v12138_v4 = vld [vmem:[#allocation12 + $0x50] sm:$0xff]  }
 0x567   :  { %9212 = vmatprep.subr.bf16.mxu0 %v12073_v5  ;;  %v12139_v5 = vld [vmem:[#allocation12 + $0x10] sm:$0xff]  }
 0x56a   :  { %9213 = vmatpush1.bf16.msra.mxu0 %v12071_v9  ;;  %v12140_v9 = vld [vmem:[#allocation12 + $0x58] sm:$0xff]  }
 0x56b   :  { %9214 = vmatprep.subr.bf16.mxu0 %v12079_v10  ;;  %v12141_v10 = vld [vmem:[#allocation12 + $0x18] sm:$0xff]  }
 0x56e   :  { %9215 = vmatpush1.bf16.msra.mxu0 %v12077_v12  ;;  %v12142_v12 = vld [vmem:[#allocation12 + $0x60] sm:$0xff]  }
 0x56f   :  { %9216 = vmatprep.subr.bf16.mxu0 %v12085_v2  ;;  %v12143_v2 = vld [vmem:[#allocation12 + $0x20] sm:$0xff]  }
 0x572   :  { %9217 = vmatpush1.bf16.msra.mxu0 %v12083_v45  ;;  %v12145_v45 = vld [vmem:[#allocation12 + $0x28] sm:$0xff]  }
 0x588   :  { %v7368_v19 = vpop.f32.mrb[12].mxu0 }
 0x589   :  { %v11021_v53 = vadd.f32 %v7368_v19, %v4541_v13  ;;  %v7370_v23 = vpop.f32.mrb[13].mxu0  ;;  %v12148_v19 = vld [vmem:[#allocation12 + $0x78] sm:$0xff]  }
 0x58a   :  { %v11022_v22 = vadd.f32 %v7370_v23, %v4545_v14  ;;  %v7372_v26 = vpop.f32.mrb[14].mxu0  ;;  %v12150_v23 = vld [vmem:[#allocation12 + $0xc0] sm:$0xff]  }
 0x58b   :  { %v11023_v20 = vadd.f32 %v7372_v26, %v4541_v13  ;;  %v7374_v28 = vpop.f32.mrb[15].mxu0  ;;  %v7545_v6 = vmax.f32 %v11021_v53, 0.0  ;;  %v12146_v13 = vld [vmem:[#allocation12 + $0x70] sm:$0xff]   ;;  %v12149_v53 = vld [vmem:[#allocation12 + $0x38] sm:$0xff]  }
 0x58c   :  { %v11024_v32 = vadd.f32 %v7374_v28, %v4545_v14  ;;  %v7546_v34 = vmax.f32 %v11022_v22, 0.0  ;;  %v12147_v14 = vld [vmem:[#allocation12 + $0x30] sm:$0xff]  }
 0x58d   :  { %v7552_v33 = vmax.f32 %v11023_v20, 0.0 }
 0x58e   :  { %v7553_v25 = vmax.f32 %v11024_v32, 0.0  ;;  %v7786_v32 = vld [vmem:[#allocation10] sm:$0xf] }
 0x58f   :  { %v7559_v58 = vpack.c.bf16 %v7552_v33, %v7545_v6  ;;  %v7791_v6 = vrot.slane %v7786_v32, %v12628_v63  ;;  %v7795_v33 = vrot.slane %v7786_v32, %v12634_v7  ;;  %v12153_v63 = vld [vmem:[#allocation12 + $0x88] sm:$0xff]   ;;  %v12154_v7 = vld [vmem:[#allocation12 + $0xd0] sm:$0xff]  }
 0x590   :  { %v7560_v35 = vpack.c.bf16 %v7553_v25, %v7546_v34 }
 0x592   :  { %9046 = vmatprep.mubr.bf16.mxu1 %v7560_v35  ;;  %9218 = vmatprep.mubr.bf16.mxu0 %v7560_v35 }
 0x593   :  { %9047 = vmatmul.mubr.bf16.vlgmr.msra.gmra.mrb[28].mxu1 %v7559_v58  ;;  %9219 = vmatmul.mubr.bf16.vlgmr.msra.gmra.mrb[16].mxu0 %v7559_v58 }
 0x594   :  { %9058 = vmatpush1.bf16.msra.mxu1 %v12086_v36  ;;  %9089 = vmatprep.mubr.bf16.mxu1 %v12369_v48 }
 0x595   :  { %9059 = vmatprep.subr.bf16.mxu1 %v12091_v47 }
 0x598   :  { %9060 = vmatpush1.bf16.msra.mxu1 %v12089_v39 }
 0x599   :  { %9061 = vmatprep.subr.bf16.mxu1 %v12094_v38 }
 0x59c   :  { %9062 = vmatpush1.bf16.msra.mxu1 %v12092_v15 }
 0x59d   :  { %9063 = vmatprep.subr.bf16.mxu1 %v12097_v37 }
 0x5a0   :  { %9064 = vmatpush1.bf16.msra.mxu1 %v12095_v54 }
 0x5a1   :  { %9065 = vmatprep.subr.bf16.mxu1 %v12100_v31 }
 0x5a4   :  { %9066 = vmatpush1.bf16.msra.mxu1 %v12098_v17 }
 0x5a5   :  { %9067 = vmatprep.subr.bf16.mxu1 %v12103_v18  ;;  %v12151_v18 = vld [vmem:[#allocation12 + $0x80] sm:$0xff]  }
 0x5a8   :  { %9068 = vmatpush1.bf16.msra.mxu1 %v12101_v40  ;;  %v12152_v40 = vld [vmem:[#allocation12 + $0xc8] sm:$0xff]  }
 0x5a9   :  { %9069 = vmatprep.subr.bf16.mxu1 %v12106_v41  ;;  %v12155_v41 = vld [vmem:[#allocation12 + $0x90] sm:$0xff]  }
 0x5ac   :  { %9070 = vmatpush1.bf16.msra.mxu1 %v12104_v42  ;;  %v12156_v42 = vld [vmem:[#allocation12 + $0xd8] sm:$0xff]  }
 0x5ad   :  { %9071 = vmatprep.subr.bf16.mxu1 %v12109_v30  ;;  %v12157_v30 = vld [vmem:[#allocation12 + $0x98] sm:$0xff]  }
 0x5b0   :  { %9072 = vmatpush1.bf16.msra.mxu1 %v12107_v44  ;;  %v12158_v44 = vld [vmem:[#allocation12 + $0xe0] sm:$0xff]  }
 0x5b1   :  { %9229 = vmatprep.subr.bf16.mxu1 %v12112_v24  ;;  %v12159_v24 = vld [vmem:[#allocation12 + $0xa0] sm:$0xff]  }
 0x5b3   :  { %9090 = vmatmul.mubr.bf16.vlgmr.msra.gmra.mrb[28].mxu1 %v12749_v3 }
 0x5b4   :  { %9230 = vmatpush1.bf16.msra.mxu1 %v12110_v49  ;;  %9261 = vmatprep.mubr.bf16.mxu1 %v12369_v48  ;;  %v12160_v49 = vld [vmem:[#allocation12 + $0xe8] sm:$0xff]  }
 0x5b5   :  { %9231 = vmatprep.subr.bf16.mxu1 %v12115_v50  ;;  %v7799_v50 = vrot.slane %v7786_v32, %v12631_v0 }
 0x5b8   :  { %9232 = vmatpush1.bf16.msra.mxu1 %v12113_v51  ;;  %v7803_v51 = vrot.slane %v7786_v32, %v12637_v11 }
 0x5b9   :  { %9233 = vmatprep.subr.bf16.mxu1 %v12118_v52  ;;  %v12161_v52 = vld [vmem:[#allocation12 + $0xa8] sm:$0xff]  }
 0x5bc   :  { %9234 = vmatpush1.bf16.msra.mxu1 %v12116_v43  ;;  %v12162_v43 = vld [vmem:[#allocation12 + $0xf0] sm:$0xff]  }
 0x5bd   :  { %9235 = vmatprep.subr.bf16.mxu1 %v12121_v46 }
 0x5c0   :  { %9236 = vmatpush1.bf16.msra.mxu1 %v12119_v16 }
 0x5c1   :  { %9237 = vmatprep.subr.bf16.mxu1 %v12124_v55 }
 0x5c4   :  { %9238 = vmatpush1.bf16.msra.mxu1 %v12122_v21  ;;  %v12163_v21 = vld [vmem:[#allocation12 + $0xb0] sm:$0xff]  }
 0x5c5   :  { %9239 = vmatprep.subr.bf16.mxu1 %v12127_v56 }
 0x5c8   :  { %9240 = vmatpush1.bf16.msra.mxu1 %v12125_v27 }
 0x5c9   :  { %9241 = vmatprep.subr.bf16.mxu1 %v12130_v29 }
 0x5cc   :  { %9242 = vmatpush1.bf16.msra.mxu1 %v12128_v59  ;;  %v12164_v59 = vld [vmem:[#allocation12 + $0xf8] sm:$0xff]  }
 0x5cd   :  { %9243 = vmatprep.subr.bf16.mxu1 %v12133_v60 }
 0x5d0   :  { %9244 = vmatpush1.bf16.msra.mxu1 %v12131_v61 }
 0x5d1   :  { %10953 = vmatprep.subr.bf16.mxu1 %v12134_v8 }
 0x5d3   :  { %9262 = vmatmul.mubr.bf16.vlgmr.msra.gmra.mrb[32].mxu1 %v12749_v3  ;;  %v12144_v3 = vld [vmem:[#allocation12 + $0x68] sm:$0xff]  }
 0x5d4   :  { %10954 = vmatpush3.bf16.msra.mxu1 %v12135_v62 }
 0x5d5   :  { %10955 = vmatprep.subr.bf16.mxu1 %v12136_v57  ;;  %v12165_v57 = vld [vmem:[#allocation12 + $0xb8] sm:$0xff]  }
 0x5d8   :  { %10956 = vmatpush3.bf16.msra.mxu1 %v12137_v1 }
 0x5d9   :  { %10957 = vmatprep.subr.bf16.mxu1 %v12138_v4 }
 0x5dc   :  { %10958 = vmatpush3.bf16.msra.mxu1 %v12139_v5 }
 0x5dd   :  { %10959 = vmatprep.subr.bf16.mxu1 %v12140_v9 }
 0x5e0   :  { %10960 = vmatpush3.bf16.msra.mxu1 %v12141_v10 }
 0x5e1   :  { %10961 = vmatprep.subr.bf16.mxu1 %v12142_v12 }
 0x5e4   :  { %10962 = vmatpush3.bf16.msra.mxu1 %v12143_v2 }
 0x5e5   :  { %10963 = vmatprep.subr.bf16.mxu1 %v12144_v3 }
 0x5e8   :  { %10964 = vmatpush3.bf16.msra.mxu1 %v12145_v45 }
 0x5e9   :  { %10965 = vmatprep.subr.bf16.mxu1 %v12146_v13 }
 0x5ec   :  { %10966 = vmatpush3.bf16.msra.mxu1 %v12147_v14 }
 0x5ed   :  { %10967 = vmatprep.subr.bf16.mxu1 %v12148_v19 }
 0x5f0   :  { %10968 = vmatpush3.bf16.msra.mxu1 %v12149_v53  ;;  %v10832_v53 = vld [vmem:[#allocation13] ss:$0 sm:$0xff] }
 0x5f1   :  { %10975 = vmatprep.subr.bf16.mxu1 %v12150_v23 }
 0x666   :  { %v9220_v22 = vpop.f32.mrb[16].mxu0 }
 0x667   :  { %v9222_v26 = vpop.f32.mrb[17].mxu0  ;;  %v11029_v46 = vadd.f32 %v9220_v22, %v7799_v50 }
 0x668   :  { %v9224_v20 = vpop.f32.mrb[18].mxu0  ;;  %v11031_v16 = vadd.f32 %v9222_v26, %v7803_v51 }
 0x669   :  { %v9226_v28 = vpop.f32.mrb[19].mxu0  ;;  %v11033_v56 = vadd.f32 %v9224_v20, %v7799_v50 }
 0x66a   :  { %v11035_v60 = vadd.f32 %v9226_v28, %v7803_v51 }
 0x686   :  { %v9091_v34 = vpop.f32.mrb[28].mxu1 }
 0x687   :  { %v11025_v25 = vadd.f32 %v9091_v34, %v7791_v6  ;;  %v9093_v58 = vpop.f32.mrb[29].mxu1 }
 0x688   :  { %v11026_v35 = vadd.f32 %v9093_v58, %v7795_v33  ;;  %v9095_v36 = vpop.f32.mrb[30].mxu1 }
 0x689   :  { %v11027_v47 = vadd.f32 %v9095_v36, %v7791_v6  ;;  %v9097_v39 = vpop.f32.mrb[31].mxu1  ;;  %v9272_v38 = vmax.f32 %v11025_v25, 0.0 }
 0x68a   :  { %v11028_v48 = vadd.f32 %v9097_v39, %v7795_v33  ;;  %v9273_v37 = vmax.f32 %v11026_v35, 0.0 }
 0x68b   :  { %v9276_v15 = vmax.f32 %v11027_v47, 0.0 }
 0x68c   :  { %v9277_v54 = vmax.f32 %v11028_v48, 0.0 }
 0x68d   :  { %v9280_v31 = vpack.c.bf16 %v9276_v15, %v9272_v38 }
 0x68e   :  { %v9281_v17 = vpack.c.bf16 %v9277_v54, %v9273_v37 }
 0x690   :  { %9579 = vmatprep.mubr.bf16.mxu1 %v9281_v17 }
 0x691   :  { %9580 = vmatmul.mubr.bf16.vlgmr.msra.gmra.mrb[36].mxu1 %v9280_v31 }
 0x692   :  { %10976 = vmatpush3.bf16.msra.mxu1 %v12151_v18 }
 0x693   :  { %10977 = vmatprep.subr.bf16.mxu1 %v12152_v40 }
 0x696   :  { %10978 = vmatpush3.bf16.msra.mxu1 %v12153_v63 }
 0x697   :  { %10979 = vmatprep.subr.bf16.mxu1 %v12154_v7 }
 0x69a   :  { %10980 = vmatpush3.bf16.msra.mxu1 %v12155_v41 }
 0x69b   :  { %10981 = vmatprep.subr.bf16.mxu1 %v12156_v42 }
 0x69e   :  { %10982 = vmatpush3.bf16.msra.mxu1 %v12157_v30 }
 0x69f   :  { %10983 = vmatprep.subr.bf16.mxu1 %v12158_v44 }
 0x6a2   :  { %10984 = vmatpush3.bf16.msra.mxu1 %v12159_v24 }
 0x6a3   :  { %10985 = vmatprep.subr.bf16.mxu1 %v12160_v49 }
 0x6a6   :  { %v9263_v55 = vpop.f32.mrb[32].mxu1  ;;  %10986 = vmatpush3.bf16.msra.mxu1 %v12161_v52 }
 0x6a7   :  { %v11030_v27 = vadd.f32 %v11029_v46, %v9263_v55  ;;  %v9265_v29 = vpop.f32.mrb[33].mxu1  ;;  %10987 = vmatprep.subr.bf16.mxu1 %v12162_v43 }
 0x6a8   :  { %v11032_v61 = vadd.f32 %v11031_v16, %v9265_v29  ;;  %v9267_v8 = vpop.f32.mrb[34].mxu1 }
 0x6a9   :  { %v11034_v0 = vadd.f32 %v11033_v56, %v9267_v8  ;;  %v9269_v62 = vpop.f32.mrb[35].mxu1  ;;  %v9274_v1 = vmax.f32 %v11030_v27, 0.0 }
 0x6aa   :  { %v11036_v11 = vadd.f32 %v11035_v60, %v9269_v62  ;;  %10988 = vmatpush3.bf16.msra.mxu1 %v12163_v21  ;;  %v9275_v5 = vmax.f32 %v11032_v61, 0.0 }
 0x6ab   :  { %v9278_v4 = vmax.f32 %v11034_v0, 0.0  ;;  %10989 = vmatprep.subr.bf16.mxu1 %v12164_v59 }
 0x6ac   :  { %v9279_v9 = vmax.f32 %v11036_v11, 0.0 }
 0x6ad   :  { %v9282_v10 = vpack.c.bf16 %v9278_v4, %v9274_v1 }
 0x6ae   :  { %v9283_v12 = vpack.c.bf16 %v9279_v9, %v9275_v5  ;;  %10990 = vmatpush3.bf16.msra.mxu1 %v12165_v57 }
 0x6b0   :  { %9620 = vmatprep.mubr.bf16.mxu1 %v9283_v12 }
 0x6b1   :  { %9621 = vmatmul.mubr.bf16.vlgmr.msra.gmra.mrb[40].mxu1 %v9282_v10 }
 0x764   :  { %v10969_v2 = vpop.f32.mrb[36].mxu1 }
 0x765   :  { %v10970_v3 = vpop.f32.mrb[37].mxu1 }
 0x766   :  { %v10971_v45 = vadd.f32 %v10970_v3, %v10969_v2  ;;  %v10972_v13 = vpop.f32.mrb[38].mxu1 }
 0x767   :  { %v10973_v14 = vpop.f32.mrb[39].mxu1 }
 0x768   :  { %v10974_v19 = vadd.f32 %v10973_v14, %v10972_v13  ;;  %v9582_v26 = vadd.f32 %v10971_v45, %v10832_v53 }
 0x76a   :  { %v9585_v6 = vadd.f32 %v10974_v19, %v10832_v53 }
 0x784   :  { %v10991_v23 = vpop.f32.mrb[40].mxu1 }
 0x785   :  { %v10992_v22 = vpop.f32.mrb[41].mxu1 }
 0x786   :  { %v10993_v20 = vadd.f32 %v10992_v22, %v10991_v23  ;;  %v10994_v28 = vpop.f32.mrb[42].mxu1 }
 0x787   :  { %v10995_v32 = vpop.f32.mrb[43].mxu1 }
 0x788   :  { %v9623_v33 = vadd.f32 %v10993_v20, %v9582_v26  ;;  %v10996_v34 = vadd.f32 %v10995_v32, %v10994_v28 }
 0x78a   :  { %9629 = vst [vmem:[%s12779_s9] sm:$0xff] %v9623_v33  ;;  %v9626_v25 = vadd.f32 %v10996_v34, %v9585_v6 }
 0x78c   :  { %9630 = vst [vmem:[%s12779_s9 + $0x8] sm:$0xff] %v9626_v25 }
 0x78d   :  { %9635 = vsyncpa [#allocation3], 1 }
 0x78e   :  { %9636 = vsyncpa [#allocation5], 1 }
 0x78f   :  { %9637 = vsyncpa [#allocation8], 1 }
 0x790   :  { %9638 = vsyncpa [#allocation11], 1 }
 0x791   :  { %9639 = vsyncpa [#allocation14], 1 }

</bundles_post_ra>
